<compile_context>
chip_gen: v7x
topology: tpu7x:2x2x1
jax: 0.10.0
libtpu: 0.0.40
codegen_flags: <defaults>
</compile_context>

<pallas_src>
import jax
import jax.numpy as jnp
from jax.experimental import pallas as pl
from jax.experimental.pallas import tpu as pltpu


NUM_BLOCKS = 4
NUM_LAYERS = 6               # Linear layers per coupling MLP (ReLU after first 5)
PER_BLOCK = NUM_LAYERS * 2   # (w, b) per layer


# ----------------------------------------------------------------------------
# Fused kernel: whole NICE forward in de-interleaved [evens | odds] layout.
# ----------------------------------------------------------------------------
def _fused_nice_kernel(x1_ref, x2_ref, es1_ref, es2_ref, *rest):
    # rest = 48 weight/bias refs (4 blocks x 6 layers x (w, b)) + 2 output refs
    n_p = NUM_BLOCKS * PER_BLOCK
    param_refs = rest[:n_p]
    z1_ref, z2_ref = rest[n_p], rest[n_p + 1]

    def mlp(h, refs):
        for li in range(NUM_LAYERS):
            w = refs[2 * li][...]
            b = refs[2 * li + 1][...]
            h = jnp.dot(h, w, preferred_element_type=jnp.float32) + b
            if li < NUM_LAYERS - 1:
                h = jnp.maximum(h, 0.0)
        return h

    a = x1_ref[...]   # values currently sitting in the even feature slots
    b = x2_ref[...]   # values currently sitting in the odd feature slots

    for blk in range(NUM_BLOCKS):
        refs = param_refs[blk * PER_BLOCK:(blk + 1) * PER_BLOCK]
        if blk % 2 == 1:
            # Odd blocks: PyTorch writes h_i1 (conditioner, read from the odd
            # slots) back into the even slots -> halves swap in place.
            a, b = b, a
        b = b + mlp(a, refs)

    # z = exp(s) * x, per half; exp(s) precomputed outside (parameter-only).
    z1_ref[...] = es1_ref[...] * a
    z2_ref[...] = es2_ref[...] * b


# ----------------------------------------------------------------------------
# Wrapper: one-time (de)interleave + single fused pallas_call
# ----------------------------------------------------------------------------
def nice_forward(x, params, s, *, batch_tile=None):
    B, D = x.shape
    half = D // 2

    # One-time de-interleave (layout glue, plain JAX, executed once per call).
    x1 = x[:, ::2]
    x2 = x[:, 1::2]
    exp_s = jnp.exp(s)
    es1 = exp_s[::2].reshape(1, half)
    es2 = exp_s[1::2].reshape(1, half)

    flat_params = []
    for block in params:
        for (w, b) in block:
            flat_params.append(w)
            flat_params.append(b)

    if batch_tile is None:
        bt = 128 if (B > 128 and B % 128 == 0) else B
    else:
        bt = batch_tile
    assert B % bt == 0
    grid = (B // bt,)

    act_spec = pl.BlockSpec((bt, half), lambda i: (i, 0))

    # Constant index_map -> DMA'd once, VMEM-resident for the whole call.
    def resident(arr):
        return pl.BlockSpec(arr.shape, lambda i: (0, 0))

    in_specs = ([act_spec, act_spec, resident(es1), resident(es2)]
                + [resident(p) for p in flat_params])

    z1, z2 = pl.pallas_call(
        _fused_nice_kernel,
        out_shape=(jax.ShapeDtypeStruct((B, half), jnp.float32),
                   jax.ShapeDtypeStruct((B, half), jnp.float32)),
        grid_spec=pltpu.PrefetchScalarGridSpec(
            num_scalar_prefetch=0,
            grid=grid,
            in_specs=in_specs,
            out_specs=(act_spec, act_spec),
        ),
        compiler_params=pltpu.CompilerParams(
            dimension_semantics=("parallel",),   # megacore batch split on v7x
        ),
    )(x1, x2, es1, es2, *flat_params)

    # One-time re-interleave back to the original even/odd feature order.
    z = jnp.stack([z1, z2], axis=-1).reshape(B, D)
    log_jacobian = jnp.sum(s)   # parameter-only; hoisted out of the kernel
    return z, log_jacobian


# ----------------------------------------------------------------------------
# Parameter init (deterministic, PyTorch nn.Linear-style uniform fan-in init)
# ----------------------------------------------------------------------------
def init_nice_params(key, data_dim, hidden_dim):
    half = data_dim // 2
    dims = [half] + [hidden_dim] * (NUM_LAYERS - 1) + [half]
    params = []
    for _ in range(NUM_BLOCKS):
        layers = []
        for li in range(NUM_LAYERS):
            fan_in, fan_out = dims[li], dims[li + 1]
            key, kw, kb = jax.random.split(key, 3)
            bound = 1.0 / float(fan_in) ** 0.5
            w = jax.random.uniform(kw, (fan_in, fan_out), jnp.float32, -bound, bound)
            b = jax.random.uniform(kb, (1, fan_out), jnp.float32, -bound, bound)
            layers.append((w, b))
        params.append(layers)
    key, ks = jax.random.split(key)
    s = jax.random.normal(ks, (data_dim,), jnp.float32)
    return params, s


# ----------------------------------------------------------------------------
# Pure-JAX reference (mirrors PyTorch NICE.forward literally, interleaved)
# ----------------------------------------------------------------------------
def nice_forward_ref(x, params, s):
    B, D = x.shape
    for i in range(NUM_BLOCKS):
        if i % 2 == 0:
            x_i1, x_i2 = x[:, ::2], x[:, 1::2]
        else:
            x_i1, x_i2 = x[:, 1::2], x[:, ::2]
        h = x_i1
        for li, (w, b) in enumerate(params[i]):
            h = jnp.dot(h, w, precision=jax.lax.Precision.HIGHEST) + b
            if li < NUM_LAYERS - 1:
                h = jnp.maximum(h, 0.0)
        h_i2 = x_i2 + h
        # PyTorch: x[:, ::2] = h_i1 (= x_i1); x[:, 1::2] = h_i2
        x = jnp.stack([x_i1, h_i2], axis=-1).reshape(B, D)
    return jnp.exp(s) * x, jnp.sum(s)


if __name__ == "__main__":
    DATA_DIM = 256     # -> half = 128: lane-dense activations & unmasked stores
    HIDDEN_DIM = 128   # lane-dense hidden layers
    BATCH = 256        # -> 2 grid steps of 128-row tiles (exercises pipeline)

    key = jax.random.PRNGKey(0)
    kparams, kx = jax.random.split(key)
    params, s = init_nice_params(kparams, DATA_DIM, HIDDEN_DIM)
    x = jax.random.normal(kx, (BATCH, DATA_DIM), jnp.float32)

    fwd = jax.jit(nice_forward)
    z, log_jac = fwd(x, params, s)
    z = jax.block_until_ready(z)
    log_jac = jax.block_until_ready(log_jac)

    z_ref, lj_ref = nice_forward_ref(x, params, s)
    assert z.shape == (BATCH, DATA_DIM)
    assert jnp.allclose(z, z_ref, atol=2e-3, rtol=2e-3), \
        float(jnp.max(jnp.abs(z - z_ref)))
    assert jnp.allclose(log_jac, lj_ref, atol=1e-5, rtol=1e-5)

    print("KERNEL_OK")
</pallas_src>

<mosaic_0001>
module attributes {stable_mosaic.version = 11 : i64} {
  func.func @_fused_nice_kernel(%arg0: i32, %arg1: memref<128x128xf32, #tpu.memory_space<vmem>>, %arg2: memref<128x128xf32, #tpu.memory_space<vmem>>, %arg3: memref<1x128xf32, #tpu.memory_space<vmem>>, %arg4: memref<1x128xf32, #tpu.memory_space<vmem>>, %arg5: memref<128x128xf32, #tpu.memory_space<vmem>>, %arg6: memref<1x128xf32, #tpu.memory_space<vmem>>, %arg7: memref<128x128xf32, #tpu.memory_space<vmem>>, %arg8: memref<1x128xf32, #tpu.memory_space<vmem>>, %arg9: memref<128x128xf32, #tpu.memory_space<vmem>>, %arg10: memref<1x128xf32, #tpu.memory_space<vmem>>, %arg11: memref<128x128xf32, #tpu.memory_space<vmem>>, %arg12: memref<1x128xf32, #tpu.memory_space<vmem>>, %arg13: memref<128x128xf32, #tpu.memory_space<vmem>>, %arg14: memref<1x128xf32, #tpu.memory_space<vmem>>, %arg15: memref<128x128xf32, #tpu.memory_space<vmem>>, %arg16: memref<1x128xf32, #tpu.memory_space<vmem>>, %arg17: memref<128x128xf32, #tpu.memory_space<vmem>>, %arg18: memref<1x128xf32, #tpu.memory_space<vmem>>, %arg19: memref<128x128xf32, #tpu.memory_space<vmem>>, %arg20: memref<1x128xf32, #tpu.memory_space<vmem>>, %arg21: memref<128x128xf32, #tpu.memory_space<vmem>>, %arg22: memref<1x128xf32, #tpu.memory_space<vmem>>, %arg23: memref<128x128xf32, #tpu.memory_space<vmem>>, %arg24: memref<1x128xf32, #tpu.memory_space<vmem>>, %arg25: memref<128x128xf32, #tpu.memory_space<vmem>>, %arg26: memref<1x128xf32, #tpu.memory_space<vmem>>, %arg27: memref<128x128xf32, #tpu.memory_space<vmem>>, %arg28: memref<1x128xf32, #tpu.memory_space<vmem>>, %arg29: memref<128x128xf32, #tpu.memory_space<vmem>>, %arg30: memref<1x128xf32, #tpu.memory_space<vmem>>, %arg31: memref<128x128xf32, #tpu.memory_space<vmem>>, %arg32: memref<1x128xf32, #tpu.memory_space<vmem>>, %arg33: memref<128x128xf32, #tpu.memory_space<vmem>>, %arg34: memref<1x128xf32, #tpu.memory_space<vmem>>, %arg35: memref<128x128xf32, #tpu.memory_space<vmem>>, %arg36: memref<1x128xf32, #tpu.memory_space<vmem>>, %arg37: memref<128x128xf32, #tpu.memory_space<vmem>>, %arg38: memref<1x128xf32, #tpu.memory_space<vmem>>, %arg39: memref<128x128xf32, #tpu.memory_space<vmem>>, %arg40: memref<1x128xf32, #tpu.memory_space<vmem>>, %arg41: memref<128x128xf32, #tpu.memory_space<vmem>>, %arg42: memref<1x128xf32, #tpu.memory_space<vmem>>, %arg43: memref<128x128xf32, #tpu.memory_space<vmem>>, %arg44: memref<1x128xf32, #tpu.memory_space<vmem>>, %arg45: memref<128x128xf32, #tpu.memory_space<vmem>>, %arg46: memref<1x128xf32, #tpu.memory_space<vmem>>, %arg47: memref<128x128xf32, #tpu.memory_space<vmem>>, %arg48: memref<1x128xf32, #tpu.memory_space<vmem>>, %arg49: memref<128x128xf32, #tpu.memory_space<vmem>>, %arg50: memref<1x128xf32, #tpu.memory_space<vmem>>, %arg51: memref<128x128xf32, #tpu.memory_space<vmem>>, %arg52: memref<1x128xf32, #tpu.memory_space<vmem>>, %arg53: memref<128x128xf32, #tpu.memory_space<vmem>>, %arg54: memref<128x128xf32, #tpu.memory_space<vmem>>) attributes {dimension_semantics = [#tpu.dimension_semantics<parallel>], iteration_bounds = array<i64: 2>, scalar_prefetch = 0 : i64, scratch_operands = 0 : i64, tpu.core_type = #tpu.core_type<tc>, window_params = [{transform_indices = @transform_0, window_bounds = array<i64: 128, 128>}, {transform_indices = @transform_1, window_bounds = array<i64: 128, 128>}, {pipeline_mode = #tpu.pipeline_mode<synchronous>, transform_indices = @transform_2, window_bounds = array<i64: 1, 128>}, {pipeline_mode = #tpu.pipeline_mode<synchronous>, transform_indices = @transform_3, window_bounds = array<i64: 1, 128>}, {pipeline_mode = #tpu.pipeline_mode<synchronous>, transform_indices = @transform_4, window_bounds = array<i64: 128, 128>}, {pipeline_mode = #tpu.pipeline_mode<synchronous>, transform_indices = @transform_5, window_bounds = array<i64: 1, 128>}, {pipeline_mode = #tpu.pipeline_mode<synchronous>, transform_indices = @transform_6, window_bounds = array<i64: 128, 128>}, {pipeline_mode = #tpu.pipeline_mode<synchronous>, transform_indices = @transform_7, window_bounds = array<i64: 1, 128>}, {pipeline_mode = #tpu.pipeline_mode<synchronous>, transform_indices = @transform_8, window_bounds = array<i64: 128, 128>}, {pipeline_mode = #tpu.pipeline_mode<synchronous>, transform_indices = @transform_9, window_bounds = array<i64: 1, 128>}, {pipeline_mode = #tpu.pipeline_mode<synchronous>, transform_indices = @transform_10, window_bounds = array<i64: 128, 128>}, {pipeline_mode = #tpu.pipeline_mode<synchronous>, transform_indices = @transform_11, window_bounds = array<i64: 1, 128>}, {pipeline_mode = #tpu.pipeline_mode<synchronous>, transform_indices = @transform_12, window_bounds = array<i64: 128, 128>}, {pipeline_mode = #tpu.pipeline_mode<synchronous>, transform_indices = @transform_13, window_bounds = array<i64: 1, 128>}, {pipeline_mode = #tpu.pipeline_mode<synchronous>, transform_indices = @transform_14, window_bounds = array<i64: 128, 128>}, {pipeline_mode = #tpu.pipeline_mode<synchronous>, transform_indices = @transform_15, window_bounds = array<i64: 1, 128>}, {pipeline_mode = #tpu.pipeline_mode<synchronous>, transform_indices = @transform_16, window_bounds = array<i64: 128, 128>}, {pipeline_mode = #tpu.pipeline_mode<synchronous>, transform_indices = @transform_17, window_bounds = array<i64: 1, 128>}, {pipeline_mode = #tpu.pipeline_mode<synchronous>, transform_indices = @transform_18, window_bounds = array<i64: 128, 128>}, {pipeline_mode = #tpu.pipeline_mode<synchronous>, transform_indices = @transform_19, window_bounds = array<i64: 1, 128>}, {pipeline_mode = #tpu.pipeline_mode<synchronous>, transform_indices = @transform_20, window_bounds = array<i64: 128, 128>}, {pipeline_mode = #tpu.pipeline_mode<synchronous>, transform_indices = @transform_21, window_bounds = array<i64: 1, 128>}, {pipeline_mode = #tpu.pipeline_mode<synchronous>, transform_indices = @transform_22, window_bounds = array<i64: 128, 128>}, {pipeline_mode = #tpu.pipeline_mode<synchronous>, transform_indices = @transform_23, window_bounds = array<i64: 1, 128>}, {pipeline_mode = #tpu.pipeline_mode<synchronous>, transform_indices = @transform_24, window_bounds = array<i64: 128, 128>}, {pipeline_mode = #tpu.pipeline_mode<synchronous>, transform_indices = @transform_25, window_bounds = array<i64: 1, 128>}, {pipeline_mode = #tpu.pipeline_mode<synchronous>, transform_indices = @transform_26, window_bounds = array<i64: 128, 128>}, {pipeline_mode = #tpu.pipeline_mode<synchronous>, transform_indices = @transform_27, window_bounds = array<i64: 1, 128>}, {pipeline_mode = #tpu.pipeline_mode<synchronous>, transform_indices = @transform_28, window_bounds = array<i64: 128, 128>}, {pipeline_mode = #tpu.pipeline_mode<synchronous>, transform_indices = @transform_29, window_bounds = array<i64: 1, 128>}, {pipeline_mode = #tpu.pipeline_mode<synchronous>, transform_indices = @transform_30, window_bounds = array<i64: 128, 128>}, {pipeline_mode = #tpu.pipeline_mode<synchronous>, transform_indices = @transform_31, window_bounds = array<i64: 1, 128>}, {pipeline_mode = #tpu.pipeline_mode<synchronous>, transform_indices = @transform_32, window_bounds = array<i64: 128, 128>}, {pipeline_mode = #tpu.pipeline_mode<synchronous>, transform_indices = @transform_33, window_bounds = array<i64: 1, 128>}, {pipeline_mode = #tpu.pipeline_mode<synchronous>, transform_indices = @transform_34, window_bounds = array<i64: 128, 128>}, {pipeline_mode = #tpu.pipeline_mode<synchronous>, transform_indices = @transform_35, window_bounds = array<i64: 1, 128>}, {pipeline_mode = #tpu.pipeline_mode<synchronous>, transform_indices = @transform_36, window_bounds = array<i64: 128, 128>}, {pipeline_mode = #tpu.pipeline_mode<synchronous>, transform_indices = @transform_37, window_bounds = array<i64: 1, 128>}, {pipeline_mode = #tpu.pipeline_mode<synchronous>, transform_indices = @transform_38, window_bounds = array<i64: 128, 128>}, {pipeline_mode = #tpu.pipeline_mode<synchronous>, transform_indices = @transform_39, window_bounds = array<i64: 1, 128>}, {pipeline_mode = #tpu.pipeline_mode<synchronous>, transform_indices = @transform_40, window_bounds = array<i64: 128, 128>}, {pipeline_mode = #tpu.pipeline_mode<synchronous>, transform_indices = @transform_41, window_bounds = array<i64: 1, 128>}, {pipeline_mode = #tpu.pipeline_mode<synchronous>, transform_indices = @transform_42, window_bounds = array<i64: 128, 128>}, {pipeline_mode = #tpu.pipeline_mode<synchronous>, transform_indices = @transform_43, window_bounds = array<i64: 1, 128>}, {pipeline_mode = #tpu.pipeline_mode<synchronous>, transform_indices = @transform_44, window_bounds = array<i64: 128, 128>}, {pipeline_mode = #tpu.pipeline_mode<synchronous>, transform_indices = @transform_45, window_bounds = array<i64: 1, 128>}, {pipeline_mode = #tpu.pipeline_mode<synchronous>, transform_indices = @transform_46, window_bounds = array<i64: 128, 128>}, {pipeline_mode = #tpu.pipeline_mode<synchronous>, transform_indices = @transform_47, window_bounds = array<i64: 1, 128>}, {pipeline_mode = #tpu.pipeline_mode<synchronous>, transform_indices = @transform_48, window_bounds = array<i64: 128, 128>}, {pipeline_mode = #tpu.pipeline_mode<synchronous>, transform_indices = @transform_49, window_bounds = array<i64: 1, 128>}, {pipeline_mode = #tpu.pipeline_mode<synchronous>, transform_indices = @transform_50, window_bounds = array<i64: 128, 128>}, {pipeline_mode = #tpu.pipeline_mode<synchronous>, transform_indices = @transform_51, window_bounds = array<i64: 1, 128>}, {transform_indices = @transform_52, window_bounds = array<i64: 128, 128>}, {transform_indices = @transform_53, window_bounds = array<i64: 128, 128>}]} {
    %c0 = arith.constant 0 : index
    %c0_0 = arith.constant 0 : index
    %0 = vector.load %arg1[%c0, %c0_0] : memref<128x128xf32, #tpu.memory_space<vmem>>, vector<128x128xf32>
    %c0_1 = arith.constant 0 : index
    %c0_2 = arith.constant 0 : index
    %1 = vector.load %arg2[%c0_1, %c0_2] : memref<128x128xf32, #tpu.memory_space<vmem>>, vector<128x128xf32>
    %c0_3 = arith.constant 0 : index
    %c0_4 = arith.constant 0 : index
    %2 = vector.load %arg5[%c0_3, %c0_4] : memref<128x128xf32, #tpu.memory_space<vmem>>, vector<128x128xf32>
    %c0_5 = arith.constant 0 : index
    %c0_6 = arith.constant 0 : index
    %3 = vector.load %arg6[%c0_5, %c0_6] : memref<1x128xf32, #tpu.memory_space<vmem>>, vector<1x128xf32>
    %cst = arith.constant dense<0.000000e+00> : vector<128x128xf32>
    %4 = tpu.matmul %0, %2, %cst {dimension_numbers = #tpu.dot_dimension_numbers<[1], [0], [0], [1], [0, 0, 1, 1], [], []>} : vector<128x128xf32>, vector<128x128xf32>, vector<128x128xf32> -> vector<128x128xf32>
    %5 = vector.broadcast %3 : vector<1x128xf32> to vector<128x128xf32>
    %6 = arith.addf %4, %5 : vector<128x128xf32>
    %cst_7 = arith.constant 0.000000e+00 : f32
    %7 = vector.broadcast %cst_7 : f32 to vector<128x128xf32>
    %8 = arith.maximumf %6, %7 : vector<128x128xf32>
    %c0_8 = arith.constant 0 : index
    %c0_9 = arith.constant 0 : index
    %9 = vector.load %arg7[%c0_8, %c0_9] : memref<128x128xf32, #tpu.memory_space<vmem>>, vector<128x128xf32>
    %c0_10 = arith.constant 0 : index
    %c0_11 = arith.constant 0 : index
    %10 = vector.load %arg8[%c0_10, %c0_11] : memref<1x128xf32, #tpu.memory_space<vmem>>, vector<1x128xf32>
    %cst_12 = arith.constant dense<0.000000e+00> : vector<128x128xf32>
    %11 = tpu.matmul %8, %9, %cst_12 {dimension_numbers = #tpu.dot_dimension_numbers<[1], [0], [0], [1], [0, 0, 1, 1], [], []>} : vector<128x128xf32>, vector<128x128xf32>, vector<128x128xf32> -> vector<128x128xf32>
    %12 = vector.broadcast %10 : vector<1x128xf32> to vector<128x128xf32>
    %13 = arith.addf %11, %12 : vector<128x128xf32>
    %cst_13 = arith.constant 0.000000e+00 : f32
    %14 = vector.broadcast %cst_13 : f32 to vector<128x128xf32>
    %15 = arith.maximumf %13, %14 : vector<128x128xf32>
    %c0_14 = arith.constant 0 : index
    %c0_15 = arith.constant 0 : index
    %16 = vector.load %arg9[%c0_14, %c0_15] : memref<128x128xf32, #tpu.memory_space<vmem>>, vector<128x128xf32>
    %c0_16 = arith.constant 0 : index
    %c0_17 = arith.constant 0 : index
    %17 = vector.load %arg10[%c0_16, %c0_17] : memref<1x128xf32, #tpu.memory_space<vmem>>, vector<1x128xf32>
    %cst_18 = arith.constant dense<0.000000e+00> : vector<128x128xf32>
    %18 = tpu.matmul %15, %16, %cst_18 {dimension_numbers = #tpu.dot_dimension_numbers<[1], [0], [0], [1], [0, 0, 1, 1], [], []>} : vector<128x128xf32>, vector<128x128xf32>, vector<128x128xf32> -> vector<128x128xf32>
    %19 = vector.broadcast %17 : vector<1x128xf32> to vector<128x128xf32>
    %20 = arith.addf %18, %19 : vector<128x128xf32>
    %cst_19 = arith.constant 0.000000e+00 : f32
    %21 = vector.broadcast %cst_19 : f32 to vector<128x128xf32>
    %22 = arith.maximumf %20, %21 : vector<128x128xf32>
    %c0_20 = arith.constant 0 : index
    %c0_21 = arith.constant 0 : index
    %23 = vector.load %arg11[%c0_20, %c0_21] : memref<128x128xf32, #tpu.memory_space<vmem>>, vector<128x128xf32>
    %c0_22 = arith.constant 0 : index
    %c0_23 = arith.constant 0 : index
    %24 = vector.load %arg12[%c0_22, %c0_23] : memref<1x128xf32, #tpu.memory_space<vmem>>, vector<1x128xf32>
    %cst_24 = arith.constant dense<0.000000e+00> : vector<128x128xf32>
    %25 = tpu.matmul %22, %23, %cst_24 {dimension_numbers = #tpu.dot_dimension_numbers<[1], [0], [0], [1], [0, 0, 1, 1], [], []>} : vector<128x128xf32>, vector<128x128xf32>, vector<128x128xf32> -> vector<128x128xf32>
    %26 = vector.broadcast %24 : vector<1x128xf32> to vector<128x128xf32>
    %27 = arith.addf %25, %26 : vector<128x128xf32>
    %cst_25 = arith.constant 0.000000e+00 : f32
    %28 = vector.broadcast %cst_25 : f32 to vector<128x128xf32>
    %29 = arith.maximumf %27, %28 : vector<128x128xf32>
    %c0_26 = arith.constant 0 : index
    %c0_27 = arith.constant 0 : index
    %30 = vector.load %arg13[%c0_26, %c0_27] : memref<128x128xf32, #tpu.memory_space<vmem>>, vector<128x128xf32>
    %c0_28 = arith.constant 0 : index
    %c0_29 = arith.constant 0 : index
    %31 = vector.load %arg14[%c0_28, %c0_29] : memref<1x128xf32, #tpu.memory_space<vmem>>, vector<1x128xf32>
    %cst_30 = arith.constant dense<0.000000e+00> : vector<128x128xf32>
    %32 = tpu.matmul %29, %30, %cst_30 {dimension_numbers = #tpu.dot_dimension_numbers<[1], [0], [0], [1], [0, 0, 1, 1], [], []>} : vector<128x128xf32>, vector<128x128xf32>, vector<128x128xf32> -> vector<128x128xf32>
    %33 = vector.broadcast %31 : vector<1x128xf32> to vector<128x128xf32>
    %34 = arith.addf %32, %33 : vector<128x128xf32>
    %cst_31 = arith.constant 0.000000e+00 : f32
    %35 = vector.broadcast %cst_31 : f32 to vector<128x128xf32>
    %36 = arith.maximumf %34, %35 : vector<128x128xf32>
    %c0_32 = arith.constant 0 : index
    %c0_33 = arith.constant 0 : index
    %37 = vector.load %arg15[%c0_32, %c0_33] : memref<128x128xf32, #tpu.memory_space<vmem>>, vector<128x128xf32>
    %c0_34 = arith.constant 0 : index
    %c0_35 = arith.constant 0 : index
    %38 = vector.load %arg16[%c0_34, %c0_35] : memref<1x128xf32, #tpu.memory_space<vmem>>, vector<1x128xf32>
    %cst_36 = arith.constant dense<0.000000e+00> : vector<128x128xf32>
    %39 = tpu.matmul %36, %37, %cst_36 {dimension_numbers = #tpu.dot_dimension_numbers<[1], [0], [0], [1], [0, 0, 1, 1], [], []>} : vector<128x128xf32>, vector<128x128xf32>, vector<128x128xf32> -> vector<128x128xf32>
    %40 = vector.broadcast %38 : vector<1x128xf32> to vector<128x128xf32>
    %41 = arith.addf %39, %40 : vector<128x128xf32>
    %42 = arith.addf %1, %41 : vector<128x128xf32>
    %c0_37 = arith.constant 0 : index
    %c0_38 = arith.constant 0 : index
    %43 = vector.load %arg17[%c0_37, %c0_38] : memref<128x128xf32, #tpu.memory_space<vmem>>, vector<128x128xf32>
    %c0_39 = arith.constant 0 : index
    %c0_40 = arith.constant 0 : index
    %44 = vector.load %arg18[%c0_39, %c0_40] : memref<1x128xf32, #tpu.memory_space<vmem>>, vector<1x128xf32>
    %cst_41 = arith.constant dense<0.000000e+00> : vector<128x128xf32>
    %45 = tpu.matmul %42, %43, %cst_41 {dimension_numbers = #tpu.dot_dimension_numbers<[1], [0], [0], [1], [0, 0, 1, 1], [], []>} : vector<128x128xf32>, vector<128x128xf32>, vector<128x128xf32> -> vector<128x128xf32>
    %46 = vector.broadcast %44 : vector<1x128xf32> to vector<128x128xf32>
    %47 = arith.addf %45, %46 : vector<128x128xf32>
    %cst_42 = arith.constant 0.000000e+00 : f32
    %48 = vector.broadcast %cst_42 : f32 to vector<128x128xf32>
    %49 = arith.maximumf %47, %48 : vector<128x128xf32>
    %c0_43 = arith.constant 0 : index
    %c0_44 = arith.constant 0 : index
    %50 = vector.load %arg19[%c0_43, %c0_44] : memref<128x128xf32, #tpu.memory_space<vmem>>, vector<128x128xf32>
    %c0_45 = arith.constant 0 : index
    %c0_46 = arith.constant 0 : index
    %51 = vector.load %arg20[%c0_45, %c0_46] : memref<1x128xf32, #tpu.memory_space<vmem>>, vector<1x128xf32>
    %cst_47 = arith.constant dense<0.000000e+00> : vector<128x128xf32>
    %52 = tpu.matmul %49, %50, %cst_47 {dimension_numbers = #tpu.dot_dimension_numbers<[1], [0], [0], [1], [0, 0, 1, 1], [], []>} : vector<128x128xf32>, vector<128x128xf32>, vector<128x128xf32> -> vector<128x128xf32>
    %53 = vector.broadcast %51 : vector<1x128xf32> to vector<128x128xf32>
    %54 = arith.addf %52, %53 : vector<128x128xf32>
    %cst_48 = arith.constant 0.000000e+00 : f32
    %55 = vector.broadcast %cst_48 : f32 to vector<128x128xf32>
    %56 = arith.maximumf %54, %55 : vector<128x128xf32>
    %c0_49 = arith.constant 0 : index
    %c0_50 = arith.constant 0 : index
    %57 = vector.load %arg21[%c0_49, %c0_50] : memref<128x128xf32, #tpu.memory_space<vmem>>, vector<128x128xf32>
    %c0_51 = arith.constant 0 : index
    %c0_52 = arith.constant 0 : index
    %58 = vector.load %arg22[%c0_51, %c0_52] : memref<1x128xf32, #tpu.memory_space<vmem>>, vector<1x128xf32>
    %cst_53 = arith.constant dense<0.000000e+00> : vector<128x128xf32>
    %59 = tpu.matmul %56, %57, %cst_53 {dimension_numbers = #tpu.dot_dimension_numbers<[1], [0], [0], [1], [0, 0, 1, 1], [], []>} : vector<128x128xf32>, vector<128x128xf32>, vector<128x128xf32> -> vector<128x128xf32>
    %60 = vector.broadcast %58 : vector<1x128xf32> to vector<128x128xf32>
    %61 = arith.addf %59, %60 : vector<128x128xf32>
    %cst_54 = arith.constant 0.000000e+00 : f32
    %62 = vector.broadcast %cst_54 : f32 to vector<128x128xf32>
    %63 = arith.maximumf %61, %62 : vector<128x128xf32>
    %c0_55 = arith.constant 0 : index
    %c0_56 = arith.constant 0 : index
    %64 = vector.load %arg23[%c0_55, %c0_56] : memref<128x128xf32, #tpu.memory_space<vmem>>, vector<128x128xf32>
    %c0_57 = arith.constant 0 : index
    %c0_58 = arith.constant 0 : index
    %65 = vector.load %arg24[%c0_57, %c0_58] : memref<1x128xf32, #tpu.memory_space<vmem>>, vector<1x128xf32>
    %cst_59 = arith.constant dense<0.000000e+00> : vector<128x128xf32>
    %66 = tpu.matmul %63, %64, %cst_59 {dimension_numbers = #tpu.dot_dimension_numbers<[1], [0], [0], [1], [0, 0, 1, 1], [], []>} : vector<128x128xf32>, vector<128x128xf32>, vector<128x128xf32> -> vector<128x128xf32>
    %67 = vector.broadcast %65 : vector<1x128xf32> to vector<128x128xf32>
    %68 = arith.addf %66, %67 : vector<128x128xf32>
    %cst_60 = arith.constant 0.000000e+00 : f32
    %69 = vector.broadcast %cst_60 : f32 to vector<128x128xf32>
    %70 = arith.maximumf %68, %69 : vector<128x128xf32>
    %c0_61 = arith.constant 0 : index
    %c0_62 = arith.constant 0 : index
    %71 = vector.load %arg25[%c0_61, %c0_62] : memref<128x128xf32, #tpu.memory_space<vmem>>, vector<128x128xf32>
    %c0_63 = arith.constant 0 : index
    %c0_64 = arith.constant 0 : index
    %72 = vector.load %arg26[%c0_63, %c0_64] : memref<1x128xf32, #tpu.memory_space<vmem>>, vector<1x128xf32>
    %cst_65 = arith.constant dense<0.000000e+00> : vector<128x128xf32>
    %73 = tpu.matmul %70, %71, %cst_65 {dimension_numbers = #tpu.dot_dimension_numbers<[1], [0], [0], [1], [0, 0, 1, 1], [], []>} : vector<128x128xf32>, vector<128x128xf32>, vector<128x128xf32> -> vector<128x128xf32>
    %74 = vector.broadcast %72 : vector<1x128xf32> to vector<128x128xf32>
    %75 = arith.addf %73, %74 : vector<128x128xf32>
    %cst_66 = arith.constant 0.000000e+00 : f32
    %76 = vector.broadcast %cst_66 : f32 to vector<128x128xf32>
    %77 = arith.maximumf %75, %76 : vector<128x128xf32>
    %c0_67 = arith.constant 0 : index
    %c0_68 = arith.constant 0 : index
    %78 = vector.load %arg27[%c0_67, %c0_68] : memref<128x128xf32, #tpu.memory_space<vmem>>, vector<128x128xf32>
    %c0_69 = arith.constant 0 : index
    %c0_70 = arith.constant 0 : index
    %79 = vector.load %arg28[%c0_69, %c0_70] : memref<1x128xf32, #tpu.memory_space<vmem>>, vector<1x128xf32>
    %cst_71 = arith.constant dense<0.000000e+00> : vector<128x128xf32>
    %80 = tpu.matmul %77, %78, %cst_71 {dimension_numbers = #tpu.dot_dimension_numbers<[1], [0], [0], [1], [0, 0, 1, 1], [], []>} : vector<128x128xf32>, vector<128x128xf32>, vector<128x128xf32> -> vector<128x128xf32>
    %81 = vector.broadcast %79 : vector<1x128xf32> to vector<128x128xf32>
    %82 = arith.addf %80, %81 : vector<128x128xf32>
    %83 = arith.addf %0, %82 : vector<128x128xf32>
    %c0_72 = arith.constant 0 : index
    %c0_73 = arith.constant 0 : index
    %84 = vector.load %arg29[%c0_72, %c0_73] : memref<128x128xf32, #tpu.memory_space<vmem>>, vector<128x128xf32>
    %c0_74 = arith.constant 0 : index
    %c0_75 = arith.constant 0 : index
    %85 = vector.load %arg30[%c0_74, %c0_75] : memref<1x128xf32, #tpu.memory_space<vmem>>, vector<1x128xf32>
    %cst_76 = arith.constant dense<0.000000e+00> : vector<128x128xf32>
    %86 = tpu.matmul %42, %84, %cst_76 {dimension_numbers = #tpu.dot_dimension_numbers<[1], [0], [0], [1], [0, 0, 1, 1], [], []>} : vector<128x128xf32>, vector<128x128xf32>, vector<128x128xf32> -> vector<128x128xf32>
    %87 = vector.broadcast %85 : vector<1x128xf32> to vector<128x128xf32>
    %88 = arith.addf %86, %87 : vector<128x128xf32>
    %cst_77 = arith.constant 0.000000e+00 : f32
    %89 = vector.broadcast %cst_77 : f32 to vector<128x128xf32>
    %90 = arith.maximumf %88, %89 : vector<128x128xf32>
    %c0_78 = arith.constant 0 : index
    %c0_79 = arith.constant 0 : index
    %91 = vector.load %arg31[%c0_78, %c0_79] : memref<128x128xf32, #tpu.memory_space<vmem>>, vector<128x128xf32>
    %c0_80 = arith.constant 0 : index
    %c0_81 = arith.constant 0 : index
    %92 = vector.load %arg32[%c0_80, %c0_81] : memref<1x128xf32, #tpu.memory_space<vmem>>, vector<1x128xf32>
    %cst_82 = arith.constant dense<0.000000e+00> : vector<128x128xf32>
    %93 = tpu.matmul %90, %91, %cst_82 {dimension_numbers = #tpu.dot_dimension_numbers<[1], [0], [0], [1], [0, 0, 1, 1], [], []>} : vector<128x128xf32>, vector<128x128xf32>, vector<128x128xf32> -> vector<128x128xf32>
    %94 = vector.broadcast %92 : vector<1x128xf32> to vector<128x128xf32>
    %95 = arith.addf %93, %94 : vector<128x128xf32>
    %cst_83 = arith.constant 0.000000e+00 : f32
    %96 = vector.broadcast %cst_83 : f32 to vector<128x128xf32>
    %97 = arith.maximumf %95, %96 : vector<128x128xf32>
    %c0_84 = arith.constant 0 : index
    %c0_85 = arith.constant 0 : index
    %98 = vector.load %arg33[%c0_84, %c0_85] : memref<128x128xf32, #tpu.memory_space<vmem>>, vector<128x128xf32>
    %c0_86 = arith.constant 0 : index
    %c0_87 = arith.constant 0 : index
    %99 = vector.load %arg34[%c0_86, %c0_87] : memref<1x128xf32, #tpu.memory_space<vmem>>, vector<1x128xf32>
    %cst_88 = arith.constant dense<0.000000e+00> : vector<128x128xf32>
    %100 = tpu.matmul %97, %98, %cst_88 {dimension_numbers = #tpu.dot_dimension_numbers<[1], [0], [0], [1], [0, 0, 1, 1], [], []>} : vector<128x128xf32>, vector<128x128xf32>, vector<128x128xf32> -> vector<128x128xf32>
    %101 = vector.broadcast %99 : vector<1x128xf32> to vector<128x128xf32>
    %102 = arith.addf %100, %101 : vector<128x128xf32>
    %cst_89 = arith.constant 0.000000e+00 : f32
    %103 = vector.broadcast %cst_89 : f32 to vector<128x128xf32>
    %104 = arith.maximumf %102, %103 : vector<128x128xf32>
    %c0_90 = arith.constant 0 : index
    %c0_91 = arith.constant 0 : index
    %105 = vector.load %arg35[%c0_90, %c0_91] : memref<128x128xf32, #tpu.memory_space<vmem>>, vector<128x128xf32>
    %c0_92 = arith.constant 0 : index
    %c0_93 = arith.constant 0 : index
    %106 = vector.load %arg36[%c0_92, %c0_93] : memref<1x128xf32, #tpu.memory_space<vmem>>, vector<1x128xf32>
    %cst_94 = arith.constant dense<0.000000e+00> : vector<128x128xf32>
    %107 = tpu.matmul %104, %105, %cst_94 {dimension_numbers = #tpu.dot_dimension_numbers<[1], [0], [0], [1], [0, 0, 1, 1], [], []>} : vector<128x128xf32>, vector<128x128xf32>, vector<128x128xf32> -> vector<128x128xf32>
    %108 = vector.broadcast %106 : vector<1x128xf32> to vector<128x128xf32>
    %109 = arith.addf %107, %108 : vector<128x128xf32>
    %cst_95 = arith.constant 0.000000e+00 : f32
    %110 = vector.broadcast %cst_95 : f32 to vector<128x128xf32>
    %111 = arith.maximumf %109, %110 : vector<128x128xf32>
    %c0_96 = arith.constant 0 : index
    %c0_97 = arith.constant 0 : index
    %112 = vector.load %arg37[%c0_96, %c0_97] : memref<128x128xf32, #tpu.memory_space<vmem>>, vector<128x128xf32>
    %c0_98 = arith.constant 0 : index
    %c0_99 = arith.constant 0 : index
    %113 = vector.load %arg38[%c0_98, %c0_99] : memref<1x128xf32, #tpu.memory_space<vmem>>, vector<1x128xf32>
    %cst_100 = arith.constant dense<0.000000e+00> : vector<128x128xf32>
    %114 = tpu.matmul %111, %112, %cst_100 {dimension_numbers = #tpu.dot_dimension_numbers<[1], [0], [0], [1], [0, 0, 1, 1], [], []>} : vector<128x128xf32>, vector<128x128xf32>, vector<128x128xf32> -> vector<128x128xf32>
    %115 = vector.broadcast %113 : vector<1x128xf32> to vector<128x128xf32>
    %116 = arith.addf %114, %115 : vector<128x128xf32>
    %cst_101 = arith.constant 0.000000e+00 : f32
    %117 = vector.broadcast %cst_101 : f32 to vector<128x128xf32>
    %118 = arith.maximumf %116, %117 : vector<128x128xf32>
    %c0_102 = arith.constant 0 : index
    %c0_103 = arith.constant 0 : index
    %119 = vector.load %arg39[%c0_102, %c0_103] : memref<128x128xf32, #tpu.memory_space<vmem>>, vector<128x128xf32>
    %c0_104 = arith.constant 0 : index
    %c0_105 = arith.constant 0 : index
    %120 = vector.load %arg40[%c0_104, %c0_105] : memref<1x128xf32, #tpu.memory_space<vmem>>, vector<1x128xf32>
    %cst_106 = arith.constant dense<0.000000e+00> : vector<128x128xf32>
    %121 = tpu.matmul %118, %119, %cst_106 {dimension_numbers = #tpu.dot_dimension_numbers<[1], [0], [0], [1], [0, 0, 1, 1], [], []>} : vector<128x128xf32>, vector<128x128xf32>, vector<128x128xf32> -> vector<128x128xf32>
    %122 = vector.broadcast %120 : vector<1x128xf32> to vector<128x128xf32>
    %123 = arith.addf %121, %122 : vector<128x128xf32>
    %124 = arith.addf %83, %123 : vector<128x128xf32>
    %c0_107 = arith.constant 0 : index
    %c0_108 = arith.constant 0 : index
    %125 = vector.load %arg41[%c0_107, %c0_108] : memref<128x128xf32, #tpu.memory_space<vmem>>, vector<128x128xf32>
    %c0_109 = arith.constant 0 : index
    %c0_110 = arith.constant 0 : index
    %126 = vector.load %arg42[%c0_109, %c0_110] : memref<1x128xf32, #tpu.memory_space<vmem>>, vector<1x128xf32>
    %cst_111 = arith.constant dense<0.000000e+00> : vector<128x128xf32>
    %127 = tpu.matmul %124, %125, %cst_111 {dimension_numbers = #tpu.dot_dimension_numbers<[1], [0], [0], [1], [0, 0, 1, 1], [], []>} : vector<128x128xf32>, vector<128x128xf32>, vector<128x128xf32> -> vector<128x128xf32>
    %128 = vector.broadcast %126 : vector<1x128xf32> to vector<128x128xf32>
    %129 = arith.addf %127, %128 : vector<128x128xf32>
    %cst_112 = arith.constant 0.000000e+00 : f32
    %130 = vector.broadcast %cst_112 : f32 to vector<128x128xf32>
    %131 = arith.maximumf %129, %130 : vector<128x128xf32>
    %c0_113 = arith.constant 0 : index
    %c0_114 = arith.constant 0 : index
    %132 = vector.load %arg43[%c0_113, %c0_114] : memref<128x128xf32, #tpu.memory_space<vmem>>, vector<128x128xf32>
    %c0_115 = arith.constant 0 : index
    %c0_116 = arith.constant 0 : index
    %133 = vector.load %arg44[%c0_115, %c0_116] : memref<1x128xf32, #tpu.memory_space<vmem>>, vector<1x128xf32>
    %cst_117 = arith.constant dense<0.000000e+00> : vector<128x128xf32>
    %134 = tpu.matmul %131, %132, %cst_117 {dimension_numbers = #tpu.dot_dimension_numbers<[1], [0], [0], [1], [0, 0, 1, 1], [], []>} : vector<128x128xf32>, vector<128x128xf32>, vector<128x128xf32> -> vector<128x128xf32>
    %135 = vector.broadcast %133 : vector<1x128xf32> to vector<128x128xf32>
    %136 = arith.addf %134, %135 : vector<128x128xf32>
    %cst_118 = arith.constant 0.000000e+00 : f32
    %137 = vector.broadcast %cst_118 : f32 to vector<128x128xf32>
    %138 = arith.maximumf %136, %137 : vector<128x128xf32>
    %c0_119 = arith.constant 0 : index
    %c0_120 = arith.constant 0 : index
    %139 = vector.load %arg45[%c0_119, %c0_120] : memref<128x128xf32, #tpu.memory_space<vmem>>, vector<128x128xf32>
    %c0_121 = arith.constant 0 : index
    %c0_122 = arith.constant 0 : index
    %140 = vector.load %arg46[%c0_121, %c0_122] : memref<1x128xf32, #tpu.memory_space<vmem>>, vector<1x128xf32>
    %cst_123 = arith.constant dense<0.000000e+00> : vector<128x128xf32>
    %141 = tpu.matmul %138, %139, %cst_123 {dimension_numbers = #tpu.dot_dimension_numbers<[1], [0], [0], [1], [0, 0, 1, 1], [], []>} : vector<128x128xf32>, vector<128x128xf32>, vector<128x128xf32> -> vector<128x128xf32>
    %142 = vector.broadcast %140 : vector<1x128xf32> to vector<128x128xf32>
    %143 = arith.addf %141, %142 : vector<128x128xf32>
    %cst_124 = arith.constant 0.000000e+00 : f32
    %144 = vector.broadcast %cst_124 : f32 to vector<128x128xf32>
    %145 = arith.maximumf %143, %144 : vector<128x128xf32>
    %c0_125 = arith.constant 0 : index
    %c0_126 = arith.constant 0 : index
    %146 = vector.load %arg47[%c0_125, %c0_126] : memref<128x128xf32, #tpu.memory_space<vmem>>, vector<128x128xf32>
    %c0_127 = arith.constant 0 : index
    %c0_128 = arith.constant 0 : index
    %147 = vector.load %arg48[%c0_127, %c0_128] : memref<1x128xf32, #tpu.memory_space<vmem>>, vector<1x128xf32>
    %cst_129 = arith.constant dense<0.000000e+00> : vector<128x128xf32>
    %148 = tpu.matmul %145, %146, %cst_129 {dimension_numbers = #tpu.dot_dimension_numbers<[1], [0], [0], [1], [0, 0, 1, 1], [], []>} : vector<128x128xf32>, vector<128x128xf32>, vector<128x128xf32> -> vector<128x128xf32>
    %149 = vector.broadcast %147 : vector<1x128xf32> to vector<128x128xf32>
    %150 = arith.addf %148, %149 : vector<128x128xf32>
    %cst_130 = arith.constant 0.000000e+00 : f32
    %151 = vector.broadcast %cst_130 : f32 to vector<128x128xf32>
    %152 = arith.maximumf %150, %151 : vector<128x128xf32>
    %c0_131 = arith.constant 0 : index
    %c0_132 = arith.constant 0 : index
    %153 = vector.load %arg49[%c0_131, %c0_132] : memref<128x128xf32, #tpu.memory_space<vmem>>, vector<128x128xf32>
    %c0_133 = arith.constant 0 : index
    %c0_134 = arith.constant 0 : index
    %154 = vector.load %arg50[%c0_133, %c0_134] : memref<1x128xf32, #tpu.memory_space<vmem>>, vector<1x128xf32>
    %cst_135 = arith.constant dense<0.000000e+00> : vector<128x128xf32>
    %155 = tpu.matmul %152, %153, %cst_135 {dimension_numbers = #tpu.dot_dimension_numbers<[1], [0], [0], [1], [0, 0, 1, 1], [], []>} : vector<128x128xf32>, vector<128x128xf32>, vector<128x128xf32> -> vector<128x128xf32>
    %156 = vector.broadcast %154 : vector<1x128xf32> to vector<128x128xf32>
    %157 = arith.addf %155, %156 : vector<128x128xf32>
    %cst_136 = arith.constant 0.000000e+00 : f32
    %158 = vector.broadcast %cst_136 : f32 to vector<128x128xf32>
    %159 = arith.maximumf %157, %158 : vector<128x128xf32>
    %c0_137 = arith.constant 0 : index
    %c0_138 = arith.constant 0 : index
    %160 = vector.load %arg51[%c0_137, %c0_138] : memref<128x128xf32, #tpu.memory_space<vmem>>, vector<128x128xf32>
    %c0_139 = arith.constant 0 : index
    %c0_140 = arith.constant 0 : index
    %161 = vector.load %arg52[%c0_139, %c0_140] : memref<1x128xf32, #tpu.memory_space<vmem>>, vector<1x128xf32>
    %cst_141 = arith.constant dense<0.000000e+00> : vector<128x128xf32>
    %162 = tpu.matmul %159, %160, %cst_141 {dimension_numbers = #tpu.dot_dimension_numbers<[1], [0], [0], [1], [0, 0, 1, 1], [], []>} : vector<128x128xf32>, vector<128x128xf32>, vector<128x128xf32> -> vector<128x128xf32>
    %163 = vector.broadcast %161 : vector<1x128xf32> to vector<128x128xf32>
    %164 = arith.addf %162, %163 : vector<128x128xf32>
    %165 = arith.addf %42, %164 : vector<128x128xf32>
    %c0_142 = arith.constant 0 : index
    %c0_143 = arith.constant 0 : index
    %166 = vector.load %arg3[%c0_142, %c0_143] : memref<1x128xf32, #tpu.memory_space<vmem>>, vector<1x128xf32>
    %167 = vector.broadcast %166 : vector<1x128xf32> to vector<128x128xf32>
    %168 = arith.mulf %167, %124 : vector<128x128xf32>
    %c0_144 = arith.constant 0 : index
    %c0_145 = arith.constant 0 : index
    %169 = vector.load %arg53[%c0_144, %c0_145] : memref<128x128xf32, #tpu.memory_space<vmem>>, vector<128x128xf32>
    tpu.vector_store %arg53[%c0_144, %c0_145], %168 {strides = array<i32>} : memref<128x128xf32, #tpu.memory_space<vmem>>, vector<128x128xf32>,
    %c0_146 = arith.constant 0 : index
    %c0_147 = arith.constant 0 : index
    %170 = vector.load %arg4[%c0_146, %c0_147] : memref<1x128xf32, #tpu.memory_space<vmem>>, vector<1x128xf32>
    %171 = vector.broadcast %170 : vector<1x128xf32> to vector<128x128xf32>
    %172 = arith.mulf %171, %165 : vector<128x128xf32>
    %c0_148 = arith.constant 0 : index
    %c0_149 = arith.constant 0 : index
    %173 = vector.load %arg54[%c0_148, %c0_149] : memref<128x128xf32, #tpu.memory_space<vmem>>, vector<128x128xf32>
    tpu.vector_store %arg54[%c0_148, %c0_149], %172 {strides = array<i32>} : memref<128x128xf32, #tpu.memory_space<vmem>>, vector<128x128xf32>,
    return
  }
  func.func @transform_0(%arg0: i32) -> (i32, i32) {
    %c0_i32 = arith.constant 0 : i32
    %c0_i32_0 = arith.constant 0 : i32
    return %arg0, %c0_i32 : i32, i32
  }
  func.func @transform_1(%arg0: i32) -> (i32, i32) {
    %c0_i32 = arith.constant 0 : i32
    %c0_i32_0 = arith.constant 0 : i32
    return %arg0, %c0_i32 : i32, i32
  }
  func.func @transform_2(%arg0: i32) -> (i32, i32) {
    %c0_i32 = arith.constant 0 : i32
    %c0_i32_0 = arith.constant 0 : i32
    %c0_i32_1 = arith.constant 0 : i32
    return %c0_i32, %c0_i32_0 : i32, i32
  }
  func.func @transform_3(%arg0: i32) -> (i32, i32) {
    %c0_i32 = arith.constant 0 : i32
    %c0_i32_0 = arith.constant 0 : i32
    %c0_i32_1 = arith.constant 0 : i32
    return %c0_i32, %c0_i32_0 : i32, i32
  }
  func.func @transform_4(%arg0: i32) -> (i32, i32) {
    %c0_i32 = arith.constant 0 : i32
    %c0_i32_0 = arith.constant 0 : i32
    %c0_i32_1 = arith.constant 0 : i32
    return %c0_i32, %c0_i32_0 : i32, i32
  }
  func.func @transform_5(%arg0: i32) -> (i32, i32) {
    %c0_i32 = arith.constant 0 : i32
    %c0_i32_0 = arith.constant 0 : i32
    %c0_i32_1 = arith.constant 0 : i32
    return %c0_i32, %c0_i32_0 : i32, i32
  }
  func.func @transform_6(%arg0: i32) -> (i32, i32) {
    %c0_i32 = arith.constant 0 : i32
    %c0_i32_0 = arith.constant 0 : i32
    %c0_i32_1 = arith.constant 0 : i32
    return %c0_i32, %c0_i32_0 : i32, i32
  }
  func.func @transform_7(%arg0: i32) -> (i32, i32) {
    %c0_i32 = arith.constant 0 : i32
    %c0_i32_0 = arith.constant 0 : i32
    %c0_i32_1 = arith.constant 0 : i32
    return %c0_i32, %c0_i32_0 : i32, i32
  }
  func.func @transform_8(%arg0: i32) -> (i32, i32) {
    %c0_i32 = arith.constant 0 : i32
    %c0_i32_0 = arith.constant 0 : i32
    %c0_i32_1 = arith.constant 0 : i32
    return %c0_i32, %c0_i32_0 : i32, i32
  }
  func.func @transform_9(%arg0: i32) -> (i32, i32) {
    %c0_i32 = arith.constant 0 : i32
    %c0_i32_0 = arith.constant 0 : i32
    %c0_i32_1 = arith.constant 0 : i32
    return %c0_i32, %c0_i32_0 : i32, i32
  }
  func.func @transform_10(%arg0: i32) -> (i32, i32) {
    %c0_i32 = arith.constant 0 : i32
    %c0_i32_0 = arith.constant 0 : i32
    %c0_i32_1 = arith.constant 0 : i32
    return %c0_i32, %c0_i32_0 : i32, i32
  }
  func.func @transform_11(%arg0: i32) -> (i32, i32) {
    %c0_i32 = arith.constant 0 : i32
    %c0_i32_0 = arith.constant 0 : i32
    %c0_i32_1 = arith.constant 0 : i32
    return %c0_i32, %c0_i32_0 : i32, i32
  }
  func.func @transform_12(%arg0: i32) -> (i32, i32) {
    %c0_i32 = arith.constant 0 : i32
    %c0_i32_0 = arith.constant 0 : i32
    %c0_i32_1 = arith.constant 0 : i32
    return %c0_i32, %c0_i32_0 : i32, i32
  }
  func.func @transform_13(%arg0: i32) -> (i32, i32) {
    %c0_i32 = arith.constant 0 : i32
    %c0_i32_0 = arith.constant 0 : i32
    %c0_i32_1 = arith.constant 0 : i32
    return %c0_i32, %c0_i32_0 : i32, i32
  }
  func.func @transform_14(%arg0: i32) -> (i32, i32) {
    %c0_i32 = arith.constant 0 : i32
    %c0_i32_0 = arith.constant 0 : i32
    %c0_i32_1 = arith.constant 0 : i32
    return %c0_i32, %c0_i32_0 : i32, i32
  }
  func.func @transform_15(%arg0: i32) -> (i32, i32) {
    %c0_i32 = arith.constant 0 : i32
    %c0_i32_0 = arith.constant 0 : i32
    %c0_i32_1 = arith.constant 0 : i32
    return %c0_i32, %c0_i32_0 : i32, i32
  }
  func.func @transform_16(%arg0: i32) -> (i32, i32) {
    %c0_i32 = arith.constant 0 : i32
    %c0_i32_0 = arith.constant 0 : i32
    %c0_i32_1 = arith.constant 0 : i32
    return %c0_i32, %c0_i32_0 : i32, i32
  }
  func.func @transform_17(%arg0: i32) -> (i32, i32) {
    %c0_i32 = arith.constant 0 : i32
    %c0_i32_0 = arith.constant 0 : i32
    %c0_i32_1 = arith.constant 0 : i32
    return %c0_i32, %c0_i32_0 : i32, i32
  }
  func.func @transform_18(%arg0: i32) -> (i32, i32) {
    %c0_i32 = arith.constant 0 : i32
    %c0_i32_0 = arith.constant 0 : i32
    %c0_i32_1 = arith.constant 0 : i32
    return %c0_i32, %c0_i32_0 : i32, i32
  }
  func.func @transform_19(%arg0: i32) -> (i32, i32) {
    %c0_i32 = arith.constant 0 : i32
    %c0_i32_0 = arith.constant 0 : i32
    %c0_i32_1 = arith.constant 0 : i32
    return %c0_i32, %c0_i32_0 : i32, i32
  }
  func.func @transform_20(%arg0: i32) -> (i32, i32) {
    %c0_i32 = arith.constant 0 : i32
    %c0_i32_0 = arith.constant 0 : i32
    %c0_i32_1 = arith.constant 0 : i32
    return %c0_i32, %c0_i32_0 : i32, i32
  }
  func.func @transform_21(%arg0: i32) -> (i32, i32) {
    %c0_i32 = arith.constant 0 : i32
    %c0_i32_0 = arith.constant 0 : i32
    %c0_i32_1 = arith.constant 0 : i32
    return %c0_i32, %c0_i32_0 : i32, i32
  }
  func.func @transform_22(%arg0: i32) -> (i32, i32) {
    %c0_i32 = arith.constant 0 : i32
    %c0_i32_0 = arith.constant 0 : i32
    %c0_i32_1 = arith.constant 0 : i32
    return %c0_i32, %c0_i32_0 : i32, i32
  }
  func.func @transform_23(%arg0: i32) -> (i32, i32) {
    %c0_i32 = arith.constant 0 : i32
    %c0_i32_0 = arith.constant 0 : i32
    %c0_i32_1 = arith.constant 0 : i32
    return %c0_i32, %c0_i32_0 : i32, i32
  }
  func.func @transform_24(%arg0: i32) -> (i32, i32) {
    %c0_i32 = arith.constant 0 : i32
    %c0_i32_0 = arith.constant 0 : i32
    %c0_i32_1 = arith.constant 0 : i32
    return %c0_i32, %c0_i32_0 : i32, i32
  }
  func.func @transform_25(%arg0: i32) -> (i32, i32) {
    %c0_i32 = arith.constant 0 : i32
    %c0_i32_0 = arith.constant 0 : i32
    %c0_i32_1 = arith.constant 0 : i32
    return %c0_i32, %c0_i32_0 : i32, i32
  }
  func.func @transform_26(%arg0: i32) -> (i32, i32) {
    %c0_i32 = arith.constant 0 : i32
    %c0_i32_0 = arith.constant 0 : i32
    %c0_i32_1 = arith.constant 0 : i32
    return %c0_i32, %c0_i32_0 : i32, i32
  }
  func.func @transform_27(%arg0: i32) -> (i32, i32) {
    %c0_i32 = arith.constant 0 : i32
    %c0_i32_0 = arith.constant 0 : i32
    %c0_i32_1 = arith.constant 0 : i32
    return %c0_i32, %c0_i32_0 : i32, i32
  }
  func.func @transform_28(%arg0: i32) -> (i32, i32) {
    %c0_i32 = arith.constant 0 : i32
    %c0_i32_0 = arith.constant 0 : i32
    %c0_i32_1 = arith.constant 0 : i32
    return %c0_i32, %c0_i32_0 : i32, i32
  }
  func.func @transform_29(%arg0: i32) -> (i32, i32) {
    %c0_i32 = arith.constant 0 : i32
    %c0_i32_0 = arith.constant 0 : i32
    %c0_i32_1 = arith.constant 0 : i32
    return %c0_i32, %c0_i32_0 : i32, i32
  }
  func.func @transform_30(%arg0: i32) -> (i32, i32) {
    %c0_i32 = arith.constant 0 : i32
    %c0_i32_0 = arith.constant 0 : i32
    %c0_i32_1 = arith.constant 0 : i32
    return %c0_i32, %c0_i32_0 : i32, i32
  }
  func.func @transform_31(%arg0: i32) -> (i32, i32) {
    %c0_i32 = arith.constant 0 : i32
    %c0_i32_0 = arith.constant 0 : i32
    %c0_i32_1 = arith.constant 0 : i32
    return %c0_i32, %c0_i32_0 : i32, i32
  }
  func.func @transform_32(%arg0: i32) -> (i32, i32) {
    %c0_i32 = arith.constant 0 : i32
    %c0_i32_0 = arith.constant 0 : i32
    %c0_i32_1 = arith.constant 0 : i32
    return %c0_i32, %c0_i32_0 : i32, i32
  }
  func.func @transform_33(%arg0: i32) -> (i32, i32) {
    %c0_i32 = arith.constant 0 : i32
    %c0_i32_0 = arith.constant 0 : i32
    %c0_i32_1 = arith.constant 0 : i32
    return %c0_i32, %c0_i32_0 : i32, i32
  }
  func.func @transform_34(%arg0: i32) -> (i32, i32) {
    %c0_i32 = arith.constant 0 : i32
    %c0_i32_0 = arith.constant 0 : i32
    %c0_i32_1 = arith.constant 0 : i32
    return %c0_i32, %c0_i32_0 : i32, i32
  }
  func.func @transform_35(%arg0: i32) -> (i32, i32) {
    %c0_i32 = arith.constant 0 : i32
    %c0_i32_0 = arith.constant 0 : i32
    %c0_i32_1 = arith.constant 0 : i32
    return %c0_i32, %c0_i32_0 : i32, i32
  }
  func.func @transform_36(%arg0: i32) -> (i32, i32) {
    %c0_i32 = arith.constant 0 : i32
    %c0_i32_0 = arith.constant 0 : i32
    %c0_i32_1 = arith.constant 0 : i32
    return %c0_i32, %c0_i32_0 : i32, i32
  }
  func.func @transform_37(%arg0: i32) -> (i32, i32) {
    %c0_i32 = arith.constant 0 : i32
    %c0_i32_0 = arith.constant 0 : i32
    %c0_i32_1 = arith.constant 0 : i32
    return %c0_i32, %c0_i32_0 : i32, i32
  }
  func.func @transform_38(%arg0: i32) -> (i32, i32) {
    %c0_i32 = arith.constant 0 : i32
    %c0_i32_0 = arith.constant 0 : i32
    %c0_i32_1 = arith.constant 0 : i32
    return %c0_i32, %c0_i32_0 : i32, i32
  }
  func.func @transform_39(%arg0: i32) -> (i32, i32) {
    %c0_i32 = arith.constant 0 : i32
    %c0_i32_0 = arith.constant 0 : i32
    %c0_i32_1 = arith.constant 0 : i32
    return %c0_i32, %c0_i32_0 : i32, i32
  }
  func.func @transform_40(%arg0: i32) -> (i32, i32) {
    %c0_i32 = arith.constant 0 : i32
    %c0_i32_0 = arith.constant 0 : i32
    %c0_i32_1 = arith.constant 0 : i32
    return %c0_i32, %c0_i32_0 : i32, i32
  }
  func.func @transform_41(%arg0: i32) -> (i32, i32) {
    %c0_i32 = arith.constant 0 : i32
    %c0_i32_0 = arith.constant 0 : i32
    %c0_i32_1 = arith.constant 0 : i32
    return %c0_i32, %c0_i32_0 : i32, i32
  }
  func.func @transform_42(%arg0: i32) -> (i32, i32) {
    %c0_i32 = arith.constant 0 : i32
    %c0_i32_0 = arith.constant 0 : i32
    %c0_i32_1 = arith.constant 0 : i32
    return %c0_i32, %c0_i32_0 : i32, i32
  }
  func.func @transform_43(%arg0: i32) -> (i32, i32) {
    %c0_i32 = arith.constant 0 : i32
    %c0_i32_0 = arith.constant 0 : i32
    %c0_i32_1 = arith.constant 0 : i32
    return %c0_i32, %c0_i32_0 : i32, i32
  }
  func.func @transform_44(%arg0: i32) -> (i32, i32) {
    %c0_i32 = arith.constant 0 : i32
    %c0_i32_0 = arith.constant 0 : i32
    %c0_i32_1 = arith.constant 0 : i32
    return %c0_i32, %c0_i32_0 : i32, i32
  }
  func.func @transform_45(%arg0: i32) -> (i32, i32) {
    %c0_i32 = arith.constant 0 : i32
    %c0_i32_0 = arith.constant 0 : i32
    %c0_i32_1 = arith.constant 0 : i32
    return %c0_i32, %c0_i32_0 : i32, i32
  }
  func.func @transform_46(%arg0: i32) -> (i32, i32) {
    %c0_i32 = arith.constant 0 : i32
    %c0_i32_0 = arith.constant 0 : i32
    %c0_i32_1 = arith.constant 0 : i32
    return %c0_i32, %c0_i32_0 : i32, i32
  }
  func.func @transform_47(%arg0: i32) -> (i32, i32) {
    %c0_i32 = arith.constant 0 : i32
    %c0_i32_0 = arith.constant 0 : i32
    %c0_i32_1 = arith.constant 0 : i32
    return %c0_i32, %c0_i32_0 : i32, i32
  }
  func.func @transform_48(%arg0: i32) -> (i32, i32) {
    %c0_i32 = arith.constant 0 : i32
    %c0_i32_0 = arith.constant 0 : i32
    %c0_i32_1 = arith.constant 0 : i32
    return %c0_i32, %c0_i32_0 : i32, i32
  }
  func.func @transform_49(%arg0: i32) -> (i32, i32) {
    %c0_i32 = arith.constant 0 : i32
    %c0_i32_0 = arith.constant 0 : i32
    %c0_i32_1 = arith.constant 0 : i32
    return %c0_i32, %c0_i32_0 : i32, i32
  }
  func.func @transform_50(%arg0: i32) -> (i32, i32) {
    %c0_i32 = arith.constant 0 : i32
    %c0_i32_0 = arith.constant 0 : i32
    %c0_i32_1 = arith.constant 0 : i32
    return %c0_i32, %c0_i32_0 : i32, i32
  }
  func.func @transform_51(%arg0: i32) -> (i32, i32) {
    %c0_i32 = arith.constant 0 : i32
    %c0_i32_0 = arith.constant 0 : i32
    %c0_i32_1 = arith.constant 0 : i32
    return %c0_i32, %c0_i32_0 : i32, i32
  }
  func.func @transform_52(%arg0: i32) -> (i32, i32) {
    %c0_i32 = arith.constant 0 : i32
    %c0_i32_0 = arith.constant 0 : i32
    return %arg0, %c0_i32 : i32, i32
  }
  func.func @transform_53(%arg0: i32) -> (i32, i32) {
    %c0_i32 = arith.constant 0 : i32
    %c0_i32_0 = arith.constant 0 : i32
    return %arg0, %c0_i32 : i32, i32
  }
}

</mosaic_0001>

<bundles_post_ra>
// kernel: nice_forward.1
= control target key start
LH: loop header
LB: loop body
LE: loop exit
PB: predicated region body
PF: predicated region fallthrough
CT: control target
= control target key end

     0   :  { %s10627_s6 = smov 1   ;;  %s10628_s10 = smov 2   ;;  %s11772_s0 = inlined_call_operand.smem [shape: u32[54], index: -1, kind: input, shape index: {}] }
   0x1   :  { %s10709_s5 = sld [smem:[%s11772_s0]]   ;;  %s10629_s14 = smov 3  }
   0x2   :  { %s10714_s9 = sld [smem:[%s11772_s0 + %s10627_s6]]   ;;  %s10630_s18 = smov 4  }
   0x3   :  { %s10719_s13 = sld [smem:[%s11772_s0 + %s10628_s10]]   ;;  %s10631_s22 = smov 5  }
   0x4   :  { %s10724_s17 = sld [smem:[%s11772_s0 + %s10629_s14]]   ;;  %s10632_s26 = smov 6  }
   0x5   :  { %s10729_s21 = sld [smem:[%s11772_s0 + %s10630_s18]]   ;;  %s10633_s30 = smov 7  }
   0x6   :  { %s10734_s25 = sld [smem:[%s11772_s0 + %s10631_s22]]   ;;  %s10634_s4 = smov 8  }
   0x7   :  { %11790 = sst [smem:[#allocation41_spill]] %s10709_s5  ;;  %s10635_s10 = smov 9  }
   0x8   :  { %11791 = sst [smem:[#allocation42_spill]] %s10714_s9  ;;  %s10636_s15 = smov 10  }
   0x9   :  { %11792 = sst [smem:[#allocation43_spill]] %s10719_s13  ;;  %s10637_s20 = smov 11  }
   0xa   :  { %11793 = sst [smem:[#allocation44_spill]] %s10724_s17  ;;  %s10639_s1 = smov 13  }
   0xb   :  { %11794 = sst [smem:[#allocation45_spill]] %s10729_s21  ;;  %s10640_s7 = smov 14  }
   0xc   :  { %11795 = sst [smem:[#allocation46_spill]] %s10734_s25  ;;  %s10642_s22 = smov 16  }
   0xd   :  { %s10739_s29 = sld [smem:[%s11772_s0 + %s10632_s26]]   ;;  %s10638_s26 = smov 12  }
   0xe   :  { %s10744_s3 = sld [smem:[%s11772_s0 + %s10633_s30]]   ;;  %s10643_s28 = smov 17  }
   0xf   :  { %s10749_s8 = sld [smem:[%s11772_s0 + %s10634_s4]]  }
  0x10   :  { %s10754_s14 = sld [smem:[%s11772_s0 + %s10635_s10]]  }
  0x11   :  { %s10759_s19 = sld [smem:[%s11772_s0 + %s10636_s15]]   ;;  %s10641_s15 = smov 15  }
  0x12   :  { %s10764_s24 = sld [smem:[%s11772_s0 + %s10637_s20]]  }
  0x13   :  { %11796 = sst [smem:[#allocation47_spill]] %s10739_s29 }
  0x14   :  { %11797 = sst [smem:[#allocation48_spill]] %s10744_s3 }
  0x15   :  { %11798 = sst [smem:[#allocation49_spill]] %s10749_s8 }
  0x16   :  { %11799 = sst [smem:[#allocation50_spill]] %s10754_s14 }
  0x17   :  { %11800 = sst [smem:[#allocation51_spill]] %s10759_s19 }
  0x18   :  { %11801 = sst [smem:[#allocation52_spill]] %s10764_s24 }
  0x19   :  { %s10769_s30 = sld [smem:[%s11772_s0 + %s10638_s26]]  }
  0x1a   :  { %s10774_s6 = sld [smem:[%s11772_s0 + %s10639_s1]]  }
  0x1b   :  { %s10779_s12 = sld [smem:[%s11772_s0 + %s10640_s7]]   ;;  %s10644_s7 = smov 18  }
  0x1c   :  { %s10784_s20 = sld [smem:[%s11772_s0 + %s10641_s15]]   ;;  %s10645_s15 = smov 19  }
  0x1d   :  { %s10789_s27 = sld [smem:[%s11772_s0 + %s10642_s22]]   ;;  %s10646_s22 = smov 20  }
  0x1e   :  { %s10794_s4 = sld [smem:[%s11772_s0 + %s10643_s28]]   ;;  %s10647_s28 = smov 21  }
  0x1f   :  { %11802 = sst [smem:[#allocation53_spill]] %s10769_s30 }
  0x20   :  { %11803 = sst [smem:[#allocation54_spill]] %s10774_s6 }
  0x21   :  { %s10799_s17 = sld [smem:[%s11772_s0 + %s10644_s7]]   ;;  %s10648_s7 = smov 22  }
  0x22   :  { %11804 = sst [smem:[#allocation55_spill]] %s10784_s20 }
  0x23   :  { %s10804_s13 = sld [smem:[%s11772_s0 + %s10645_s15]]   ;;  %s10649_s15 = smov 23  }
  0x24   :  { %11805 = sst [smem:[#allocation56_spill]] %s10794_s4 }
  0x25   :  { %s10809_s20 = sld [smem:[%s11772_s0 + %s10646_s22]]   ;;  %s10650_s22 = smov 24  }
  0x26   :  { %s10814_s4 = sld [smem:[%s11772_s0 + %s10647_s28]]   ;;  %s10651_s28 = smov 25  }
  0x27   :  { %s10819_s9 = sld [smem:[%s11772_s0 + %s10648_s7]]   ;;  %s10652_s7 = smov 26  }
  0x28   :  { %s10829_s6 = sld [smem:[%s11772_s0 + %s10650_s22]]   ;;  %s10654_s22 = smov 28  }
  0x29   :  { %11806 = sst [smem:[#allocation57_spill]] %s10804_s13 }
  0x2a   :  { %s10824_s13 = sld [smem:[%s11772_s0 + %s10649_s15]]   ;;  %s10653_s15 = smov 27  }
  0x2b   :  { %s10839_s24 = sld [smem:[%s11772_s0 + %s10652_s7]]   ;;  %s10656_s7 = smov 30  }
  0x2c   :  { %11807 = sst [smem:[#allocation58_spill]] %s10814_s4 }
  0x2d   :  { %11808 = sst [smem:[#allocation59_spill]] %s10819_s9 }
  0x2e   :  { %11810 = sst [smem:[#allocation61_spill]] %s10829_s6 }
  0x2f   :  { %s10834_s4 = sld [smem:[%s11772_s0 + %s10651_s28]]   ;;  %s10655_s28 = smov 29  }
  0x30   :  { %11809 = sst [smem:[#allocation60_spill]] %s10824_s13 }
  0x31   :  { %s10844_s13 = sld [smem:[%s11772_s0 + %s10653_s15]]   ;;  %s10657_s15 = smov 31  }
  0x32   :  { %s10849_s14 = sld [smem:[%s11772_s0 + %s10654_s22]]   ;;  %s10658_s22 = smov 32  }
  0x33   :  { %s10859_s30 = sld [smem:[%s11772_s0 + %s10656_s7]]   ;;  %s10660_s7 = smov 34  }
  0x34   :  { %s10869_s3 = sld [smem:[%s11772_s0 + %s10658_s22]]   ;;  %s10662_s22 = smov 36  }
  0x35   :  { %11811 = sst [smem:[#allocation62_spill]] %s10834_s4 }
  0x36   :  { %s10854_s4 = sld [smem:[%s11772_s0 + %s10655_s28]]   ;;  %s10659_s28 = smov 33  }
  0x37   :  { %11812 = sst [smem:[#allocation63_spill]] %s10844_s13 }
  0x38   :  { %s10864_s13 = sld [smem:[%s11772_s0 + %s10657_s15]]   ;;  %s10661_s15 = smov 35  }
  0x39   :  { %s10879_s19 = sld [smem:[%s11772_s0 + %s10660_s7]]   ;;  %s10664_s7 = smov 38  }
  0x3a   :  { %11815 = sst [smem:[#allocation66_spill]] %s10869_s3 }
  0x3b   :  { %s10889_s25 = sld [smem:[%s11772_s0 + %s10662_s22]]   ;;  %s10666_s22 = smov 40  }
  0x3c   :  { %11813 = sst [smem:[#allocation64_spill]] %s10854_s4 }
  0x3d   :  { %s10874_s4 = sld [smem:[%s11772_s0 + %s10659_s28]]   ;;  %s10663_s28 = smov 37  }
  0x3e   :  { %11814 = sst [smem:[#allocation65_spill]] %s10864_s13 }
  0x3f   :  { %11817 = sst [smem:[#allocation68_spill]] %s10879_s19 }
  0x40   :  { %s10884_s13 = sld [smem:[%s11772_s0 + %s10661_s15]]   ;;  %s10665_s15 = smov 39  }
  0x41   :  { %s10899_s8 = sld [smem:[%s11772_s0 + %s10664_s7]]   ;;  %s10668_s7 = smov 42  }
  0x42   :  { %s10909_s29 = sld [smem:[%s11772_s0 + %s10666_s22]]   ;;  %s10670_s22 = smov 44  }
  0x43   :  { %11816 = sst [smem:[#allocation67_spill]] %s10874_s4 }
  0x44   :  { %s10894_s4 = sld [smem:[%s11772_s0 + %s10663_s28]]   ;;  %s10667_s28 = smov 41  }
  0x45   :  { %s10919_s5 = sld [smem:[%s11772_s0 + %s10668_s7]]   ;;  %s10672_s7 = smov 46  }
  0x46   :  { %11818 = sst [smem:[#allocation69_spill]] %s10884_s13 }
  0x47   :  { %11820 = sst [smem:[#allocation71_spill]] %s10899_s8 }
  0x48   :  { %s10904_s13 = sld [smem:[%s11772_s0 + %s10665_s15]]   ;;  %s10669_s15 = smov 43  }
  0x49   :  { %s10929_s21 = sld [smem:[%s11772_s0 + %s10670_s22]]   ;;  %s10674_s22 = smov 48  }
  0x4a   :  { %11819 = sst [smem:[#allocation70_spill]] %s10894_s4 }
  0x4b   :  { %s10914_s4 = sld [smem:[%s11772_s0 + %s10667_s28]]   ;;  %s10671_s28 = smov 45  }
  0x4c   :  { %11823 = sst [smem:[#allocation74_spill]] %s10919_s5 }
  0x4d   :  { %s10939_s5 = sld [smem:[%s11772_s0 + %s10672_s7]]   ;;  %s10676_s7 = smov 50  }
  0x4e   :  { %11821 = sst [smem:[#allocation72_spill]] %s10904_s13 }
  0x4f   :  { %s10924_s13 = sld [smem:[%s11772_s0 + %s10669_s15]]   ;;  %s10673_s15 = smov 47  }
  0x50   :  { %s10949_s8 = sld [smem:[%s11772_s0 + %s10674_s22]]   ;;  %s10678_s22 = smov 52  }
  0x51   :  { %11822 = sst [smem:[#allocation73_spill]] %s10914_s4 }
  0x52   :  { %s10934_s4 = sld [smem:[%s11772_s0 + %s10671_s28]]   ;;  %s10675_s28 = smov 49  }
  0x53   :  { %11826 = sst [smem:[#allocation77_spill]] %s10939_s5 }
  0x54   :  { %s10959_s5 = sld [smem:[%s11772_s0 + %s10676_s7]]  }
  0x55   :  { %11824 = sst [smem:[#allocation75_spill]] %s10924_s13 }
  0x56   :  { %s10944_s13 = sld [smem:[%s11772_s0 + %s10673_s15]]   ;;  %s10677_s15 = smov 51  }
  0x57   :  { %11828 = sst [smem:[#allocation79_spill]] %s10949_s8 }
  0x58   :  { %11825 = sst [smem:[#allocation76_spill]] %s10934_s4 }
  0x59   :  { %s10954_s4 = sld [smem:[%s11772_s0 + %s10675_s28]]   ;;  %s10679_s28 = smov 53  }
  0x5a   :  { %s10969_s19 = sld [smem:[%s11772_s0 + %s10678_s22]]  }
  0x5c   :  { %11827 = sst [smem:[#allocation78_spill]] %s10944_s13 }
  0x5d   :  { %s10964_s13 = sld [smem:[%s11772_s0 + %s10677_s15]]  }
  0x5f   :  { %11829 = sst [smem:[#allocation80_spill]] %s10954_s4 }
  0x60   :  { %s10974_s4 = sld [smem:[%s11772_s0 + %s10679_s28]]  }
  0x61   :  { %113 = vsyncpa [#allocation3], 0 }
  0x62   :  { %114 = vsyncpa [#allocation5], 0 }
  0x63   :  { %115 = vsyncpa [#allocation8], 0 }
  0x64   :  { %116 = vsyncpa [#allocation11], 0 }
  0x65   :  { %117 = vsyncpa [#allocation14], 0 }
  0x66   :  { %118 = vsyncpa [#allocation17], 0 }
  0x67   :  { %119 = vsyncpa [#allocation20], 0 }
  0x68   :  { %120 = vsyncpa [#allocation23], 0 }
  0x69   :  { %121 = vsyncpa [#allocation26], 0 }
  0x6a   :  { %122 = vsyncpa [#allocation29], 0  ;;  %s10976_s7 = smov 0  }
  0x6b LB: > { %s11830_s9 = sld [smem:[#allocation59_spill]]  ;;  %s11831_s8 = sld [smem:[#allocation79_spill]]  ;;  %s10625_s7 = sphi %s10976_s7, %s128_s7  }
  0x6c   : > { %s11832_s3 = sld [smem:[#allocation66_spill]]  ;;  %s11833_s6 = sld [smem:[#allocation61_spill]] }
  0x6d   : > { %s11785_s0 = sadd.s32 4294967295, %s10625_s7   ;;  %p6756_p0 = scmp.ge.s32.totalorder %s10625_s7, 1 }
  0x6e   : > { %p1287_p1 = scmp.lt.s32.totalorder %s10625_s7, 3  ;;  %p10986_p2 = scmp.eq.s32.totalorder %s11785_s0, 0 }
  0x6f   : > { %s10680_s15 = smov [#allocation4]   ;;  %s10681_s18 = smov [#allocation7]  }
  0x70   : > { %s11834_s10 = scalar_select %p10986_p2, 1, 0 }
  0x71   : > { %p10990_p3 = pnand %p6756_p0, %p1287_p1  ;;  %s1351_s16 = sshll.u32 %s10680_s15, 4  ;;  %s10994_s16 = int_to_ptr.vmem [resolvable:$true] %s1351_s16 }
  0x72   : > { %s1383_s22 = sshll.u32 %s10681_s18, 4  ;;  %s10682_s26 = smov [#allocation10]   ;;  %s10998_s22 = int_to_ptr.vmem [resolvable:$true] %s1383_s22 }
  0x73   : > { %s11835_s11 = scalar_select %p10990_p3, 1, 0 }
  0x74   : > { %p9853_p4 = pneg %p10990_p3  ;;  %s1415_s28 = sshll.u32 %s10682_s26, 4  ;;  %s11006_s28 = int_to_ptr.vmem [resolvable:$true] %s1415_s28 }
  0x75   : > { %s10683_s1 = smov [#allocation13]   ;;  %s10047_s15 = scalar_lea.hbm %s10789_s27, 2048 }
  0x76   : > { %p11002_p5 = pnand %p10986_p2, %p9853_p4  ;;  %s11008_s2 = sshll.u32 %s10683_s1, 4  ;;  %s1448_s2 = int_to_ptr.vmem [resolvable:$true] %s11008_s2 }
  0x77   : > { %p10048_p6 = scmp.ne.s32.totalorder %s10789_s27, %s10047_s15  ;;  %p10054_p10 = scmp.lt.u32.totalorder %s10047_s15, %s10789_s27 }
  0x78   : > { %p11014_p7 = pneg %p11002_p5 }
  0x7a   : > { %p10050_p8 = pnand %p11014_p7, %p10048_p6 }
  0x7c   : > { %p10051_p9 = pneg %p10050_p8 }
  0x7e   : > { %p10056_p11 = pnand %p10054_p10, %p10051_p9 }
  0x80   : > { %10059 = shalt.err (!%p10056_p11)
}
  0x81   : > { %s10060_s26 = scalar_lea.vmem %s10994_s16, 2048  ;;  %p10068_p1 = scmp.lt.s32.totalorder %s10994_s16, %s10994_s16 }
  0x82   : > { %p10061_p12 = scmp.ne.s32.totalorder %s10994_s16, %s10060_s26  ;;  %p10069_p4 = scmp.lt.s32.totalorder %s10060_s26, %s10060_s26 }
  0x84   : > { %p10063_p13 = pnand %p10061_p12, %p11014_p7  ;;  %p10070_p2 = por %p10069_p4, %p10068_p1 }
  0x86   : > { %p10064_p0 = pneg %p10063_p13 }
  0x88   : > { %p10071_p3 = pnand %p10070_p2, %p10064_p0 }
  0x8a   : > { %10074 = shalt.err (!%p10071_p3)
}
  0x8b   : > { %s10684_s1 = smov 128   ;;  %s10685_s15 = smov 8  }
  0x8c   : > { %9859 = dma.hbm_to_vmem [thread:$0]  (!%p11002_p5), %s10789_s27, 2048, %s10994_s16, [#allocation5], %s10684_s1, %s10684_s1, %s10685_s15  }
  0x8d   : > { %s10075_s0 = scalar_lea.hbm %s10809_s20, 2048 }
  0x8e   : > { %p10076_p6 = scmp.ne.s32.totalorder %s10809_s20, %s10075_s0  ;;  %p10082_p3 = scmp.lt.u32.totalorder %s10075_s0, %s10809_s20 }
  0x90   : > { %p10078_p8 = pnand %p10076_p6, %p11014_p7 }
  0x92   : > { %p10079_p2 = pneg %p10078_p8 }
  0x94   : > { %p10084_p9 = pnand %p10082_p3, %p10079_p2 }
  0x96   : > { %10087 = shalt.err (!%p10084_p9)
}
  0x97   : > { %s10088_s26 = scalar_lea.vmem %s10998_s22, 2048  ;;  %p10096_p13 = scmp.lt.s32.totalorder %s10998_s22, %s10998_s22 }
  0x98   : > { %p10089_p10 = scmp.ne.s32.totalorder %s10998_s22, %s10088_s26  ;;  %p10097_p0 = scmp.lt.s32.totalorder %s10088_s26, %s10088_s26 }
  0x9a   : > { %p10091_p11 = pnand %p10089_p10, %p11014_p7  ;;  %p10098_p1 = por %p10097_p0, %p10096_p13 }
  0x9c   : > { %p10092_p12 = pneg %p10091_p11 }
  0x9e   : > { %p10099_p4 = pnand %p10098_p1, %p10092_p12 }
  0xa0   : > { %10102 = shalt.err (!%p10099_p4)
}
  0xa1   : > { %9865 = dma.hbm_to_vmem [thread:$0]  (!%p11002_p5), %s10809_s20, 2048, %s10998_s22, [#allocation8], %s10684_s1, %s10684_s1, %s10685_s15  }
  0xa2   : > { %s10103_s0 = scalar_lea.hbm %s11833_s6, 2048 }
  0xa3   : > { %p10104_p6 = scmp.ne.s32.totalorder %s11833_s6, %s10103_s0  ;;  %p10110_p3 = scmp.lt.u32.totalorder %s10103_s0, %s11833_s6 }
  0xa5   : > { %p10106_p8 = pnand %p10104_p6, %p11014_p7 }
  0xa7   : > { %p10107_p2 = pneg %p10106_p8 }
  0xa9   : > { %p10112_p9 = pnand %p10110_p3, %p10107_p2 }
  0xab   : > { %10115 = shalt.err (!%p10112_p9)
}
  0xac   : > { %s10116_s16 = scalar_lea.vmem %s11006_s28, 2048  ;;  %p10124_p13 = scmp.lt.s32.totalorder %s11006_s28, %s11006_s28 }
  0xad   : > { %p10117_p10 = scmp.ne.s32.totalorder %s11006_s28, %s10116_s16  ;;  %p10125_p0 = scmp.lt.s32.totalorder %s10116_s16, %s10116_s16 }
  0xaf   : > { %p10119_p11 = pnand %p10117_p10, %p11014_p7  ;;  %p10126_p1 = por %p10125_p0, %p10124_p13 }
  0xb1   : > { %p10120_p12 = pneg %p10119_p11 }
  0xb3   : > { %p10127_p4 = pnand %p10126_p1, %p10120_p12 }
  0xb5   : > { %10130 = shalt.err (!%p10127_p4)
}
  0xb6   : > { %9871 = dma.hbm_to_vmem [thread:$0]  (!%p11002_p5), %s11833_s6, 2048, %s11006_s28, [#allocation11], %s10684_s1, %s10684_s1, %s10685_s15  }
  0xb7   : > { %s10131_s22 = scalar_lea.hbm %s10849_s14, 2048 }
  0xb8   : > { %p10132_p6 = scmp.ne.s32.totalorder %s10849_s14, %s10131_s22  ;;  %p10138_p3 = scmp.lt.u32.totalorder %s10131_s22, %s10849_s14 }
  0xba   : > { %p10134_p8 = pnand %p10132_p6, %p11014_p7 }
  0xbc   : > { %p10135_p2 = pneg %p10134_p8 }
  0xbe   : > { %p10140_p9 = pnand %p10138_p3, %p10135_p2 }
  0xc0   : > { %10143 = shalt.err (!%p10140_p9)
}
  0xc1   : > { %s10144_s26 = scalar_lea.vmem %s1448_s2, 2048  ;;  %p10152_p13 = scmp.lt.s32.totalorder %s1448_s2, %s1448_s2 }
  0xc2   : > { %p10145_p10 = scmp.ne.s32.totalorder %s1448_s2, %s10144_s26  ;;  %p10153_p0 = scmp.lt.s32.totalorder %s10144_s26, %s10144_s26 }
  0xc4   : > { %p10147_p11 = pnand %p10145_p10, %p11014_p7  ;;  %p10154_p1 = por %p10153_p0, %p10152_p13 }
  0xc6   : > { %p10148_p12 = pneg %p10147_p11 }
  0xc8   : > { %p10155_p4 = pnand %p10154_p1, %p10148_p12 }
  0xca   : > { %10158 = shalt.err (!%p10155_p4)
}
  0xcb   : > { %9877 = dma.hbm_to_vmem [thread:$0]  (!%p11002_p5), %s10849_s14, 2048, %s1448_s2, [#allocation14], %s10684_s1, %s10684_s1, %s10685_s15  }
  0xcc   : > { %s10686_s28 = smov [#allocation16]   ;;  %s10687_s16 = smov [#allocation19]  }
  0xcd   : > { %s1479_s0 = sshll.u32 %s10686_s28, 4  ;;  %s1511_s22 = sshll.u32 %s10687_s16, 4  ;;  %s1480_s0 = int_to_ptr.vmem [resolvable:$true] %s1479_s0  ;;  %s1512_s22 = int_to_ptr.vmem [resolvable:$true] %s1511_s22 }
  0xce   : > { %s10159_s26 = scalar_lea.hbm %s11832_s3, 2048 }
  0xcf   : > { %p10160_p6 = scmp.ne.s32.totalorder %s11832_s3, %s10159_s26  ;;  %p10166_p3 = scmp.lt.u32.totalorder %s10159_s26, %s11832_s3 }
  0xd1   : > { %p10162_p8 = pnand %p10160_p6, %p11014_p7 }
  0xd3   : > { %p10163_p2 = pneg %p10162_p8 }
  0xd5   : > { %p10168_p9 = pnand %p10166_p3, %p10163_p2 }
  0xd7   : > { %10171 = shalt.err (!%p10168_p9)
}
  0xd8   : > { %s10172_s6 = scalar_lea.vmem %s1480_s0, 2048  ;;  %p10180_p13 = scmp.lt.s32.totalorder %s1480_s0, %s1480_s0 }
  0xd9   : > { %p10173_p10 = scmp.ne.s32.totalorder %s1480_s0, %s10172_s6  ;;  %p10181_p0 = scmp.lt.s32.totalorder %s10172_s6, %s10172_s6 }
  0xdb   : > { %p10175_p11 = pnand %p10173_p10, %p11014_p7  ;;  %p10182_p1 = por %p10181_p0, %p10180_p13 }
  0xdd   : > { %p10176_p12 = pneg %p10175_p11 }
  0xdf   : > { %p10183_p4 = pnand %p10182_p1, %p10176_p12 }
  0xe1   : > { %10186 = shalt.err (!%p10183_p4)
}
  0xe2   : > { %9883 = dma.hbm_to_vmem [thread:$0]  (!%p11002_p5), %s11832_s3, 2048, %s1480_s0, [#allocation17], %s10684_s1, %s10684_s1, %s10685_s15  }
  0xe3   : > { %s10187_s2 = scalar_lea.hbm %s10889_s25, 2048 }
  0xe4   : > { %p10188_p6 = scmp.ne.s32.totalorder %s10889_s25, %s10187_s2  ;;  %p10194_p3 = scmp.lt.u32.totalorder %s10187_s2, %s10889_s25 }
  0xe6   : > { %p10190_p8 = pnand %p10188_p6, %p11014_p7 }
  0xe8   : > { %p10191_p2 = pneg %p10190_p8 }
  0xea   : > { %p10196_p9 = pnand %p10194_p3, %p10191_p2 }
  0xec   : > { %10199 = shalt.err (!%p10196_p9)
}
  0xed   : > { %s10200_s6 = scalar_lea.vmem %s1512_s22, 2048  ;;  %p10208_p13 = scmp.lt.s32.totalorder %s1512_s22, %s1512_s22 }
  0xee   : > { %p10201_p10 = scmp.ne.s32.totalorder %s1512_s22, %s10200_s6  ;;  %p10209_p0 = scmp.lt.s32.totalorder %s10200_s6, %s10200_s6 }
  0xf0   : > { %p10203_p11 = pnand %p10201_p10, %p11014_p7  ;;  %p10210_p1 = por %p10209_p0, %p10208_p13 }
  0xf2   : > { %p10204_p12 = pneg %p10203_p11 }
  0xf4   : > { %p10211_p4 = pnand %p10210_p1, %p10204_p12 }
  0xf6   : > { %10214 = shalt.err (!%p10211_p4)
}
  0xf7   : > { %9889 = dma.hbm_to_vmem [thread:$0]  (!%p11002_p5), %s10889_s25, 2048, %s1512_s22, [#allocation20], %s10684_s1, %s10684_s1, %s10685_s15  }
  0xf8   : > { %s10688_s28 = smov [#allocation22]   ;;  %s10689_s16 = smov [#allocation25]  }
  0xf9   : > { %s1543_s0 = sshll.u32 %s10688_s28, 4  ;;  %s1575_s26 = sshll.u32 %s10689_s16, 4  ;;  %s1544_s0 = int_to_ptr.vmem [resolvable:$true] %s1543_s0  ;;  %s1576_s26 = int_to_ptr.vmem [resolvable:$true] %s1575_s26 }
  0xfa   : > { %s10215_s2 = scalar_lea.hbm %s10909_s29, 2048 }
  0xfb   : > { %p10216_p6 = scmp.ne.s32.totalorder %s10909_s29, %s10215_s2  ;;  %p10222_p3 = scmp.lt.u32.totalorder %s10215_s2, %s10909_s29 }
  0xfd   : > { %p10218_p8 = pnand %p10216_p6, %p11014_p7 }
  0xff   : > { %p10219_p2 = pneg %p10218_p8 }
 0x101   : > { %p10224_p9 = pnand %p10222_p3, %p10219_p2 }
 0x103   : > { %10227 = shalt.err (!%p10224_p9)
}
 0x104   : > { %s10228_s6 = scalar_lea.vmem %s1544_s0, 2048  ;;  %p10236_p13 = scmp.lt.s32.totalorder %s1544_s0, %s1544_s0 }
 0x105   : > { %p10229_p10 = scmp.ne.s32.totalorder %s1544_s0, %s10228_s6  ;;  %p10237_p0 = scmp.lt.s32.totalorder %s10228_s6, %s10228_s6 }
 0x107   : > { %p10231_p11 = pnand %p10229_p10, %p11014_p7  ;;  %p10238_p1 = por %p10237_p0, %p10236_p13 }
 0x109   : > { %p10232_p12 = pneg %p10231_p11 }
 0x10b   : > { %p10239_p4 = pnand %p10238_p1, %p10232_p12 }
 0x10d   : > { %10242 = shalt.err (!%p10239_p4)
}
 0x10e   : > { %9895 = dma.hbm_to_vmem [thread:$0]  (!%p11002_p5), %s10909_s29, 2048, %s1544_s0, [#allocation23], %s10684_s1, %s10684_s1, %s10685_s15  }
 0x10f   : > { %s10243_s22 = scalar_lea.hbm %s10929_s21, 2048 }
 0x110   : > { %p10244_p6 = scmp.ne.s32.totalorder %s10929_s21, %s10243_s22  ;;  %p10250_p3 = scmp.lt.u32.totalorder %s10243_s22, %s10929_s21 }
 0x112   : > { %p10246_p8 = pnand %p10244_p6, %p11014_p7 }
 0x114   : > { %p10247_p2 = pneg %p10246_p8 }
 0x116   : > { %p10252_p9 = pnand %p10250_p3, %p10247_p2 }
 0x118   : > { %10255 = shalt.err (!%p10252_p9)
}
 0x119   : > { %s10256_s28 = scalar_lea.vmem %s1576_s26, 2048  ;;  %p10264_p13 = scmp.lt.s32.totalorder %s1576_s26, %s1576_s26 }
 0x11a   : > { %p10257_p10 = scmp.ne.s32.totalorder %s1576_s26, %s10256_s28  ;;  %p10265_p0 = scmp.lt.s32.totalorder %s10256_s28, %s10256_s28 }
 0x11c   : > { %p10259_p11 = pnand %p10257_p10, %p11014_p7  ;;  %p10266_p1 = por %p10265_p0, %p10264_p13 }
 0x11e   : > { %p10260_p12 = pneg %p10259_p11 }
 0x120   : > { %p10267_p4 = pnand %p10266_p1, %p10260_p12 }
 0x122   : > { %10270 = shalt.err (!%p10267_p4)
}
 0x123   : > { %9901 = dma.hbm_to_vmem [thread:$0]  (!%p11002_p5), %s10929_s21, 2048, %s1576_s26, [#allocation26], %s10684_s1, %s10684_s1, %s10685_s15  }
 0x124   : > { %s10690_s0 = smov [#allocation28]   ;;  %s10691_s2 = smov [#allocation2]  }
 0x125   : > { %s1607_s16 = sshll.u32 %s10690_s0, 4  ;;  %s1335_s6 = sshll.u32 %s10691_s2, 4  ;;  %s1608_s16 = int_to_ptr.vmem [resolvable:$true] %s1607_s16  ;;  %s1336_s6 = int_to_ptr.vmem [resolvable:$true] %s1335_s6 }
 0x126   : > { %s10271_s22 = scalar_lea.hbm %s11831_s8, 2048 }
 0x127   : > { %p10272_p6 = scmp.ne.s32.totalorder %s11831_s8, %s10271_s22  ;;  %p10278_p3 = scmp.lt.u32.totalorder %s10271_s22, %s11831_s8 }
 0x129   : > { %p10274_p8 = pnand %p10272_p6, %p11014_p7 }
 0x12b   : > { %p10275_p2 = pneg %p10274_p8 }
 0x12d   : > { %p10280_p9 = pnand %p10278_p3, %p10275_p2 }
 0x12f   : > { %10283 = shalt.err (!%p10280_p9)
}
 0x130   : > { %s10284_s28 = scalar_lea.vmem %s1608_s16, 2048  ;;  %p10292_p13 = scmp.lt.s32.totalorder %s1608_s16, %s1608_s16 }
 0x131   : > { %p10285_p10 = scmp.ne.s32.totalorder %s1608_s16, %s10284_s28  ;;  %p10293_p0 = scmp.lt.s32.totalorder %s10284_s28, %s10284_s28 }
 0x133   : > { %p10287_p11 = pnand %p10285_p10, %p11014_p7  ;;  %p10294_p1 = por %p10293_p0, %p10292_p13 }
 0x135   : > { %p10288_p12 = pneg %p10287_p11 }
 0x137   : > { %p10295_p4 = pnand %p10294_p1, %p10288_p12 }
 0x139   : > { %10298 = shalt.err (!%p10295_p4)
}
 0x13a   : > { %9907 = dma.hbm_to_vmem [thread:$0]  (!%p11002_p5), %s11831_s8, 2048, %s1608_s16, [#allocation29], %s10684_s1, %s10684_s1, %s10685_s15  }
 0x13b   : > { %s10299_s26 = scalar_lea.hbm %s10779_s12, 2048 }
 0x13c   : > { %p10300_p6 = scmp.ne.s32.totalorder %s10779_s12, %s10299_s26  ;;  %p10306_p3 = scmp.lt.u32.totalorder %s10299_s26, %s10779_s12 }
 0x13e   : > { %p10302_p8 = pnand %p10300_p6, %p11014_p7 }
 0x140   : > { %p10303_p2 = pneg %p10302_p8 }
 0x142   : > { %p10308_p9 = pnand %p10306_p3, %p10303_p2 }
 0x144   : > { %10311 = shalt.err (!%p10308_p9)
}
 0x145   : > { %s10312_s0 = scalar_lea.vmem %s1336_s6, 2048  ;;  %p10320_p13 = scmp.lt.s32.totalorder %s1336_s6, %s1336_s6 }
 0x146   : > { %p10313_p10 = scmp.ne.s32.totalorder %s1336_s6, %s10312_s0  ;;  %p10321_p0 = scmp.lt.s32.totalorder %s10312_s0, %s10312_s0 }
 0x148   : > { %p10315_p11 = pnand %p10313_p10, %p11014_p7  ;;  %p10322_p1 = por %p10321_p0, %p10320_p13 }
 0x14a   : > { %p10316_p12 = pneg %p10315_p11 }
 0x14c   : > { %p10323_p4 = pnand %p10322_p1, %p10316_p12 }
 0x14e   : > { %10326 = shalt.err (!%p10323_p4)
}
 0x14f   : > { %9856 = dma.hbm_to_vmem [thread:$0]  (!%p11002_p5), %s10779_s12, 2048, %s1336_s6, [#allocation3], %s10684_s1, %s10684_s1, %s10685_s15  }
 0x150   : > { %s10692_s16 = smov [#allocation6]   ;;  %s10693_s22 = smov [#allocation9]  }
 0x151   : > { %s1367_s2 = sshll.u32 %s10692_s16, 4  ;;  %s1399_s28 = sshll.u32 %s10693_s22, 4  ;;  %s1368_s2 = int_to_ptr.vmem [resolvable:$true] %s1367_s2  ;;  %s1400_s28 = int_to_ptr.vmem [resolvable:$true] %s1399_s28 }
 0x152   : > { %s10327_s26 = scalar_lea.hbm %s10799_s17, 2048 }
 0x153   : > { %p10328_p6 = scmp.ne.s32.totalorder %s10799_s17, %s10327_s26  ;;  %p10334_p3 = scmp.lt.u32.totalorder %s10327_s26, %s10799_s17 }
 0x155   : > { %p10330_p8 = pnand %p10328_p6, %p11014_p7 }
 0x157   : > { %p10331_p2 = pneg %p10330_p8 }
 0x159   : > { %p10336_p9 = pnand %p10334_p3, %p10331_p2 }
 0x15b   : > { %10339 = shalt.err (!%p10336_p9)
}
 0x15c   : > { %s10340_s0 = scalar_lea.vmem %s1368_s2, 2048  ;;  %p10348_p13 = scmp.lt.s32.totalorder %s1368_s2, %s1368_s2 }
 0x15d   : > { %p10341_p10 = scmp.ne.s32.totalorder %s1368_s2, %s10340_s0  ;;  %p10349_p0 = scmp.lt.s32.totalorder %s10340_s0, %s10340_s0 }
 0x15f   : > { %p10343_p11 = pnand %p10341_p10, %p11014_p7  ;;  %p10350_p1 = por %p10349_p0, %p10348_p13 }
 0x161   : > { %p10344_p12 = pneg %p10343_p11 }
 0x163   : > { %p10351_p4 = pnand %p10350_p1, %p10344_p12 }
 0x165   : > { %10354 = shalt.err (!%p10351_p4)
}
 0x166   : > { %9862 = dma.hbm_to_vmem [thread:$0]  (!%p11002_p5), %s10799_s17, 2048, %s1368_s2, [#allocation5], %s10684_s1, %s10684_s1, %s10685_s15  }
 0x167   : > { %s10355_s6 = scalar_lea.hbm %s11830_s9, 2048 }
 0x168   : > { %p10356_p6 = scmp.ne.s32.totalorder %s11830_s9, %s10355_s6  ;;  %p10362_p3 = scmp.lt.u32.totalorder %s10355_s6, %s11830_s9 }
 0x16a   : > { %p10358_p8 = pnand %p10356_p6, %p11014_p7 }
 0x16c   : > { %p10359_p2 = pneg %p10358_p8 }
 0x16e   : > { %p10364_p9 = pnand %p10362_p3, %p10359_p2 }
 0x170   : > { %10367 = shalt.err (!%p10364_p9)
}
 0x171   : > { %s10368_s16 = scalar_lea.vmem %s1400_s28, 2048  ;;  %p10376_p13 = scmp.lt.s32.totalorder %s1400_s28, %s1400_s28 }
 0x172   : > { %p10369_p10 = scmp.ne.s32.totalorder %s1400_s28, %s10368_s16  ;;  %p10377_p0 = scmp.lt.s32.totalorder %s10368_s16, %s10368_s16 }
 0x174   : > { %p10371_p11 = pnand %p10369_p10, %p11014_p7  ;;  %p10378_p1 = por %p10377_p0, %p10376_p13 }
 0x176   : > { %p10372_p12 = pneg %p10371_p11 }
 0x178   : > { %p10379_p4 = pnand %p10378_p1, %p10372_p12 }
 0x17a   : > { %10382 = shalt.err (!%p10379_p4)
}
 0x17b   : > { %9868 = dma.hbm_to_vmem [thread:$0]  (!%p11002_p5), %s11830_s9, 2048, %s1400_s28, [#allocation8], %s10684_s1, %s10684_s1, %s10685_s15  }
 0x17c   : > { %s10694_s2 = smov [#allocation12]   ;;  %s10695_s26 = smov [#allocation15]  }
 0x17d   : > { %s1431_s22 = sshll.u32 %s10694_s2, 4  ;;  %s1463_s0 = sshll.u32 %s10695_s26, 4  ;;  %s1432_s22 = int_to_ptr.vmem [resolvable:$true] %s1431_s22  ;;  %s1464_s0 = int_to_ptr.vmem [resolvable:$true] %s1463_s0 }
 0x17e   : > { %s10383_s6 = scalar_lea.hbm %s10839_s24, 2048 }
 0x17f   : > { %p10384_p6 = scmp.ne.s32.totalorder %s10839_s24, %s10383_s6  ;;  %p10390_p3 = scmp.lt.u32.totalorder %s10383_s6, %s10839_s24 }
 0x181   : > { %p10386_p8 = pnand %p10384_p6, %p11014_p7 }
 0x183   : > { %p10387_p2 = pneg %p10386_p8 }
 0x185   : > { %p10392_p9 = pnand %p10390_p3, %p10387_p2 }
 0x187   : > { %10395 = shalt.err (!%p10392_p9)
}
 0x188   : > { %s10396_s16 = scalar_lea.vmem %s1432_s22, 2048  ;;  %p10404_p13 = scmp.lt.s32.totalorder %s1432_s22, %s1432_s22 }
 0x189   : > { %p10397_p10 = scmp.ne.s32.totalorder %s1432_s22, %s10396_s16  ;;  %p10405_p0 = scmp.lt.s32.totalorder %s10396_s16, %s10396_s16 }
 0x18b   : > { %p10399_p11 = pnand %p10397_p10, %p11014_p7  ;;  %p10406_p1 = por %p10405_p0, %p10404_p13 }
 0x18d   : > { %p10400_p12 = pneg %p10399_p11 }
 0x18f   : > { %p10407_p4 = pnand %p10406_p1, %p10400_p12 }
 0x191   : > { %10410 = shalt.err (!%p10407_p4)
}
 0x192   : > { %9874 = dma.hbm_to_vmem [thread:$0]  (!%p11002_p5), %s10839_s24, 2048, %s1432_s22, [#allocation11], %s10684_s1, %s10684_s1, %s10685_s15  }
 0x193   : > { %s10411_s28 = scalar_lea.hbm %s10859_s30, 2048 }
 0x194   : > { %p10412_p6 = scmp.ne.s32.totalorder %s10859_s30, %s10411_s28  ;;  %p10418_p3 = scmp.lt.u32.totalorder %s10411_s28, %s10859_s30 }
 0x196   : > { %p10414_p8 = pnand %p10412_p6, %p11014_p7 }
 0x198   : > { %p10415_p2 = pneg %p10414_p8 }
 0x19a   : > { %p10420_p9 = pnand %p10418_p3, %p10415_p2 }
 0x19c   : > { %10423 = shalt.err (!%p10420_p9)
}
 0x19d   : > { %s10424_s2 = scalar_lea.vmem %s1464_s0, 2048  ;;  %p10432_p13 = scmp.lt.s32.totalorder %s1464_s0, %s1464_s0 }
 0x19e   : > { %p10425_p10 = scmp.ne.s32.totalorder %s1464_s0, %s10424_s2  ;;  %p10433_p0 = scmp.lt.s32.totalorder %s10424_s2, %s10424_s2 }
 0x1a0   : > { %p10427_p11 = pnand %p10425_p10, %p11014_p7  ;;  %p10434_p1 = por %p10433_p0, %p10432_p13 }
 0x1a2   : > { %p10428_p12 = pneg %p10427_p11 }
 0x1a4   : > { %p10435_p4 = pnand %p10434_p1, %p10428_p12 }
 0x1a6   : > { %10438 = shalt.err (!%p10435_p4)
}
 0x1a7   : > { %s11838_s22 = sld [smem:[#allocation68_spill]]  ;;  %s10696_s26 = smov [#allocation18]  }
 0x1a8   : > { %9880 = dma.hbm_to_vmem [thread:$0]  (!%p11002_p5), %s10859_s30, 2048, %s1464_s0, [#allocation14], %s10684_s1, %s10684_s1, %s10685_s15  }
 0x1a9   : > { %s1495_s6 = sshll.u32 %s10696_s26, 4  ;;  %s10697_s16 = smov [#allocation21]   ;;  %s1496_s6 = int_to_ptr.vmem [resolvable:$true] %s1495_s6 }
 0x1aa   : > { %s1527_s28 = sshll.u32 %s10697_s16, 4  ;;  %s1528_s28 = int_to_ptr.vmem [resolvable:$true] %s1527_s28 }
 0x1ad   : > { %s10439_s2 = scalar_lea.hbm %s11838_s22, 2048 }
 0x1ae   : > { %p10440_p6 = scmp.ne.s32.totalorder %s11838_s22, %s10439_s2  ;;  %p10446_p3 = scmp.lt.u32.totalorder %s10439_s2, %s11838_s22 }
 0x1b0   : > { %p10442_p8 = pnand %p10440_p6, %p11014_p7 }
 0x1b2   : > { %p10443_p2 = pneg %p10442_p8 }
 0x1b4   : > { %p10448_p9 = pnand %p10446_p3, %p10443_p2 }
 0x1b6   : > { %10451 = shalt.err (!%p10448_p9)
}
 0x1b7   : > { %s10452_s3 = scalar_lea.vmem %s1496_s6, 2048  ;;  %p10460_p13 = scmp.lt.s32.totalorder %s1496_s6, %s1496_s6 }
 0x1b8   : > { %p10453_p10 = scmp.ne.s32.totalorder %s1496_s6, %s10452_s3  ;;  %p10461_p0 = scmp.lt.s32.totalorder %s10452_s3, %s10452_s3 }
 0x1ba   : > { %p10455_p11 = pnand %p10453_p10, %p11014_p7  ;;  %p10462_p1 = por %p10461_p0, %p10460_p13 }
 0x1bc   : > { %p10456_p12 = pneg %p10455_p11 }
 0x1be   : > { %p10463_p4 = pnand %p10462_p1, %p10456_p12 }
 0x1c0   : > { %10466 = shalt.err (!%p10463_p4)
}
 0x1c1   : > { %s11839_s0 = sld [smem:[#allocation71_spill]] }
 0x1c2   : > { %9886 = dma.hbm_to_vmem [thread:$0]  (!%p11002_p5), %s11838_s22, 2048, %s1496_s6, [#allocation17], %s10684_s1, %s10684_s1, %s10685_s15  }
 0x1c7   : > { %s10467_s26 = scalar_lea.hbm %s11839_s0, 2048 }
 0x1c8   : > { %p10468_p6 = scmp.ne.s32.totalorder %s11839_s0, %s10467_s26  ;;  %p10474_p3 = scmp.lt.u32.totalorder %s10467_s26, %s11839_s0 }
 0x1ca   : > { %p10470_p8 = pnand %p10468_p6, %p11014_p7 }
 0x1cc   : > { %p10471_p2 = pneg %p10470_p8 }
 0x1ce   : > { %p10476_p9 = pnand %p10474_p3, %p10471_p2 }
 0x1d0   : > { %10479 = shalt.err (!%p10476_p9)
}
 0x1d1   : > { %s10480_s3 = scalar_lea.vmem %s1528_s28, 2048  ;;  %p10488_p13 = scmp.lt.s32.totalorder %s1528_s28, %s1528_s28 }
 0x1d2   : > { %p10481_p10 = scmp.ne.s32.totalorder %s1528_s28, %s10480_s3  ;;  %p10489_p0 = scmp.lt.s32.totalorder %s10480_s3, %s10480_s3 }
 0x1d4   : > { %p10483_p11 = pnand %p10481_p10, %p11014_p7  ;;  %p10490_p1 = por %p10489_p0, %p10488_p13 }
 0x1d6   : > { %p10484_p12 = pneg %p10483_p11 }
 0x1d8   : > { %p10491_p4 = pnand %p10490_p1, %p10484_p12 }
 0x1da   : > { %10494 = shalt.err (!%p10491_p4)
}
 0x1db   : > { %s11840_s6 = sld [smem:[#allocation74_spill]]  ;;  %s10698_s16 = smov [#allocation24]  }
 0x1dc   : > { %9892 = dma.hbm_to_vmem [thread:$0]  (!%p11002_p5), %s11839_s0, 2048, %s1528_s28, [#allocation20], %s10684_s1, %s10684_s1, %s10685_s15  }
 0x1dd   : > { %s1559_s2 = sshll.u32 %s10698_s16, 4  ;;  %s10699_s26 = smov [#allocation27]   ;;  %s1560_s2 = int_to_ptr.vmem [resolvable:$true] %s1559_s2 }
 0x1de   : > { %s1591_s8 = sshll.u32 %s10699_s26, 4  ;;  %s1592_s8 = int_to_ptr.vmem [resolvable:$true] %s1591_s8 }
 0x1e1   : > { %s10495_s3 = scalar_lea.hbm %s11840_s6, 2048 }
 0x1e2   : > { %p10496_p6 = scmp.ne.s32.totalorder %s11840_s6, %s10495_s3  ;;  %p10502_p3 = scmp.lt.u32.totalorder %s10495_s3, %s11840_s6 }
 0x1e4   : > { %p10498_p8 = pnand %p10496_p6, %p11014_p7 }
 0x1e6   : > { %p10499_p2 = pneg %p10498_p8 }
 0x1e8   : > { %p10504_p9 = pnand %p10502_p3, %p10499_p2 }
 0x1ea   : > { %10507 = shalt.err (!%p10504_p9)
}
 0x1eb   : > { %s10508_s9 = scalar_lea.vmem %s1560_s2, 2048  ;;  %p10516_p13 = scmp.lt.s32.totalorder %s1560_s2, %s1560_s2 }
 0x1ec   : > { %p10509_p10 = scmp.ne.s32.totalorder %s1560_s2, %s10508_s9  ;;  %p10517_p0 = scmp.lt.s32.totalorder %s10508_s9, %s10508_s9 }
 0x1ee   : > { %p10511_p11 = pnand %p10509_p10, %p11014_p7  ;;  %p10518_p1 = por %p10517_p0, %p10516_p13 }
 0x1f0   : > { %p10512_p12 = pneg %p10511_p11 }
 0x1f2   : > { %p10519_p4 = pnand %p10518_p1, %p10512_p12 }
 0x1f4   : > { %10522 = shalt.err (!%p10519_p4)
}
 0x1f5   : > { %s11841_s28 = sld [smem:[#allocation77_spill]] }
 0x1f6   : > { %9898 = dma.hbm_to_vmem [thread:$0]  (!%p11002_p5), %s11840_s6, 2048, %s1560_s2, [#allocation23], %s10684_s1, %s10684_s1, %s10685_s15  }
 0x1fb   : > { %s10523_s16 = scalar_lea.hbm %s11841_s28, 2048 }
 0x1fc   : > { %p10524_p6 = scmp.ne.s32.totalorder %s11841_s28, %s10523_s16  ;;  %p10530_p3 = scmp.lt.u32.totalorder %s10523_s16, %s11841_s28 }
 0x1fe   : > { %p10526_p8 = pnand %p10524_p6, %p11014_p7 }
 0x200   : > { %p10527_p2 = pneg %p10526_p8 }
 0x202   : > { %p10532_p9 = pnand %p10530_p3, %p10527_p2 }
 0x204   : > { %10535 = shalt.err (!%p10532_p9)
}
 0x205   : > { %s10536_s9 = scalar_lea.vmem %s1592_s8, 2048  ;;  %p10544_p13 = scmp.lt.s32.totalorder %s1592_s8, %s1592_s8 }
 0x206   : > { %p10537_p10 = scmp.ne.s32.totalorder %s1592_s8, %s10536_s9  ;;  %p10545_p0 = scmp.lt.s32.totalorder %s10536_s9, %s10536_s9 }
 0x208   : > { %p10539_p11 = pnand %p10537_p10, %p11014_p7  ;;  %p10546_p1 = por %p10545_p0, %p10544_p13 }
 0x20a   : > { %p10540_p12 = pneg %p10539_p11 }
 0x20c   : > { %p10547_p4 = pnand %p10546_p1, %p10540_p12 }
 0x20e   : > { %10550 = shalt.err (!%p10547_p4)
}
 0x20f   : > { %9904 = dma.hbm_to_vmem [thread:$0]  (!%p11002_p5), %s11841_s28, 2048, %s1592_s8, [#allocation26], %s10684_s1, %s10684_s1, %s10685_s15  }
 0x210   : > { %s10700_s2 = smov [#allocation30]   ;;  %s10551_s3 = scalar_lea.hbm %s10959_s5, 2048 }
 0x211   : > { %s1623_s26 = sshll.u32 %s10700_s2, 4  ;;  %p10552_p6 = scmp.ne.s32.totalorder %s10959_s5, %s10551_s3  ;;  %s1624_s26 = int_to_ptr.vmem [resolvable:$true] %s1623_s26 }
 0x212   : > { %p10558_p3 = scmp.lt.u32.totalorder %s10551_s3, %s10959_s5 }
 0x213   : > { %p10554_p8 = pnand %p10552_p6, %p11014_p7 }
 0x215   : > { %p10555_p2 = pneg %p10554_p8 }
 0x217   : > { %p10560_p9 = pnand %p10558_p3, %p10555_p2 }
 0x219   : > { %10563 = shalt.err (!%p10560_p9)
}
 0x21a   : > { %s10564_s16 = scalar_lea.vmem %s1624_s26, 2048  ;;  %p10572_p13 = scmp.lt.s32.totalorder %s1624_s26, %s1624_s26 }
 0x21b   : > { %p10565_p10 = scmp.ne.s32.totalorder %s1624_s26, %s10564_s16  ;;  %p10573_p0 = scmp.lt.s32.totalorder %s10564_s16, %s10564_s16 }
 0x21d   : > { %p10567_p11 = pnand %p10565_p10, %p11014_p7  ;;  %p10574_p1 = por %p10573_p0, %p10572_p13 }
 0x21f   : > { %p10568_p12 = pneg %p10567_p11 }
 0x221   : > { %p10575_p4 = pnand %p10574_p1, %p10568_p12 }
 0x223   : > { %10578 = shalt.err (!%p10575_p4)
}
 0x224   : > { %9910 = dma.hbm_to_vmem [thread:$0]  (!%p11002_p5), %s10959_s5, 2048, %s1624_s26, [#allocation29], %s10684_s1, %s10684_s1, %s10685_s15  }
 0x225   : > { %p11842_p6 = scmp.ne.s32.totalorder %s11835_s11, 0 }
 0x226   : > { %p11843_p8 = scmp.ne.s32.totalorder (!%p11842_p6), %s11834_s10, 0 }
 0x227   : > { %1660 = sbr.rel (%p11842_p6) target bundleno = 5476 (0x1564), region = 228 }
 0x22e   : > { %10584 = dma.done.wait (%p11843_p8), [#allocation3], 2048  }
 0x22f   : > { %10586 = vsyncadd (%p11843_p8), [#allocation3], 4294965248 }
 0x230   : > { %10588 = dma.done.wait (%p11843_p8), [#allocation5], 4096  }
 0x231   : > { %10590 = vsyncadd (%p11843_p8), [#allocation5], 4294963200 }
 0x232   : > { %10592 = dma.done.wait (%p11843_p8), [#allocation8], 4096  }
 0x233   : > { %10594 = vsyncadd (%p11843_p8), [#allocation8], 4294963200 }
 0x234   : > { %10596 = dma.done.wait (%p11843_p8), [#allocation11], 4096  }
 0x235   : > { %10598 = vsyncadd (%p11843_p8), [#allocation11], 4294963200 }
 0x236   : > { %10600 = dma.done.wait (%p11843_p8), [#allocation14], 4096  }
 0x237   : > { %10602 = vsyncadd (%p11843_p8), [#allocation14], 4294963200 }
 0x238   : > { %10604 = dma.done.wait (%p11843_p8), [#allocation17], 4096  }
 0x239   : > { %10606 = vsyncadd (%p11843_p8), [#allocation17], 4294963200 }
 0x23a   : > { %10608 = dma.done.wait (%p11843_p8), [#allocation20], 4096  }
 0x23b   : > { %10610 = vsyncadd (%p11843_p8), [#allocation20], 4294963200 }
 0x23c   : > { %10612 = dma.done.wait (%p11843_p8), [#allocation23], 4096  }
 0x23d   : > { %10614 = vsyncadd (%p11843_p8), [#allocation23], 4294963200 }
 0x23e   : > { %10616 = dma.done.wait (%p11843_p8), [#allocation26], 4096  }
 0x23f   : > { %10618 = vsyncadd (%p11843_p8), [#allocation26], 4294963200 }
 0x240   : > { %10620 = dma.done.wait (%p11843_p8), [#allocation29], 4096  }
 0x241   : > { %10622 = vsyncadd (%p11843_p8), [#allocation29], 4294963200  ;;  %s11844_s8 = sadd.s32 4294967295, %s10625_s7   ;;  %s11845_s11 = sld [smem:[#allocation45_spill]] }
 0x242   : > { %s11846_s23 = sld [smem:[#allocation41_spill]]  ;;  %s6797_s18 = sshll.u32 %s11844_s8, 4 }
 0x243   : > { %p1867_p5 = scmp.lt.s32.totalorder %s6797_s18, 31  ;;  %s11847_s10 = sld [smem:[#allocation47_spill]] }
 0x244   : > { %s11848_s9 = sld [smem:[#allocation49_spill]]  ;;  %s11849_s2 = sld [smem:[#allocation46_spill]] }
 0x245   : > { %s11878_s18 = smov (!%p1867_p5, %s6797_s18), 31  ;;  %s11850_s26 = sld [smem:[#allocation51_spill]] }
 0x246   : > { %s11323_s1 = sshll.u32 %s11878_s18, 3  ;;  %s11851_s3 = sld [smem:[#allocation48_spill]] }
 0x247   : > { %v1922_v0 = vld [vmem:[%s11845_s11] sm:$0xff]  ;;  %v1923_v1 = vld [vmem:[%s11845_s11 + $0x8] sm:$0xff]  ;;  %v1924_v2 = vld [vmem:[%s11845_s11 + $0x10] sm:$0xff]  ;;  %s11852_s16 = sld [smem:[#allocation53_spill]]  ;;  %s11853_s8 = sld [smem:[#allocation50_spill]] }
 0x248   : > { %v8945_v3 = vpack.c.bf16 %v1923_v1, %v1922_v0  ;;  %v1925_v4 = vld [vmem:[%s11845_s11 + $0x18] sm:$0xff]  ;;  %v1926_v6 = vld [vmem:[%s11845_s11 + $0x20] sm:$0xff]  ;;  %v1927_v7 = vld [vmem:[%s11845_s11 + $0x28] sm:$0xff]  ;;  %s11333_s15 = scalar_lea.vmem %s11846_s23, %s11323_s1  ;;  %s11854_s23 = sld [smem:[#allocation52_spill]] }
 0x249   : > { %v8949_v5 = vpack.c.bf16 %v1925_v4, %v1924_v2  ;;  %v8953_v8 = vpack.c.bf16 %v1927_v7, %v1926_v6  ;;  %v1890_v9 = vld [vmem:[%s11333_s15] sm:$0xff]  ;;  %v1928_v10 = vld [vmem:[%s11845_s11 + $0x30] sm:$0xff]  ;;  %v1929_v11 = vld [vmem:[%s11845_s11 + $0x38] sm:$0xff]  ;;  %s11855_s18 = sld [smem:[#allocation54_spill]] }
 0x24a   : > { %8946 = vmatprep.subr.bf16.mxu0 %v8945_v3  ;;  %7633 = vmatprep.mubr.f32.mxu0 %v1890_v9  ;;  %v8957_v12 = vpack.c.bf16 %v1929_v11, %v1928_v10  ;;  %v1930_v13 = vld [vmem:[%s11845_s11 + $0x40] sm:$0xff]  ;;  %v1931_v14 = vld [vmem:[%s11845_s11 + $0x48] sm:$0xff]  ;;  %v2108_v17 = vld [vmem:[%s11847_s10 + $0x10] sm:$0xff] }
 0x24b   : > { %8948 = vmatpush3.bf16.msra.mxu0 %v8945_v3  ;;  %v2106_v15 = vld [vmem:[%s11847_s10] sm:$0xff]  ;;  %v2107_v16 = vld [vmem:[%s11847_s10 + $0x8] sm:$0xff]  ;;  %v2109_v19 = vld [vmem:[%s11847_s10 + $0x18] sm:$0xff]  ;;  %v8961_v20 = vpack.c.bf16 %v1931_v14, %v1930_v13 }
 0x24c   : > { %8950 = vmatprep.subr.bf16.mxu0 %v8949_v5  ;;  %v8977_v18 = vpack.c.bf16 %v2107_v16, %v2106_v15  ;;  %v8981_v21 = vpack.c.bf16 %v2109_v19, %v2108_v17  ;;  %v2110_v22 = vld [vmem:[%s11847_s10 + $0x20] sm:$0xff]  ;;  %v2111_v23 = vld [vmem:[%s11847_s10 + $0x28] sm:$0xff]  ;;  %v1932_v24 = vld [vmem:[%s11845_s11 + $0x50] sm:$0xff] }
 0x24d   : > { %v1933_v25 = vld [vmem:[%s11845_s11 + $0x58] sm:$0xff]  ;;  %v8985_v26 = vpack.c.bf16 %v2111_v23, %v2110_v22  ;;  %v2112_v28 = vld [vmem:[%s11847_s10 + $0x30] sm:$0xff]  ;;  %v1934_v30 = vld [vmem:[%s11845_s11 + $0x60] sm:$0xff] }
 0x24e   : > { %8978 = vmatprep.subr.bf16.mxu1 %v8977_v18  ;;  %v8965_v27 = vpack.c.bf16 %v1933_v25, %v1932_v24  ;;  %v2113_v29 = vld [vmem:[%s11847_s10 + $0x38] sm:$0xff]  ;;  %v1935_v31 = vld [vmem:[%s11845_s11 + $0x68] sm:$0xff]  ;;  %v2114_v34 = vld [vmem:[%s11847_s10 + $0x40] sm:$0xff] }
 0x24f   : > { %8952 = vmatpush3.bf16.msra.mxu0 %v8949_v5  ;;  %8980 = vmatpush3.bf16.msra.mxu1 %v8977_v18  ;;  %v8989_v32 = vpack.c.bf16 %v2113_v29, %v2112_v28  ;;  %v8969_v33 = vpack.c.bf16 %v1935_v31, %v1934_v30  ;;  %v2115_v35 = vld [vmem:[%s11847_s10 + $0x48] sm:$0xff]  ;;  %v1936_v36 = vld [vmem:[%s11845_s11 + $0x70] sm:$0xff]  ;;  %v1937_v37 = vld [vmem:[%s11845_s11 + $0x78] sm:$0xff] }
 0x250   : > { %8954 = vmatprep.subr.bf16.mxu0 %v8953_v8  ;;  %8982 = vmatprep.subr.bf16.mxu1 %v8981_v21  ;;  %v8993_v38 = vpack.c.bf16 %v2115_v35, %v2114_v34  ;;  %v8973_v39 = vpack.c.bf16 %v1937_v37, %v1936_v36  ;;  %v2116_v40 = vld [vmem:[%s11847_s10 + $0x50] sm:$0xff]  ;;  %v2117_v41 = vld [vmem:[%s11847_s10 + $0x58] sm:$0xff]  ;;  %v2118_v43 = vld [vmem:[%s11847_s10 + $0x60] sm:$0xff] }
 0x251   : > { %v8997_v42 = vpack.c.bf16 %v2117_v41, %v2116_v40  ;;  %v2119_v44 = vld [vmem:[%s11847_s10 + $0x68] sm:$0xff]  ;;  %v1892_v47 = vld [vmem:[%s11333_s15 + $0x10] sm:$0xff]  ;;  %v1893_v48 = vld [vmem:[%s11333_s15 + $0x18] sm:$0xff] }
 0x252   : > { %v1891_v45 = vld [vmem:[%s11333_s15 + $0x8] sm:$0xff]  ;;  %v9001_v46 = vpack.c.bf16 %v2119_v44, %v2118_v43  ;;  %v1894_v49 = vld [vmem:[%s11333_s15 + $0x20] sm:$0xff]  ;;  %v1896_v51 = vld [vmem:[%s11333_s15 + $0x30] sm:$0xff] }
 0x253   : > { %8956 = vmatpush3.bf16.msra.mxu0 %v8953_v8  ;;  %8984 = vmatpush3.bf16.msra.mxu1 %v8981_v21  ;;  %v1895_v50 = vld [vmem:[%s11333_s15 + $0x28] sm:$0xff]  ;;  %v1897_v52 = vld [vmem:[%s11333_s15 + $0x38] sm:$0xff]  ;;  %v1898_v53 = vld [vmem:[%s11333_s15 + $0x40] sm:$0xff] }
 0x254   : > { %8958 = vmatprep.subr.bf16.mxu0 %v8957_v12  ;;  %8986 = vmatprep.subr.bf16.mxu1 %v8985_v26  ;;  %v1899_v54 = vld [vmem:[%s11333_s15 + $0x48] sm:$0xff]  ;;  %v1900_v55 = vld [vmem:[%s11333_s15 + $0x50] sm:$0xff]  ;;  %v1901_v56 = vld [vmem:[%s11333_s15 + $0x58] sm:$0xff] }
 0x255   : > { %v1902_v57 = vld [vmem:[%s11333_s15 + $0x60] sm:$0xff]  ;;  %v1903_v58 = vld [vmem:[%s11333_s15 + $0x68] sm:$0xff]  ;;  %v1904_v59 = vld [vmem:[%s11333_s15 + $0x70] sm:$0xff] }
 0x256   : > { %v1905_v60 = vld [vmem:[%s11333_s15 + $0x78] sm:$0xff]  ;;  %v2120_v61 = vld [vmem:[%s11847_s10 + $0x70] sm:$0xff]  ;;  %v2290_v0 = vld [vmem:[%s11848_s9] sm:$0xff] }
 0x257   : > { %8960 = vmatpush3.bf16.msra.mxu0 %v8957_v12  ;;  %8988 = vmatpush3.bf16.msra.mxu1 %v8985_v26  ;;  %v2121_v62 = vld [vmem:[%s11847_s10 + $0x78] sm:$0xff]  ;;  %v2291_v1 = vld [vmem:[%s11848_s9 + $0x8] sm:$0xff]  ;;  %v2292_v2 = vld [vmem:[%s11848_s9 + $0x10] sm:$0xff] }
 0x258   : > { %8962 = vmatprep.subr.bf16.mxu0 %v8961_v20  ;;  %8990 = vmatprep.subr.bf16.mxu1 %v8989_v32  ;;  %v9005_v63 = vpack.c.bf16 %v2121_v62, %v2120_v61  ;;  %v9009_v3 = vpack.c.bf16 %v2291_v1, %v2290_v0  ;;  %v2293_v4 = vld [vmem:[%s11848_s9 + $0x18] sm:$0xff]  ;;  %v2294_v6 = vld [vmem:[%s11848_s9 + $0x20] sm:$0xff]  ;;  %v2295_v7 = vld [vmem:[%s11848_s9 + $0x28] sm:$0xff] }
 0x259   : > { %v9013_v5 = vpack.c.bf16 %v2293_v4, %v2292_v2  ;;  %v9017_v8 = vpack.c.bf16 %v2295_v7, %v2294_v6  ;;  %v2296_v9 = vld [vmem:[%s11848_s9 + $0x30] sm:$0xff]  ;;  %v2297_v10 = vld [vmem:[%s11848_s9 + $0x38] sm:$0xff]  ;;  %v2298_v12 = vld [vmem:[%s11848_s9 + $0x40] sm:$0xff] }
 0x25a   : > { %v9021_v11 = vpack.c.bf16 %v2297_v10, %v2296_v9  ;;  %v2299_v13 = vld [vmem:[%s11848_s9 + $0x48] sm:$0xff]  ;;  %v2300_v15 = vld [vmem:[%s11848_s9 + $0x50] sm:$0xff]  ;;  %v2301_v16 = vld [vmem:[%s11848_s9 + $0x58] sm:$0xff] }
 0x25b   : > { %8964 = vmatpush3.bf16.msra.mxu0 %v8961_v20  ;;  %8992 = vmatpush3.bf16.msra.mxu1 %v8989_v32  ;;  %v9025_v14 = vpack.c.bf16 %v2299_v13, %v2298_v12  ;;  %v9029_v17 = vpack.c.bf16 %v2301_v16, %v2300_v15  ;;  %v2302_v18 = vld [vmem:[%s11848_s9 + $0x60] sm:$0xff]  ;;  %v2303_v19 = vld [vmem:[%s11848_s9 + $0x68] sm:$0xff]  ;;  %v2304_v6 = vld [vmem:[%s11848_s9 + $0x70] sm:$0xff] }
 0x25c   : > { %8966 = vmatprep.subr.bf16.mxu0 %v8965_v27  ;;  %8994 = vmatprep.subr.bf16.mxu1 %v8993_v38  ;;  %v9033_v20 = vpack.c.bf16 %v2303_v19, %v2302_v18  ;;  %v6805_v21 = vld [vmem:[%s11849_s2] ss:$0 sm:$0xff]  ;;  %v2305_v7 = vld [vmem:[%s11848_s9 + $0x78] sm:$0xff]  ;;  %v2475_v10 = vld [vmem:[%s11850_s26 + $0x8] sm:$0xff]  ;;  %s11856_s2 = sld [smem:[#allocation42_spill]] }
 0x25d   : > { %v2474_v9 = vld [vmem:[%s11850_s26] sm:$0xff]  ;;  %v2477_v13 = vld [vmem:[%s11850_s26 + $0x18] sm:$0xff]  ;;  %v2479_v16 = vld [vmem:[%s11850_s26 + $0x28] sm:$0xff] }
 0x25e   : > { %v9041_v12 = vpack.c.bf16 %v2475_v10, %v2474_v9  ;;  %v2478_v15 = vld [vmem:[%s11850_s26 + $0x20] sm:$0xff]  ;;  %v2480_v18 = vld [vmem:[%s11850_s26 + $0x30] sm:$0xff]  ;;  %v2481_v19 = vld [vmem:[%s11850_s26 + $0x38] sm:$0xff] }
 0x25f   : > { %8968 = vmatpush3.bf16.msra.mxu0 %v8965_v27  ;;  %8996 = vmatpush3.bf16.msra.mxu1 %v8993_v38 }
 0x260   : > { %8970 = vmatprep.subr.bf16.mxu0 %v8969_v33  ;;  %8998 = vmatprep.subr.bf16.mxu1 %v8997_v42 }
 0x263   : > { %8972 = vmatpush3.bf16.msra.mxu0 %v8969_v33  ;;  %9000 = vmatpush3.bf16.msra.mxu1 %v8997_v42 }
 0x264   : > { %8974 = vmatprep.subr.bf16.mxu0 %v8973_v39  ;;  %9002 = vmatprep.subr.bf16.mxu1 %v9001_v46 }
 0x267   : > { %8976 = vmatpush3.bf16.msra.mxu0 %v8973_v39  ;;  %9004 = vmatpush3.bf16.msra.mxu1 %v9001_v46 }
 0x268   : > { %9006 = vmatprep.subr.bf16.mxu1 %v9005_v63  ;;  %9010 = vmatprep.subr.bf16.mxu0 %v9009_v3 }
 0x26a   : > { %7634 = vmatmul.mubr.f32.vlgmr.msra.gmra.mrb[0].mxu0 %v1891_v45 }
 0x26b   : > { %7636 = vmatprep.mubr.f32.mxu0 %v1892_v47  ;;  %9008 = vmatpush3.bf16.msra.mxu1 %v9005_v63 }
 0x26c   : > { %9012 = vmatpush3.bf16.msra.mxu0 %v9009_v3  ;;  %9042 = vmatprep.subr.bf16.mxu1 %v9041_v12 }
 0x26d   : > { %9014 = vmatprep.subr.bf16.mxu0 %v9013_v5 }
 0x26e   : > { %7637 = vmatmul.mubr.f32.gmra.mrb[2].mxu0 %v1893_v48 }
 0x26f   : > { %7639 = vmatprep.mubr.f32.mxu0 %v1894_v49 }
 0x270   : > { %9016 = vmatpush3.bf16.msra.mxu0 %v9013_v5 }
 0x271   : > { %9018 = vmatprep.subr.bf16.mxu0 %v9017_v8 }
 0x272   : > { %7640 = vmatmul.mubr.f32.gmra.mrb[4].mxu0 %v1895_v50 }
 0x273   : > { %7642 = vmatprep.mubr.f32.mxu0 %v1896_v51 }
 0x274   : > { %9020 = vmatpush3.bf16.msra.mxu0 %v9017_v8  ;;  %v9037_v8 = vpack.c.bf16 %v2305_v7, %v2304_v6 }
 0x275   : > { %9022 = vmatprep.subr.bf16.mxu0 %v9021_v11 }
 0x276   : > { %7643 = vmatmul.mubr.f32.gmra.mrb[6].mxu0 %v1897_v52 }
 0x277   : > { %7645 = vmatprep.mubr.f32.mxu0 %v1898_v53 }
 0x278   : > { %9024 = vmatpush3.bf16.msra.mxu0 %v9021_v11  ;;  %v2476_v11 = vld [vmem:[%s11850_s26 + $0x10] sm:$0xff] }
 0x279   : > { %9026 = vmatprep.subr.bf16.mxu0 %v9025_v14 }
 0x27a   : > { %7646 = vmatmul.mubr.f32.gmra.mrb[8].mxu0 %v1899_v54 }
 0x27b   : > { %7648 = vmatprep.mubr.f32.mxu0 %v1900_v55 }
 0x27c   : > { %9028 = vmatpush3.bf16.msra.mxu0 %v9025_v14  ;;  %v9045_v14 = vpack.c.bf16 %v2477_v13, %v2476_v11 }
 0x27d   : > { %9030 = vmatprep.subr.bf16.mxu0 %v9029_v17 }
 0x27e   : > { %7649 = vmatmul.mubr.f32.gmra.mrb[10].mxu0 %v1901_v56 }
 0x27f   : > { %7651 = vmatprep.mubr.f32.mxu0 %v1902_v57 }
 0x280   : > { %9032 = vmatpush3.bf16.msra.mxu0 %v9029_v17  ;;  %v9049_v17 = vpack.c.bf16 %v2479_v16, %v2478_v15  ;;  %v2488_v15 = vld [vmem:[%s11850_s26 + $0x70] sm:$0xff]  ;;  %v2489_v16 = vld [vmem:[%s11850_s26 + $0x78] sm:$0xff] }
 0x281   : > { %9034 = vmatprep.subr.bf16.mxu0 %v9033_v20 }
 0x282   : > { %7652 = vmatmul.mubr.f32.gmra.mrb[12].mxu0 %v1903_v58 }
 0x283   : > { %7654 = vmatprep.mubr.f32.mxu0 %v1904_v59 }
 0x284   : > { %9036 = vmatpush3.bf16.msra.mxu0 %v9033_v20  ;;  %v9053_v20 = vpack.c.bf16 %v2481_v19, %v2480_v18  ;;  %v2658_v18 = vld [vmem:[%s11852_s16] sm:$0xff]  ;;  %v2659_v19 = vld [vmem:[%s11852_s16 + $0x8] sm:$0xff] }
 0x285   : > { %9038 = vmatprep.subr.bf16.mxu0 %v9037_v8 }
 0x286   : > { %7655 = vmatmul.mubr.f32.gmra.mrb[14].mxu0 %v1905_v60 }
 0x288   : > { %9040 = vmatpush3.bf16.msra.mxu0 %v9037_v8 }
 0x33d   : > { %v7635_v22 = vpop.f32.mrb[0].mxu0 }
 0x33e   : > { %v2017_v23 = vadd.f32 %v7635_v22, %v6805_v21  ;;  %v2011_v24 = vpop.f32.mrb[1].mxu0  ;;  %v2483_v22 = vld [vmem:[%s11850_s26 + $0x48] sm:$0xff] }
 0x33f   : > { %v2012_v25 = vadd.f32 %v6805_v21, %v2011_v24  ;;  %v2484_v24 = vld [vmem:[%s11850_s26 + $0x50] sm:$0xff] }
 0x340   : > { %v2091_v28 = vmax.f32 %v2017_v23, 0.0 }
 0x341   : > { %v7638_v26 = vpop.f32.mrb[2].mxu0  ;;  %v2090_v27 = vmax.f32 %v2012_v25, 0.0  ;;  %v2485_v25 = vld [vmem:[%s11850_s26 + $0x58] sm:$0xff] }
 0x342   : > { %v2027_v29 = vadd.f32 %v7638_v26, %v6805_v21  ;;  %v2021_v30 = vpop.f32.mrb[3].mxu0  ;;  %v9061_v26 = vpack.c.bf16 %v2485_v25, %v2484_v24  ;;  %v2662_v24 = vld [vmem:[%s11852_s16 + $0x20] sm:$0xff]  ;;  %v2663_v25 = vld [vmem:[%s11852_s16 + $0x28] sm:$0xff] }
 0x343   : > { %v2022_v31 = vadd.f32 %v6805_v21, %v2021_v30  ;;  %7689 = vmatprep.mubr.f32.mxu1 %v2090_v27  ;;  %v2486_v27 = vld [vmem:[%s11850_s26 + $0x60] sm:$0xff] }
 0x344   : > { %7690 = vmatmul.mubr.f32.vlgmr.msra.gmra.mrb[0].mxu1 %v2091_v28  ;;  %v2093_v34 = vmax.f32 %v2027_v29, 0.0  ;;  %v2487_v28 = vld [vmem:[%s11850_s26 + $0x68] sm:$0xff]  ;;  %v6806_v30 = vld [vmem:[%s11851_s3] ss:$0 sm:$0xff]  ;;  %s11857_s3 = sld [smem:[#allocation55_spill]] }
 0x345   : > { %v2092_v32 = vmax.f32 %v2022_v31, 0.0  ;;  %v7641_v33 = vpop.f32.mrb[4].mxu0  ;;  %9044 = vmatpush3.bf16.msra.mxu1 %v9041_v12  ;;  %v9065_v29 = vpack.c.bf16 %v2487_v28, %v2486_v27  ;;  %v2664_v27 = vld [vmem:[%s11852_s16 + $0x30] sm:$0xff]  ;;  %v2665_v28 = vld [vmem:[%s11852_s16 + $0x38] sm:$0xff] }
 0x346   : > { %v2037_v35 = vadd.f32 %v7641_v33, %v6805_v21  ;;  %v2031_v36 = vpop.f32.mrb[5].mxu0  ;;  %9046 = vmatprep.subr.bf16.mxu1 %v9045_v14 }
 0x347   : > { %v2032_v37 = vadd.f32 %v6805_v21, %v2031_v36  ;;  %7692 = vmatprep.mubr.f32.mxu1 %v2092_v32 }
 0x348   : > { %7693 = vmatmul.mubr.f32.gmra.mrb[2].mxu1 %v2093_v34  ;;  %v2095_v40 = vmax.f32 %v2037_v35, 0.0 }
 0x349   : > { %v2094_v38 = vmax.f32 %v2032_v37, 0.0  ;;  %v7644_v39 = vpop.f32.mrb[6].mxu0  ;;  %9048 = vmatpush3.bf16.msra.mxu1 %v9045_v14 }
 0x34a   : > { %v2047_v41 = vadd.f32 %v7644_v39, %v6805_v21  ;;  %v2041_v42 = vpop.f32.mrb[7].mxu0  ;;  %9050 = vmatprep.subr.bf16.mxu1 %v9049_v17 }
 0x34b   : > { %v2042_v43 = vadd.f32 %v6805_v21, %v2041_v42  ;;  %7695 = vmatprep.mubr.f32.mxu1 %v2094_v38 }
 0x34c   : > { %7696 = vmatmul.mubr.f32.gmra.mrb[4].mxu1 %v2095_v40  ;;  %v2097_v46 = vmax.f32 %v2047_v41, 0.0 }
 0x34d   : > { %v2096_v44 = vmax.f32 %v2042_v43, 0.0  ;;  %v7647_v45 = vpop.f32.mrb[8].mxu0  ;;  %9052 = vmatpush3.bf16.msra.mxu1 %v9049_v17  ;;  %v9069_v17 = vpack.c.bf16 %v2489_v16, %v2488_v15 }
 0x34e   : > { %v2057_v47 = vadd.f32 %v7647_v45, %v6805_v21  ;;  %v2051_v48 = vpop.f32.mrb[9].mxu0  ;;  %9054 = vmatprep.subr.bf16.mxu1 %v9053_v20 }
 0x34f   : > { %v2052_v49 = vadd.f32 %v6805_v21, %v2051_v48  ;;  %7698 = vmatprep.mubr.f32.mxu1 %v2096_v44 }
 0x350   : > { %7699 = vmatmul.mubr.f32.gmra.mrb[6].mxu1 %v2097_v46  ;;  %v2099_v52 = vmax.f32 %v2057_v47, 0.0 }
 0x351   : > { %v2098_v50 = vmax.f32 %v2052_v49, 0.0  ;;  %v7650_v51 = vpop.f32.mrb[10].mxu0  ;;  %9056 = vmatpush3.bf16.msra.mxu1 %v9053_v20  ;;  %v2660_v20 = vld [vmem:[%s11852_s16 + $0x10] sm:$0xff] }
 0x352   : > { %v2067_v53 = vadd.f32 %v7650_v51, %v6805_v21  ;;  %v2061_v54 = vpop.f32.mrb[11].mxu0 }
 0x353   : > { %v2062_v55 = vadd.f32 %v6805_v21, %v2061_v54  ;;  %7701 = vmatprep.mubr.f32.mxu1 %v2098_v50 }
 0x354   : > { %7702 = vmatmul.mubr.f32.gmra.mrb[8].mxu1 %v2099_v52  ;;  %v2101_v58 = vmax.f32 %v2067_v53, 0.0 }
 0x355   : > { %v2100_v56 = vmax.f32 %v2062_v55, 0.0  ;;  %v7653_v57 = vpop.f32.mrb[12].mxu0 }
 0x356   : > { %v2077_v59 = vadd.f32 %v7653_v57, %v6805_v21  ;;  %v2071_v60 = vpop.f32.mrb[13].mxu0 }
 0x357   : > { %v2072_v61 = vadd.f32 %v6805_v21, %v2071_v60  ;;  %7704 = vmatprep.mubr.f32.mxu1 %v2100_v56 }
 0x358   : > { %7705 = vmatmul.mubr.f32.gmra.mrb[10].mxu1 %v2101_v58  ;;  %v2103_v0 = vmax.f32 %v2077_v59, 0.0 }
 0x359   : > { %v2102_v62 = vmax.f32 %v2072_v61, 0.0  ;;  %v7656_v63 = vpop.f32.mrb[14].mxu0 }
 0x35a   : > { %v2087_v1 = vadd.f32 %v7656_v63, %v6805_v21  ;;  %v2081_v2 = vpop.f32.mrb[15].mxu0 }
 0x35b   : > { %v2082_v3 = vadd.f32 %v6805_v21, %v2081_v2  ;;  %7707 = vmatprep.mubr.f32.mxu1 %v2102_v62  ;;  %v2482_v21 = vld [vmem:[%s11850_s26 + $0x40] sm:$0xff] }
 0x35c   : > { %7708 = vmatmul.mubr.f32.gmra.mrb[12].mxu1 %v2103_v0  ;;  %v2105_v5 = vmax.f32 %v2087_v1, 0.0  ;;  %v9057_v23 = vpack.c.bf16 %v2483_v22, %v2482_v21  ;;  %v9073_v21 = vpack.c.bf16 %v2659_v19, %v2658_v18  ;;  %v2661_v22 = vld [vmem:[%s11852_s16 + $0x18] sm:$0xff] }
 0x35d   : > { %v2104_v4 = vmax.f32 %v2082_v3, 0.0 }
 0x35e   : > { %9058 = vmatprep.subr.bf16.mxu1 %v9057_v23  ;;  %9074 = vmatprep.subr.bf16.mxu0 %v9073_v21 }
 0x35f   : > { %7710 = vmatprep.mubr.f32.mxu1 %v2104_v4  ;;  %9060 = vmatpush3.bf16.msra.mxu1 %v9057_v23  ;;  %v9077_v23 = vpack.c.bf16 %v2661_v22, %v2660_v20 }
 0x360   : > { %7711 = vmatmul.mubr.f32.gmra.mrb[14].mxu1 %v2105_v5  ;;  %9062 = vmatprep.subr.bf16.mxu1 %v9061_v26 }
 0x363   : > { %9064 = vmatpush3.bf16.msra.mxu1 %v9061_v26  ;;  %v9081_v26 = vpack.c.bf16 %v2663_v25, %v2662_v24  ;;  %v2672_v24 = vld [vmem:[%s11852_s16 + $0x70] sm:$0xff]  ;;  %v2673_v25 = vld [vmem:[%s11852_s16 + $0x78] sm:$0xff] }
 0x364   : > { %9066 = vmatprep.subr.bf16.mxu1 %v9065_v29 }
 0x367   : > { %9068 = vmatpush3.bf16.msra.mxu1 %v9065_v29  ;;  %v9085_v29 = vpack.c.bf16 %v2665_v28, %v2664_v27  ;;  %v2842_v27 = vld [vmem:[#allocation2] sm:$0xff]  ;;  %v2843_v28 = vld [vmem:[#allocation2 + $0x8] sm:$0xff] }
 0x368   : > { %9070 = vmatprep.subr.bf16.mxu1 %v9069_v17 }
 0x36b   : > { %9072 = vmatpush3.bf16.msra.mxu1 %v9069_v17 }
 0x417   : > { %v7691_v31 = vpop.f32.mrb[0].mxu1 }
 0x418   : > { %v2201_v32 = vadd.f32 %v7691_v31, %v6806_v30  ;;  %v2195_v33 = vpop.f32.mrb[1].mxu1  ;;  %v2667_v31 = vld [vmem:[%s11852_s16 + $0x48] sm:$0xff] }
 0x419   : > { %v2196_v34 = vadd.f32 %v6806_v30, %v2195_v33  ;;  %v2668_v33 = vld [vmem:[%s11852_s16 + $0x50] sm:$0xff] }
 0x41a   : > { %v2275_v37 = vmax.f32 %v2201_v32, 0.0 }
 0x41b   : > { %v2274_v35 = vmax.f32 %v2196_v34, 0.0  ;;  %v7694_v36 = vpop.f32.mrb[2].mxu1  ;;  %v2669_v34 = vld [vmem:[%s11852_s16 + $0x58] sm:$0xff] }
 0x41c   : > { %v2211_v38 = vadd.f32 %v7694_v36, %v6806_v30  ;;  %v2205_v39 = vpop.f32.mrb[3].mxu1  ;;  %v2670_v36 = vld [vmem:[%s11852_s16 + $0x60] sm:$0xff] }
 0x41d   : > { %v2206_v40 = vadd.f32 %v6806_v30, %v2205_v39  ;;  %7745 = vmatprep.mubr.f32.mxu0 %v2274_v35  ;;  %v9093_v35 = vpack.c.bf16 %v2669_v34, %v2668_v33  ;;  %v6807_v39 = vld [vmem:[%s11853_s8] ss:$0 sm:$0xff]  ;;  %v2847_v34 = vld [vmem:[#allocation2 + $0x28] sm:$0xff]  ;;  %s11432_s8 = scalar_lea.vmem %s11856_s2, %s11323_s1  ;;  %s11860_s2 = sld [smem:[#allocation58_spill]] }
 0x41e   : > { %7746 = vmatmul.mubr.f32.vlgmr.msra.gmra.mrb[16].mxu0 %v2275_v37  ;;  %v2277_v43 = vmax.f32 %v2211_v38, 0.0  ;;  %v2671_v37 = vld [vmem:[%s11852_s16 + $0x68] sm:$0xff]  ;;  %v2846_v33 = vld [vmem:[#allocation2 + $0x20] sm:$0xff] }
 0x41f   : > { %v2276_v41 = vmax.f32 %v2206_v40, 0.0  ;;  %v7697_v42 = vpop.f32.mrb[4].mxu1  ;;  %9076 = vmatpush3.bf16.msra.mxu0 %v9073_v21  ;;  %v9097_v38 = vpack.c.bf16 %v2671_v37, %v2670_v36  ;;  %v2848_v36 = vld [vmem:[#allocation2 + $0x30] sm:$0xff]  ;;  %v2849_v37 = vld [vmem:[#allocation2 + $0x38] sm:$0xff] }
 0x420   : > { %v2221_v44 = vadd.f32 %v7697_v42, %v6806_v30  ;;  %v2215_v45 = vpop.f32.mrb[5].mxu1  ;;  %9078 = vmatprep.subr.bf16.mxu0 %v9077_v23 }
 0x421   : > { %v2216_v46 = vadd.f32 %v6806_v30, %v2215_v45  ;;  %7748 = vmatprep.mubr.f32.mxu0 %v2276_v41 }
 0x422   : > { %7749 = vmatmul.mubr.f32.gmra.mrb[18].mxu0 %v2277_v43  ;;  %v2279_v49 = vmax.f32 %v2221_v44, 0.0 }
 0x423   : > { %v2278_v47 = vmax.f32 %v2216_v46, 0.0  ;;  %v7700_v48 = vpop.f32.mrb[6].mxu1  ;;  %9080 = vmatpush3.bf16.msra.mxu0 %v9077_v23 }
 0x424   : > { %v2231_v50 = vadd.f32 %v7700_v48, %v6806_v30  ;;  %v2225_v51 = vpop.f32.mrb[7].mxu1  ;;  %9082 = vmatprep.subr.bf16.mxu0 %v9081_v26 }
 0x425   : > { %v2226_v52 = vadd.f32 %v6806_v30, %v2225_v51  ;;  %7751 = vmatprep.mubr.f32.mxu0 %v2278_v47 }
 0x426   : > { %7752 = vmatmul.mubr.f32.gmra.mrb[20].mxu0 %v2279_v49  ;;  %v2281_v55 = vmax.f32 %v2231_v50, 0.0 }
 0x427   : > { %v2280_v53 = vmax.f32 %v2226_v52, 0.0  ;;  %v7703_v54 = vpop.f32.mrb[8].mxu1  ;;  %9084 = vmatpush3.bf16.msra.mxu0 %v9081_v26  ;;  %v9101_v26 = vpack.c.bf16 %v2673_v25, %v2672_v24 }
 0x428   : > { %v2241_v56 = vadd.f32 %v7703_v54, %v6806_v30  ;;  %v2235_v57 = vpop.f32.mrb[9].mxu1  ;;  %9086 = vmatprep.subr.bf16.mxu0 %v9085_v29 }
 0x429   : > { %v2236_v58 = vadd.f32 %v6806_v30, %v2235_v57  ;;  %7754 = vmatprep.mubr.f32.mxu0 %v2280_v53 }
 0x42a   : > { %7755 = vmatmul.mubr.f32.gmra.mrb[22].mxu0 %v2281_v55  ;;  %v2283_v61 = vmax.f32 %v2241_v56, 0.0 }
 0x42b   : > { %v2282_v59 = vmax.f32 %v2236_v58, 0.0  ;;  %v7706_v60 = vpop.f32.mrb[10].mxu1  ;;  %9088 = vmatpush3.bf16.msra.mxu0 %v9085_v29  ;;  %v2844_v29 = vld [vmem:[#allocation2 + $0x10] sm:$0xff] }
 0x42c   : > { %v2251_v62 = vadd.f32 %v7706_v60, %v6806_v30  ;;  %v2245_v63 = vpop.f32.mrb[11].mxu1 }
 0x42d   : > { %v2246_v0 = vadd.f32 %v6806_v30, %v2245_v63  ;;  %7757 = vmatprep.mubr.f32.mxu0 %v2282_v59 }
 0x42e   : > { %7758 = vmatmul.mubr.f32.gmra.mrb[24].mxu0 %v2283_v61  ;;  %v2285_v3 = vmax.f32 %v2251_v62, 0.0 }
 0x42f   : > { %v2284_v1 = vmax.f32 %v2246_v0, 0.0  ;;  %v7709_v2 = vpop.f32.mrb[12].mxu1 }
 0x430   : > { %v2261_v4 = vadd.f32 %v7709_v2, %v6806_v30  ;;  %v2255_v5 = vpop.f32.mrb[13].mxu1 }
 0x431   : > { %v2256_v6 = vadd.f32 %v6806_v30, %v2255_v5  ;;  %7760 = vmatprep.mubr.f32.mxu0 %v2284_v1 }
 0x432   : > { %7761 = vmatmul.mubr.f32.gmra.mrb[26].mxu0 %v2285_v3  ;;  %v2287_v9 = vmax.f32 %v2261_v4, 0.0 }
 0x433   : > { %v2286_v7 = vmax.f32 %v2256_v6, 0.0  ;;  %v7712_v8 = vpop.f32.mrb[14].mxu1 }
 0x434   : > { %v2271_v10 = vadd.f32 %v7712_v8, %v6806_v30  ;;  %v2265_v11 = vpop.f32.mrb[15].mxu1 }
 0x435   : > { %v2266_v12 = vadd.f32 %v6806_v30, %v2265_v11  ;;  %7763 = vmatprep.mubr.f32.mxu0 %v2286_v7  ;;  %v2666_v30 = vld [vmem:[%s11852_s16 + $0x40] sm:$0xff] }
 0x436   : > { %7764 = vmatmul.mubr.f32.gmra.mrb[28].mxu0 %v2287_v9  ;;  %v2289_v14 = vmax.f32 %v2271_v10, 0.0  ;;  %v9089_v32 = vpack.c.bf16 %v2667_v31, %v2666_v30  ;;  %v9105_v30 = vpack.c.bf16 %v2843_v28, %v2842_v27  ;;  %v2845_v31 = vld [vmem:[#allocation2 + $0x18] sm:$0xff] }
 0x437   : > { %v2288_v13 = vmax.f32 %v2266_v12, 0.0 }
 0x438   : > { %9090 = vmatprep.subr.bf16.mxu0 %v9089_v32  ;;  %9106 = vmatprep.subr.bf16.mxu1 %v9105_v30 }
 0x439   : > { %7766 = vmatprep.mubr.f32.mxu0 %v2288_v13  ;;  %9092 = vmatpush3.bf16.msra.mxu0 %v9089_v32  ;;  %v9109_v32 = vpack.c.bf16 %v2845_v31, %v2844_v29 }
 0x43a   : > { %7767 = vmatmul.mubr.f32.gmra.mrb[30].mxu0 %v2289_v14  ;;  %9094 = vmatprep.subr.bf16.mxu0 %v9093_v35 }
 0x43d   : > { %9096 = vmatpush3.bf16.msra.mxu0 %v9093_v35  ;;  %v9113_v35 = vpack.c.bf16 %v2847_v34, %v2846_v33  ;;  %v2856_v33 = vld [vmem:[#allocation2 + $0x70] sm:$0xff]  ;;  %v2857_v34 = vld [vmem:[#allocation2 + $0x78] sm:$0xff] }
 0x43e   : > { %9098 = vmatprep.subr.bf16.mxu0 %v9097_v38 }
 0x441   : > { %9100 = vmatpush3.bf16.msra.mxu0 %v9097_v38  ;;  %v9117_v38 = vpack.c.bf16 %v2849_v37, %v2848_v36  ;;  %v3026_v36 = vld [vmem:[#allocation4] sm:$0xff]  ;;  %v3027_v37 = vld [vmem:[#allocation4 + $0x8] sm:$0xff] }
 0x442   : > { %9102 = vmatprep.subr.bf16.mxu0 %v9101_v26 }
 0x445   : > { %9104 = vmatpush3.bf16.msra.mxu0 %v9101_v26 }
 0x4f1   : > { %v7747_v40 = vpop.f32.mrb[16].mxu0 }
 0x4f2   : > { %v2385_v41 = vadd.f32 %v7747_v40, %v6807_v39  ;;  %v2379_v42 = vpop.f32.mrb[17].mxu0  ;;  %v2851_v40 = vld [vmem:[#allocation2 + $0x48] sm:$0xff] }
 0x4f3   : > { %v2380_v43 = vadd.f32 %v6807_v39, %v2379_v42  ;;  %v2852_v42 = vld [vmem:[#allocation2 + $0x50] sm:$0xff] }
 0x4f4   : > { %v2459_v46 = vmax.f32 %v2385_v41, 0.0 }
 0x4f5   : > { %v2458_v44 = vmax.f32 %v2380_v43, 0.0  ;;  %v7750_v45 = vpop.f32.mrb[18].mxu0  ;;  %v2853_v43 = vld [vmem:[#allocation2 + $0x58] sm:$0xff] }
 0x4f6   : > { %v2395_v47 = vadd.f32 %v7750_v45, %v6807_v39  ;;  %v2389_v48 = vpop.f32.mrb[19].mxu0  ;;  %v2854_v45 = vld [vmem:[#allocation2 + $0x60] sm:$0xff] }
 0x4f7   : > { %v2390_v49 = vadd.f32 %v6807_v39, %v2389_v48  ;;  %7801 = vmatprep.mubr.f32.mxu1 %v2458_v44  ;;  %v9125_v44 = vpack.c.bf16 %v2853_v43, %v2852_v42  ;;  %v6808_v48 = vld [vmem:[%s11854_s23] ss:$0 sm:$0xff]  ;;  %v3031_v43 = vld [vmem:[#allocation4 + $0x28] sm:$0xff]  ;;  %s11858_s23 = sld [smem:[#allocation56_spill]] }
 0x4f8   : > { %7802 = vmatmul.mubr.f32.vlgmr.msra.gmra.mrb[16].mxu1 %v2459_v46  ;;  %v2461_v52 = vmax.f32 %v2395_v47, 0.0  ;;  %v2855_v46 = vld [vmem:[#allocation2 + $0x68] sm:$0xff]  ;;  %v3030_v42 = vld [vmem:[#allocation4 + $0x20] sm:$0xff] }
 0x4f9   : > { %v2460_v50 = vmax.f32 %v2390_v49, 0.0  ;;  %v7753_v51 = vpop.f32.mrb[20].mxu0  ;;  %9108 = vmatpush3.bf16.msra.mxu1 %v9105_v30  ;;  %v9129_v47 = vpack.c.bf16 %v2855_v46, %v2854_v45  ;;  %v3032_v45 = vld [vmem:[#allocation4 + $0x30] sm:$0xff]  ;;  %v3033_v46 = vld [vmem:[#allocation4 + $0x38] sm:$0xff] }
 0x4fa   : > { %v2405_v53 = vadd.f32 %v7753_v51, %v6807_v39  ;;  %v2399_v54 = vpop.f32.mrb[21].mxu0  ;;  %9110 = vmatprep.subr.bf16.mxu1 %v9109_v32 }
 0x4fb   : > { %v2400_v55 = vadd.f32 %v6807_v39, %v2399_v54  ;;  %7804 = vmatprep.mubr.f32.mxu1 %v2460_v50 }
 0x4fc   : > { %7805 = vmatmul.mubr.f32.gmra.mrb[18].mxu1 %v2461_v52  ;;  %v2463_v58 = vmax.f32 %v2405_v53, 0.0 }
 0x4fd   : > { %v2462_v56 = vmax.f32 %v2400_v55, 0.0  ;;  %v7756_v57 = vpop.f32.mrb[22].mxu0  ;;  %9112 = vmatpush3.bf16.msra.mxu1 %v9109_v32 }
 0x4fe   : > { %v2415_v59 = vadd.f32 %v7756_v57, %v6807_v39  ;;  %v2409_v60 = vpop.f32.mrb[23].mxu0  ;;  %9114 = vmatprep.subr.bf16.mxu1 %v9113_v35 }
 0x4ff   : > { %v2410_v61 = vadd.f32 %v6807_v39, %v2409_v60  ;;  %7807 = vmatprep.mubr.f32.mxu1 %v2462_v56 }
 0x500   : > { %7808 = vmatmul.mubr.f32.gmra.mrb[20].mxu1 %v2463_v58  ;;  %v2465_v0 = vmax.f32 %v2415_v59, 0.0 }
 0x501   : > { %v2464_v62 = vmax.f32 %v2410_v61, 0.0  ;;  %v7759_v63 = vpop.f32.mrb[24].mxu0  ;;  %9116 = vmatpush3.bf16.msra.mxu1 %v9113_v35  ;;  %v9133_v35 = vpack.c.bf16 %v2857_v34, %v2856_v33 }
 0x502   : > { %v2425_v1 = vadd.f32 %v7759_v63, %v6807_v39  ;;  %v2419_v2 = vpop.f32.mrb[25].mxu0  ;;  %9118 = vmatprep.subr.bf16.mxu1 %v9117_v38 }
 0x503   : > { %v2420_v3 = vadd.f32 %v6807_v39, %v2419_v2  ;;  %7810 = vmatprep.mubr.f32.mxu1 %v2464_v62 }
 0x504   : > { %7811 = vmatmul.mubr.f32.gmra.mrb[22].mxu1 %v2465_v0  ;;  %v2467_v6 = vmax.f32 %v2425_v1, 0.0 }
 0x505   : > { %v2466_v4 = vmax.f32 %v2420_v3, 0.0  ;;  %v7762_v5 = vpop.f32.mrb[26].mxu0  ;;  %9120 = vmatpush3.bf16.msra.mxu1 %v9117_v38  ;;  %v3028_v38 = vld [vmem:[#allocation4 + $0x10] sm:$0xff] }
 0x506   : > { %v2435_v7 = vadd.f32 %v7762_v5, %v6807_v39  ;;  %v2429_v8 = vpop.f32.mrb[27].mxu0 }
 0x507   : > { %v2430_v9 = vadd.f32 %v6807_v39, %v2429_v8  ;;  %7813 = vmatprep.mubr.f32.mxu1 %v2466_v4 }
 0x508   : > { %7814 = vmatmul.mubr.f32.gmra.mrb[24].mxu1 %v2467_v6  ;;  %v2469_v12 = vmax.f32 %v2435_v7, 0.0 }
 0x509   : > { %v2468_v10 = vmax.f32 %v2430_v9, 0.0  ;;  %v7765_v11 = vpop.f32.mrb[28].mxu0 }
 0x50a   : > { %v2445_v13 = vadd.f32 %v7765_v11, %v6807_v39  ;;  %v2439_v14 = vpop.f32.mrb[29].mxu0 }
 0x50b   : > { %v2440_v15 = vadd.f32 %v6807_v39, %v2439_v14  ;;  %7816 = vmatprep.mubr.f32.mxu1 %v2468_v10 }
 0x50c   : > { %7817 = vmatmul.mubr.f32.gmra.mrb[26].mxu1 %v2469_v12  ;;  %v2471_v18 = vmax.f32 %v2445_v13, 0.0 }
 0x50d   : > { %v2470_v16 = vmax.f32 %v2440_v15, 0.0  ;;  %v7768_v17 = vpop.f32.mrb[30].mxu0 }
 0x50e   : > { %v2455_v19 = vadd.f32 %v7768_v17, %v6807_v39  ;;  %v2449_v20 = vpop.f32.mrb[31].mxu0 }
 0x50f   : > { %v2450_v21 = vadd.f32 %v6807_v39, %v2449_v20  ;;  %7819 = vmatprep.mubr.f32.mxu1 %v2470_v16  ;;  %v2850_v39 = vld [vmem:[#allocation2 + $0x40] sm:$0xff] }
 0x510   : > { %7820 = vmatmul.mubr.f32.gmra.mrb[28].mxu1 %v2471_v18  ;;  %v2473_v23 = vmax.f32 %v2455_v19, 0.0  ;;  %v9121_v41 = vpack.c.bf16 %v2851_v40, %v2850_v39  ;;  %v9137_v39 = vpack.c.bf16 %v3027_v37, %v3026_v36  ;;  %v3029_v40 = vld [vmem:[#allocation4 + $0x18] sm:$0xff] }
 0x511   : > { %v2472_v22 = vmax.f32 %v2450_v21, 0.0 }
 0x512   : > { %9122 = vmatprep.subr.bf16.mxu1 %v9121_v41  ;;  %9138 = vmatprep.subr.bf16.mxu0 %v9137_v39 }
 0x513   : > { %7822 = vmatprep.mubr.f32.mxu1 %v2472_v22  ;;  %9124 = vmatpush3.bf16.msra.mxu1 %v9121_v41  ;;  %v9141_v41 = vpack.c.bf16 %v3029_v40, %v3028_v38 }
 0x514   : > { %7823 = vmatmul.mubr.f32.gmra.mrb[30].mxu1 %v2473_v23  ;;  %9126 = vmatprep.subr.bf16.mxu1 %v9125_v44 }
 0x517   : > { %9128 = vmatpush3.bf16.msra.mxu1 %v9125_v44  ;;  %v9145_v44 = vpack.c.bf16 %v3031_v43, %v3030_v42  ;;  %v3040_v42 = vld [vmem:[#allocation4 + $0x70] sm:$0xff]  ;;  %v3041_v43 = vld [vmem:[#allocation4 + $0x78] sm:$0xff] }
 0x518   : > { %9130 = vmatprep.subr.bf16.mxu1 %v9129_v47 }
 0x51b   : > { %9132 = vmatpush3.bf16.msra.mxu1 %v9129_v47  ;;  %v9149_v47 = vpack.c.bf16 %v3033_v46, %v3032_v45  ;;  %v3210_v45 = vld [vmem:[#allocation6] sm:$0xff]  ;;  %v3211_v46 = vld [vmem:[#allocation6 + $0x8] sm:$0xff] }
 0x51c   : > { %9134 = vmatprep.subr.bf16.mxu1 %v9133_v35 }
 0x51f   : > { %9136 = vmatpush3.bf16.msra.mxu1 %v9133_v35 }
 0x5cb   : > { %v7803_v49 = vpop.f32.mrb[16].mxu1 }
 0x5cc   : > { %v2569_v50 = vadd.f32 %v7803_v49, %v6808_v48  ;;  %v2563_v51 = vpop.f32.mrb[17].mxu1  ;;  %v3035_v49 = vld [vmem:[#allocation4 + $0x48] sm:$0xff] }
 0x5cd   : > { %v2564_v52 = vadd.f32 %v6808_v48, %v2563_v51  ;;  %v3036_v51 = vld [vmem:[#allocation4 + $0x50] sm:$0xff] }
 0x5ce   : > { %v2643_v55 = vmax.f32 %v2569_v50, 0.0 }
 0x5cf   : > { %v2642_v53 = vmax.f32 %v2564_v52, 0.0  ;;  %v7806_v54 = vpop.f32.mrb[18].mxu1  ;;  %v3037_v52 = vld [vmem:[#allocation4 + $0x58] sm:$0xff] }
 0x5d0   : > { %v2579_v56 = vadd.f32 %v7806_v54, %v6808_v48  ;;  %v2573_v57 = vpop.f32.mrb[19].mxu1  ;;  %v3038_v54 = vld [vmem:[#allocation4 + $0x60] sm:$0xff] }
 0x5d1   : > { %v2574_v58 = vadd.f32 %v6808_v48, %v2573_v57  ;;  %7857 = vmatprep.mubr.f32.mxu0 %v2642_v53  ;;  %v9157_v53 = vpack.c.bf16 %v3037_v52, %v3036_v51  ;;  %v6809_v57 = vld [vmem:[%s11855_s18] ss:$0 sm:$0xff]  ;;  %v3215_v52 = vld [vmem:[#allocation6 + $0x28] sm:$0xff]  ;;  %s11859_s18 = sld [smem:[#allocation57_spill]] }
 0x5d2   : > { %7858 = vmatmul.mubr.f32.vlgmr.msra.gmra.mrb[32].mxu0 %v2643_v55  ;;  %v2645_v61 = vmax.f32 %v2579_v56, 0.0  ;;  %v3039_v55 = vld [vmem:[#allocation4 + $0x68] sm:$0xff]  ;;  %v3214_v51 = vld [vmem:[#allocation6 + $0x20] sm:$0xff] }
 0x5d3   : > { %v2644_v59 = vmax.f32 %v2574_v58, 0.0  ;;  %v7809_v60 = vpop.f32.mrb[20].mxu1  ;;  %9140 = vmatpush3.bf16.msra.mxu0 %v9137_v39  ;;  %v9161_v56 = vpack.c.bf16 %v3039_v55, %v3038_v54  ;;  %v3216_v54 = vld [vmem:[#allocation6 + $0x30] sm:$0xff]  ;;  %v3217_v55 = vld [vmem:[#allocation6 + $0x38] sm:$0xff] }
 0x5d4   : > { %v2589_v62 = vadd.f32 %v7809_v60, %v6808_v48  ;;  %v2583_v63 = vpop.f32.mrb[21].mxu1  ;;  %9142 = vmatprep.subr.bf16.mxu0 %v9141_v41 }
 0x5d5   : > { %v2584_v0 = vadd.f32 %v6808_v48, %v2583_v63  ;;  %7860 = vmatprep.mubr.f32.mxu0 %v2644_v59 }
 0x5d6   : > { %7861 = vmatmul.mubr.f32.gmra.mrb[34].mxu0 %v2645_v61  ;;  %v2647_v3 = vmax.f32 %v2589_v62, 0.0 }
 0x5d7   : > { %v2646_v1 = vmax.f32 %v2584_v0, 0.0  ;;  %v7812_v2 = vpop.f32.mrb[22].mxu1  ;;  %9144 = vmatpush3.bf16.msra.mxu0 %v9141_v41 }
 0x5d8   : > { %v2599_v4 = vadd.f32 %v7812_v2, %v6808_v48  ;;  %v2593_v5 = vpop.f32.mrb[23].mxu1  ;;  %9146 = vmatprep.subr.bf16.mxu0 %v9145_v44 }
 0x5d9   : > { %v2594_v6 = vadd.f32 %v6808_v48, %v2593_v5  ;;  %7863 = vmatprep.mubr.f32.mxu0 %v2646_v1 }
 0x5da   : > { %7864 = vmatmul.mubr.f32.gmra.mrb[36].mxu0 %v2647_v3  ;;  %v2649_v9 = vmax.f32 %v2599_v4, 0.0 }
 0x5db   : > { %v2648_v7 = vmax.f32 %v2594_v6, 0.0  ;;  %v7815_v8 = vpop.f32.mrb[24].mxu1  ;;  %9148 = vmatpush3.bf16.msra.mxu0 %v9145_v44  ;;  %v9165_v44 = vpack.c.bf16 %v3041_v43, %v3040_v42 }
 0x5dc   : > { %v2609_v10 = vadd.f32 %v7815_v8, %v6808_v48  ;;  %v2603_v11 = vpop.f32.mrb[25].mxu1  ;;  %9150 = vmatprep.subr.bf16.mxu0 %v9149_v47 }
 0x5dd   : > { %v2604_v12 = vadd.f32 %v6808_v48, %v2603_v11  ;;  %7866 = vmatprep.mubr.f32.mxu0 %v2648_v7 }
 0x5de   : > { %7867 = vmatmul.mubr.f32.gmra.mrb[38].mxu0 %v2649_v9  ;;  %v2651_v15 = vmax.f32 %v2609_v10, 0.0 }
 0x5df   : > { %v2650_v13 = vmax.f32 %v2604_v12, 0.0  ;;  %v7818_v14 = vpop.f32.mrb[26].mxu1  ;;  %9152 = vmatpush3.bf16.msra.mxu0 %v9149_v47  ;;  %v3212_v47 = vld [vmem:[#allocation6 + $0x10] sm:$0xff] }
 0x5e0   : > { %v2619_v16 = vadd.f32 %v7818_v14, %v6808_v48  ;;  %v2613_v17 = vpop.f32.mrb[27].mxu1 }
 0x5e1   : > { %v2614_v18 = vadd.f32 %v6808_v48, %v2613_v17  ;;  %7869 = vmatprep.mubr.f32.mxu0 %v2650_v13 }
 0x5e2   : > { %7870 = vmatmul.mubr.f32.gmra.mrb[40].mxu0 %v2651_v15  ;;  %v2653_v21 = vmax.f32 %v2619_v16, 0.0 }
 0x5e3   : > { %v2652_v19 = vmax.f32 %v2614_v18, 0.0  ;;  %v7821_v20 = vpop.f32.mrb[28].mxu1 }
 0x5e4   : > { %v2629_v22 = vadd.f32 %v7821_v20, %v6808_v48  ;;  %v2623_v23 = vpop.f32.mrb[29].mxu1 }
 0x5e5   : > { %v2624_v24 = vadd.f32 %v6808_v48, %v2623_v23  ;;  %7872 = vmatprep.mubr.f32.mxu0 %v2652_v19 }
 0x5e6   : > { %7873 = vmatmul.mubr.f32.gmra.mrb[42].mxu0 %v2653_v21  ;;  %v2655_v27 = vmax.f32 %v2629_v22, 0.0 }
 0x5e7   : > { %v2654_v25 = vmax.f32 %v2624_v24, 0.0  ;;  %v7824_v26 = vpop.f32.mrb[30].mxu1 }
 0x5e8   : > { %v2639_v28 = vadd.f32 %v7824_v26, %v6808_v48  ;;  %v2633_v29 = vpop.f32.mrb[31].mxu1 }
 0x5e9   : > { %v2634_v30 = vadd.f32 %v6808_v48, %v2633_v29  ;;  %7875 = vmatprep.mubr.f32.mxu0 %v2654_v25  ;;  %v3034_v48 = vld [vmem:[#allocation4 + $0x40] sm:$0xff] }
 0x5ea   : > { %7876 = vmatmul.mubr.f32.gmra.mrb[44].mxu0 %v2655_v27  ;;  %v2657_v32 = vmax.f32 %v2639_v28, 0.0  ;;  %v9153_v50 = vpack.c.bf16 %v3035_v49, %v3034_v48  ;;  %v9169_v48 = vpack.c.bf16 %v3211_v46, %v3210_v45  ;;  %v3213_v49 = vld [vmem:[#allocation6 + $0x18] sm:$0xff]  ;;  %v1916_v45 = vld [vmem:[%s11432_s8 + $0x50] sm:$0xff] }
 0x5eb   : > { %v2656_v31 = vmax.f32 %v2634_v30, 0.0 }
 0x5ec   : > { %9154 = vmatprep.subr.bf16.mxu0 %v9153_v50  ;;  %9170 = vmatprep.subr.bf16.mxu1 %v9169_v48 }
 0x5ed   : > { %7878 = vmatprep.mubr.f32.mxu0 %v2656_v31  ;;  %9156 = vmatpush3.bf16.msra.mxu0 %v9153_v50  ;;  %v9173_v50 = vpack.c.bf16 %v3213_v49, %v3212_v47  ;;  %v1917_v47 = vld [vmem:[%s11432_s8 + $0x58] sm:$0xff] }
 0x5ee   : > { %7879 = vmatmul.mubr.f32.gmra.mrb[46].mxu0 %v2657_v32  ;;  %9158 = vmatprep.subr.bf16.mxu0 %v9157_v53 }
 0x5f1   : > { %9160 = vmatpush3.bf16.msra.mxu0 %v9157_v53  ;;  %v9177_v53 = vpack.c.bf16 %v3215_v52, %v3214_v51 }
 0x5f2   : > { %9162 = vmatprep.subr.bf16.mxu0 %v9161_v56 }
 0x5f5   : > { %9164 = vmatpush3.bf16.msra.mxu0 %v9161_v56  ;;  %v9181_v56 = vpack.c.bf16 %v3217_v55, %v3216_v54  ;;  %v1919_v55 = vld [vmem:[%s11432_s8 + $0x68] sm:$0xff] }
 0x5f6   : > { %9166 = vmatprep.subr.bf16.mxu0 %v9165_v44 }
 0x5f9   : > { %9168 = vmatpush3.bf16.msra.mxu0 %v9165_v44 }
 0x6a5   : > { %v7859_v58 = vpop.f32.mrb[32].mxu0 }
 0x6a6   : > { %v2753_v59 = vadd.f32 %v7859_v58, %v6809_v57  ;;  %v2747_v60 = vpop.f32.mrb[33].mxu0  ;;  %v3219_v58 = vld [vmem:[#allocation6 + $0x48] sm:$0xff] }
 0x6a7   : > { %v2748_v61 = vadd.f32 %v6809_v57, %v2747_v60  ;;  %v3220_v60 = vld [vmem:[#allocation6 + $0x50] sm:$0xff] }
 0x6a8   : > { %v2827_v0 = vmax.f32 %v2753_v59, 0.0 }
 0x6a9   : > { %v2826_v62 = vmax.f32 %v2748_v61, 0.0  ;;  %v7862_v63 = vpop.f32.mrb[34].mxu0  ;;  %v3221_v61 = vld [vmem:[#allocation6 + $0x58] sm:$0xff] }
 0x6aa   : > { %v2763_v1 = vadd.f32 %v7862_v63, %v6809_v57  ;;  %v2757_v2 = vpop.f32.mrb[35].mxu0  ;;  %v3222_v63 = vld [vmem:[#allocation6 + $0x60] sm:$0xff] }
 0x6ab   : > { %v2758_v3 = vadd.f32 %v6809_v57, %v2757_v2  ;;  %7913 = vmatprep.mubr.f32.mxu1 %v2826_v62  ;;  %v9189_v62 = vpack.c.bf16 %v3221_v61, %v3220_v60  ;;  %v11435_v2 = vld [vmem:[%s11857_s3] ss:$0 sm:$0xff]  ;;  %v1920_v61 = vld [vmem:[%s11432_s8 + $0x70] sm:$0xff]  ;;  %s11861_s3 = sld [smem:[#allocation60_spill]] }
 0x6ac   : > { %7914 = vmatmul.mubr.f32.vlgmr.msra.gmra.mrb[32].mxu1 %v2827_v0  ;;  %v2829_v6 = vmax.f32 %v2763_v1, 0.0  ;;  %v3223_v0 = vld [vmem:[#allocation6 + $0x68] sm:$0xff] }
 0x6ad   : > { %v2828_v4 = vmax.f32 %v2758_v3, 0.0  ;;  %v7865_v5 = vpop.f32.mrb[36].mxu0  ;;  %9172 = vmatpush3.bf16.msra.mxu1 %v9169_v48  ;;  %v9193_v1 = vpack.c.bf16 %v3223_v0, %v3222_v63  ;;  %v1921_v63 = vld [vmem:[%s11432_s8 + $0x78] sm:$0xff] }
 0x6ae   : > { %v2773_v7 = vadd.f32 %v7865_v5, %v6809_v57  ;;  %v2767_v8 = vpop.f32.mrb[37].mxu0  ;;  %9174 = vmatprep.subr.bf16.mxu1 %v9173_v50  ;;  %v1906_v5 = vld [vmem:[%s11432_s8] sm:$0xff] }
 0x6af   : > { %v2768_v9 = vadd.f32 %v6809_v57, %v2767_v8  ;;  %7916 = vmatprep.mubr.f32.mxu1 %v2828_v4 }
 0x6b0   : > { %7917 = vmatmul.mubr.f32.gmra.mrb[34].mxu1 %v2829_v6  ;;  %v2831_v12 = vmax.f32 %v2773_v7, 0.0  ;;  %v1907_v7 = vld [vmem:[%s11432_s8 + $0x8] sm:$0xff] }
 0x6b1   : > { %v2830_v10 = vmax.f32 %v2768_v9, 0.0  ;;  %v7868_v11 = vpop.f32.mrb[38].mxu0  ;;  %9176 = vmatpush3.bf16.msra.mxu1 %v9173_v50 }
 0x6b2   : > { %v2783_v13 = vadd.f32 %v7868_v11, %v6809_v57  ;;  %v2777_v14 = vpop.f32.mrb[39].mxu0  ;;  %9178 = vmatprep.subr.bf16.mxu1 %v9177_v53 }
 0x6b3   : > { %v2778_v15 = vadd.f32 %v6809_v57, %v2777_v14  ;;  %7919 = vmatprep.mubr.f32.mxu1 %v2830_v10 }
 0x6b4   : > { %7920 = vmatmul.mubr.f32.gmra.mrb[36].mxu1 %v2831_v12  ;;  %v2833_v18 = vmax.f32 %v2783_v13, 0.0  ;;  %v1908_v13 = vld [vmem:[%s11432_s8 + $0x10] sm:$0xff] }
 0x6b5   : > { %v2832_v16 = vmax.f32 %v2778_v15, 0.0  ;;  %v7871_v17 = vpop.f32.mrb[40].mxu0  ;;  %9180 = vmatpush3.bf16.msra.mxu1 %v9177_v53  ;;  %v1909_v15 = vld [vmem:[%s11432_s8 + $0x18] sm:$0xff]  ;;  %v1918_v53 = vld [vmem:[%s11432_s8 + $0x60] sm:$0xff] }
 0x6b6   : > { %v2793_v19 = vadd.f32 %v7871_v17, %v6809_v57  ;;  %v2787_v20 = vpop.f32.mrb[41].mxu0  ;;  %9182 = vmatprep.subr.bf16.mxu1 %v9181_v56 }
 0x6b7   : > { %v2788_v21 = vadd.f32 %v6809_v57, %v2787_v20  ;;  %7922 = vmatprep.mubr.f32.mxu1 %v2832_v16 }
 0x6b8   : > { %7923 = vmatmul.mubr.f32.gmra.mrb[38].mxu1 %v2833_v18  ;;  %v2835_v24 = vmax.f32 %v2793_v19, 0.0 }
 0x6b9   : > { %v2834_v22 = vmax.f32 %v2788_v21, 0.0  ;;  %v7874_v23 = vpop.f32.mrb[42].mxu0  ;;  %9184 = vmatpush3.bf16.msra.mxu1 %v9181_v56  ;;  %v1910_v21 = vld [vmem:[%s11432_s8 + $0x20] sm:$0xff] }
 0x6ba   : > { %v2803_v25 = vadd.f32 %v7874_v23, %v6809_v57  ;;  %v2797_v26 = vpop.f32.mrb[43].mxu0  ;;  %v1911_v23 = vld [vmem:[%s11432_s8 + $0x28] sm:$0xff] }
 0x6bb   : > { %v2798_v27 = vadd.f32 %v6809_v57, %v2797_v26  ;;  %7925 = vmatprep.mubr.f32.mxu1 %v2834_v22 }
 0x6bc   : > { %7926 = vmatmul.mubr.f32.gmra.mrb[40].mxu1 %v2835_v24  ;;  %v2837_v30 = vmax.f32 %v2803_v25, 0.0 }
 0x6bd   : > { %v2836_v28 = vmax.f32 %v2798_v27, 0.0  ;;  %v7877_v29 = vpop.f32.mrb[44].mxu0 }
 0x6be   : > { %v2813_v31 = vadd.f32 %v7877_v29, %v6809_v57  ;;  %v2807_v32 = vpop.f32.mrb[45].mxu0  ;;  %v1912_v29 = vld [vmem:[%s11432_s8 + $0x30] sm:$0xff] }
 0x6bf   : > { %v2808_v33 = vadd.f32 %v6809_v57, %v2807_v32  ;;  %7928 = vmatprep.mubr.f32.mxu1 %v2836_v28 }
 0x6c0   : > { %7929 = vmatmul.mubr.f32.gmra.mrb[42].mxu1 %v2837_v30  ;;  %v2839_v36 = vmax.f32 %v2813_v31, 0.0  ;;  %v1913_v31 = vld [vmem:[%s11432_s8 + $0x38] sm:$0xff] }
 0x6c1   : > { %v2838_v34 = vmax.f32 %v2808_v33, 0.0  ;;  %v7880_v35 = vpop.f32.mrb[46].mxu0 }
 0x6c2   : > { %v2823_v37 = vadd.f32 %v7880_v35, %v6809_v57  ;;  %v2817_v38 = vpop.f32.mrb[47].mxu0 }
 0x6c3   : > { %v2818_v39 = vadd.f32 %v6809_v57, %v2817_v38  ;;  %7931 = vmatprep.mubr.f32.mxu1 %v2838_v34  ;;  %v3218_v57 = vld [vmem:[#allocation6 + $0x40] sm:$0xff] }
 0x6c4   : > { %7932 = vmatmul.mubr.f32.gmra.mrb[44].mxu1 %v2839_v36  ;;  %v2841_v41 = vmax.f32 %v2823_v37, 0.0  ;;  %v9185_v59 = vpack.c.bf16 %v3219_v58, %v3218_v57  ;;  %v1914_v37 = vld [vmem:[%s11432_s8 + $0x40] sm:$0xff] }
 0x6c5   : > { %v2840_v40 = vmax.f32 %v2818_v39, 0.0  ;;  %v1915_v39 = vld [vmem:[%s11432_s8 + $0x48] sm:$0xff]  ;;  %s11862_s8 = sld [smem:[#allocation62_spill]] }
 0x6c6   : > { %9186 = vmatprep.subr.bf16.mxu1 %v9185_v59 }
 0x6c7   : > { %7934 = vmatprep.mubr.f32.mxu1 %v2840_v40  ;;  %9188 = vmatpush3.bf16.msra.mxu1 %v9185_v59 }
 0x6c8   : > { %7935 = vmatmul.mubr.f32.gmra.mrb[46].mxu1 %v2841_v41  ;;  %9190 = vmatprep.subr.bf16.mxu1 %v9189_v62 }
 0x6cb   : > { %9192 = vmatpush3.bf16.msra.mxu1 %v9189_v62 }
 0x6cc   : > { %9194 = vmatprep.subr.bf16.mxu1 %v9193_v1 }
 0x6cf   : > { %9196 = vmatpush3.bf16.msra.mxu1 %v9193_v1 }
 0x77f   : > { %v7915_v3 = vpop.f32.mrb[32].mxu1 }
 0x780   : > { %v2937_v4 = vadd.f32 %v7915_v3, %v11435_v2  ;;  %v2931_v6 = vpop.f32.mrb[33].mxu1 }
 0x781   : > { %v2932_v8 = vadd.f32 %v11435_v2, %v2931_v6 }
 0x782   : > { %v11443_v11 = vadd.f32 %v2937_v4, %v1907_v7  ;;  %v3224_v4 = vld [vmem:[#allocation6 + $0x70] sm:$0xff]  ;;  %v3394_v7 = vld [vmem:[#allocation7] sm:$0xff] }
 0x783   : > { %v11441_v9 = vadd.f32 %v2932_v8, %v1906_v5  ;;  %v7918_v10 = vpop.f32.mrb[34].mxu1  ;;  %v3225_v5 = vld [vmem:[#allocation6 + $0x78] sm:$0xff]  ;;  %v3395_v8 = vld [vmem:[#allocation7 + $0x8] sm:$0xff] }
 0x784   : > { %v2947_v12 = vadd.f32 %v7918_v10, %v11435_v2  ;;  %v2941_v14 = vpop.f32.mrb[35].mxu1  ;;  %v9197_v6 = vpack.c.bf16 %v3225_v5, %v3224_v4  ;;  %v9201_v10 = vpack.c.bf16 %v3395_v8, %v3394_v7 }
 0x785   : > { %v2942_v16 = vadd.f32 %v11435_v2, %v2941_v14  ;;  %7969 = vmatprep.mubr.f32.mxu0 %v11441_v9  ;;  %v3398_v14 = vld [vmem:[#allocation7 + $0x20] sm:$0xff] }
 0x786   : > { %7970 = vmatmul.mubr.f32.vlgmr.msra.gmra.mrb[48].mxu0 %v11443_v11  ;;  %v11453_v19 = vadd.f32 %v2947_v12, %v1909_v15  ;;  %9198 = vmatprep.subr.bf16.mxu1 %v9197_v6  ;;  %v3397_v12 = vld [vmem:[#allocation7 + $0x18] sm:$0xff]  ;;  %v3399_v15 = vld [vmem:[#allocation7 + $0x28] sm:$0xff] }
 0x787   : > { %v11451_v17 = vadd.f32 %v2942_v16, %v1908_v13  ;;  %v7921_v18 = vpop.f32.mrb[36].mxu1  ;;  %9200 = vmatpush3.bf16.msra.mxu1 %v9197_v6  ;;  %9202 = vmatprep.subr.bf16.mxu0 %v9201_v10  ;;  %v9209_v16 = vpack.c.bf16 %v3399_v15, %v3398_v14 }
 0x788   : > { %v2957_v20 = vadd.f32 %v7921_v18, %v11435_v2  ;;  %v2951_v22 = vpop.f32.mrb[37].mxu1  ;;  %9204 = vmatpush3.bf16.msra.mxu0 %v9201_v10  ;;  %v3400_v18 = vld [vmem:[#allocation7 + $0x30] sm:$0xff] }
 0x789   : > { %v2952_v24 = vadd.f32 %v11435_v2, %v2951_v22  ;;  %7972 = vmatprep.mubr.f32.mxu0 %v11451_v17  ;;  %v3402_v22 = vld [vmem:[#allocation7 + $0x40] sm:$0xff] }
 0x78a   : > { %7973 = vmatmul.mubr.f32.gmra.mrb[50].mxu0 %v11453_v19  ;;  %v11463_v27 = vadd.f32 %v2957_v20, %v1911_v23  ;;  %v3401_v20 = vld [vmem:[#allocation7 + $0x38] sm:$0xff]  ;;  %v3403_v23 = vld [vmem:[#allocation7 + $0x48] sm:$0xff] }
 0x78b   : > { %v11461_v25 = vadd.f32 %v2952_v24, %v1910_v21  ;;  %v7924_v26 = vpop.f32.mrb[38].mxu1  ;;  %v9213_v21 = vpack.c.bf16 %v3401_v20, %v3400_v18  ;;  %v9217_v24 = vpack.c.bf16 %v3403_v23, %v3402_v22 }
 0x78c   : > { %v2967_v28 = vadd.f32 %v7924_v26, %v11435_v2  ;;  %v2961_v30 = vpop.f32.mrb[39].mxu1  ;;  %v3404_v26 = vld [vmem:[#allocation7 + $0x50] sm:$0xff] }
 0x78d   : > { %v2962_v32 = vadd.f32 %v11435_v2, %v2961_v30  ;;  %7975 = vmatprep.mubr.f32.mxu0 %v11461_v25  ;;  %v3406_v30 = vld [vmem:[#allocation7 + $0x60] sm:$0xff] }
 0x78e   : > { %7976 = vmatmul.mubr.f32.gmra.mrb[52].mxu0 %v11463_v27  ;;  %v11473_v35 = vadd.f32 %v2967_v28, %v1913_v31  ;;  %v3405_v28 = vld [vmem:[#allocation7 + $0x58] sm:$0xff]  ;;  %v3407_v31 = vld [vmem:[#allocation7 + $0x68] sm:$0xff] }
 0x78f   : > { %v11471_v33 = vadd.f32 %v2962_v32, %v1912_v29  ;;  %v7927_v34 = vpop.f32.mrb[40].mxu1  ;;  %v9221_v29 = vpack.c.bf16 %v3405_v28, %v3404_v26  ;;  %v9225_v32 = vpack.c.bf16 %v3407_v31, %v3406_v30 }
 0x790   : > { %v2977_v36 = vadd.f32 %v7927_v34, %v11435_v2  ;;  %v2971_v38 = vpop.f32.mrb[41].mxu1  ;;  %v6811_v34 = vld [vmem:[%s11858_s23] ss:$0 sm:$0xff]  ;;  %s11863_s23 = sld [smem:[#allocation64_spill]] }
 0x791   : > { %v2972_v40 = vadd.f32 %v11435_v2, %v2971_v38  ;;  %7978 = vmatprep.mubr.f32.mxu0 %v11471_v33 }
 0x792   : > { %7979 = vmatmul.mubr.f32.gmra.mrb[54].mxu0 %v11473_v35  ;;  %v11483_v43 = vadd.f32 %v2977_v36, %v1915_v39 }
 0x793   : > { %v11481_v41 = vadd.f32 %v2972_v40, %v1914_v37  ;;  %v7930_v42 = vpop.f32.mrb[42].mxu1 }
 0x794   : > { %v2987_v44 = vadd.f32 %v7930_v42, %v11435_v2  ;;  %v2981_v46 = vpop.f32.mrb[43].mxu1 }
 0x795   : > { %v2982_v48 = vadd.f32 %v11435_v2, %v2981_v46  ;;  %7981 = vmatprep.mubr.f32.mxu0 %v11481_v41 }
 0x796   : > { %7982 = vmatmul.mubr.f32.gmra.mrb[56].mxu0 %v11483_v43  ;;  %v11493_v51 = vadd.f32 %v2987_v44, %v1917_v47 }
 0x797   : > { %v11491_v49 = vadd.f32 %v2982_v48, %v1916_v45  ;;  %v7933_v50 = vpop.f32.mrb[44].mxu1 }
 0x798   : > { %v2997_v52 = vadd.f32 %v7933_v50, %v11435_v2  ;;  %v2991_v54 = vpop.f32.mrb[45].mxu1 }
 0x799   : > { %v2992_v56 = vadd.f32 %v11435_v2, %v2991_v54  ;;  %7984 = vmatprep.mubr.f32.mxu0 %v11491_v49 }
 0x79a   : > { %7985 = vmatmul.mubr.f32.gmra.mrb[58].mxu0 %v11493_v51  ;;  %v11503_v59 = vadd.f32 %v2997_v52, %v1919_v55 }
 0x79b   : > { %v11501_v57 = vadd.f32 %v2992_v56, %v1918_v53  ;;  %v7936_v58 = vpop.f32.mrb[46].mxu1 }
 0x79c   : > { %v3007_v60 = vadd.f32 %v7936_v58, %v11435_v2  ;;  %v3001_v62 = vpop.f32.mrb[47].mxu1 }
 0x79d   : > { %v3002_v0 = vadd.f32 %v11435_v2, %v3001_v62  ;;  %7987 = vmatprep.mubr.f32.mxu0 %v11501_v57  ;;  %v3396_v2 = vld [vmem:[#allocation7 + $0x10] sm:$0xff] }
 0x79e   : > { %7988 = vmatmul.mubr.f32.gmra.mrb[60].mxu0 %v11503_v59  ;;  %v11513_v3 = vadd.f32 %v3007_v60, %v1921_v63  ;;  %v9205_v13 = vpack.c.bf16 %v3397_v12, %v3396_v2 }
 0x79f   : > { %v11511_v1 = vadd.f32 %v3002_v0, %v1920_v61 }
 0x7a0   : > { %9206 = vmatprep.subr.bf16.mxu0 %v9205_v13 }
 0x7a1   : > { %7990 = vmatprep.mubr.f32.mxu0 %v11511_v1  ;;  %9208 = vmatpush3.bf16.msra.mxu0 %v9205_v13 }
 0x7a2   : > { %7991 = vmatmul.mubr.f32.gmra.mrb[62].mxu0 %v11513_v3  ;;  %9210 = vmatprep.subr.bf16.mxu0 %v9209_v16 }
 0x7a5   : > { %9212 = vmatpush3.bf16.msra.mxu0 %v9209_v16 }
 0x7a6   : > { %9214 = vmatprep.subr.bf16.mxu0 %v9213_v21 }
 0x7a9   : > { %9216 = vmatpush3.bf16.msra.mxu0 %v9213_v21 }
 0x7aa   : > { %9218 = vmatprep.subr.bf16.mxu0 %v9217_v24 }
 0x7ad   : > { %9220 = vmatpush3.bf16.msra.mxu0 %v9217_v24 }
 0x7ae   : > { %9222 = vmatprep.subr.bf16.mxu0 %v9221_v29 }
 0x7b1   : > { %9224 = vmatpush3.bf16.msra.mxu0 %v9221_v29 }
 0x7b2   : > { %9226 = vmatprep.subr.bf16.mxu0 %v9225_v32 }
 0x7b5   : > { %9228 = vmatpush3.bf16.msra.mxu0 %v9225_v32 }
 0x859   : > { %v7971_v36 = vpop.f32.mrb[48].mxu0 }
 0x85a   : > { %v3121_v37 = vadd.f32 %v7971_v36, %v6811_v34  ;;  %v3115_v38 = vpop.f32.mrb[49].mxu0 }
 0x85b   : > { %v3116_v39 = vadd.f32 %v6811_v34, %v3115_v38  ;;  %v3409_v38 = vld [vmem:[#allocation7 + $0x78] sm:$0xff] }
 0x85c   : > { %v3195_v44 = vmax.f32 %v3121_v37, 0.0  ;;  %v3408_v37 = vld [vmem:[#allocation7 + $0x70] sm:$0xff] }
 0x85d   : > { %v3194_v40 = vmax.f32 %v3116_v39, 0.0  ;;  %v7974_v42 = vpop.f32.mrb[50].mxu0  ;;  %v9229_v39 = vpack.c.bf16 %v3409_v38, %v3408_v37 }
 0x85e   : > { %v3131_v45 = vadd.f32 %v7974_v42, %v6811_v34  ;;  %v3125_v46 = vpop.f32.mrb[51].mxu0  ;;  %v3579_v42 = vld [vmem:[#allocation9 + $0x8] sm:$0xff] }
 0x85f   : > { %v3126_v47 = vadd.f32 %v6811_v34, %v3125_v46  ;;  %8025 = vmatprep.mubr.f32.mxu1 %v3194_v40  ;;  %9230 = vmatprep.subr.bf16.mxu0 %v9229_v39  ;;  %v3578_v40 = vld [vmem:[#allocation9] sm:$0xff]  ;;  %v3581_v46 = vld [vmem:[#allocation9 + $0x18] sm:$0xff] }
 0x860   : > { %8026 = vmatmul.mubr.f32.vlgmr.msra.gmra.mrb[48].mxu1 %v3195_v44  ;;  %v3197_v52 = vmax.f32 %v3131_v45, 0.0  ;;  %9232 = vmatpush3.bf16.msra.mxu0 %v9229_v39  ;;  %v3580_v44 = vld [vmem:[#allocation9 + $0x10] sm:$0xff]  ;;  %v9233_v45 = vpack.c.bf16 %v3579_v42, %v3578_v40 }
 0x861   : > { %v3196_v48 = vmax.f32 %v3126_v47, 0.0  ;;  %v7977_v50 = vpop.f32.mrb[52].mxu0  ;;  %v9237_v47 = vpack.c.bf16 %v3581_v46, %v3580_v44 }
 0x862   : > { %v3141_v53 = vadd.f32 %v7977_v50, %v6811_v34  ;;  %v3135_v54 = vpop.f32.mrb[53].mxu0  ;;  %v3583_v50 = vld [vmem:[#allocation9 + $0x28] sm:$0xff]  ;;  %9234 = vmatprep.subr.bf16.mxu1 %v9233_v45 }
 0x863   : > { %v3136_v55 = vadd.f32 %v6811_v34, %v3135_v54  ;;  %8028 = vmatprep.mubr.f32.mxu1 %v3196_v48  ;;  %v3582_v48 = vld [vmem:[#allocation9 + $0x20] sm:$0xff]  ;;  %9236 = vmatpush3.bf16.msra.mxu1 %v9233_v45 }
 0x864   : > { %8029 = vmatmul.mubr.f32.gmra.mrb[50].mxu1 %v3197_v52  ;;  %v3199_v60 = vmax.f32 %v3141_v53, 0.0  ;;  %9238 = vmatprep.subr.bf16.mxu1 %v9237_v47  ;;  %v3584_v52 = vld [vmem:[#allocation9 + $0x30] sm:$0xff]  ;;  %v3585_v53 = vld [vmem:[#allocation9 + $0x38] sm:$0xff] }
 0x865   : > { %v3198_v56 = vmax.f32 %v3136_v55, 0.0  ;;  %v7980_v58 = vpop.f32.mrb[54].mxu0  ;;  %v9245_v54 = vpack.c.bf16 %v3585_v53, %v3584_v52  ;;  %v3586_v55 = vld [vmem:[#allocation9 + $0x40] sm:$0xff] }
 0x866   : > { %v3151_v61 = vadd.f32 %v7980_v58, %v6811_v34  ;;  %v3145_v62 = vpop.f32.mrb[55].mxu0 }
 0x867   : > { %v3146_v63 = vadd.f32 %v6811_v34, %v3145_v62  ;;  %8031 = vmatprep.mubr.f32.mxu1 %v3198_v56  ;;  %9240 = vmatpush3.bf16.msra.mxu1 %v9237_v47  ;;  %v3587_v56 = vld [vmem:[#allocation9 + $0x48] sm:$0xff] }
 0x868   : > { %8032 = vmatmul.mubr.f32.gmra.mrb[52].mxu1 %v3199_v60  ;;  %v3201_v5 = vmax.f32 %v3151_v61, 0.0  ;;  %v9249_v58 = vpack.c.bf16 %v3587_v56, %v3586_v55  ;;  %v3588_v60 = vld [vmem:[#allocation9 + $0x50] sm:$0xff]  ;;  %v3589_v61 = vld [vmem:[#allocation9 + $0x58] sm:$0xff] }
 0x869   : > { %v3200_v0 = vmax.f32 %v3146_v63, 0.0  ;;  %v7983_v4 = vpop.f32.mrb[56].mxu0  ;;  %v9253_v62 = vpack.c.bf16 %v3589_v61, %v3588_v60  ;;  %v3590_v63 = vld [vmem:[#allocation9 + $0x60] sm:$0xff] }
 0x86a   : > { %v3161_v6 = vadd.f32 %v7983_v4, %v6811_v34  ;;  %v3155_v7 = vpop.f32.mrb[57].mxu0 }
 0x86b   : > { %v3156_v8 = vadd.f32 %v6811_v34, %v3155_v7  ;;  %8034 = vmatprep.mubr.f32.mxu1 %v3200_v0  ;;  %v3591_v0 = vld [vmem:[#allocation9 + $0x68] sm:$0xff] }
 0x86c   : > { %8035 = vmatmul.mubr.f32.gmra.mrb[54].mxu1 %v3201_v5  ;;  %v3203_v12 = vmax.f32 %v3161_v6, 0.0  ;;  %v9257_v4 = vpack.c.bf16 %v3591_v0, %v3590_v63  ;;  %v6812_v5 = vld [vmem:[%s11859_s18] ss:$0 sm:$0xff]  ;;  %s11864_s18 = sld [smem:[#allocation65_spill]] }
 0x86d   : > { %v3202_v2 = vmax.f32 %v3156_v8, 0.0  ;;  %v7986_v10 = vpop.f32.mrb[58].mxu0 }
 0x86e   : > { %v3171_v13 = vadd.f32 %v7986_v10, %v6811_v34  ;;  %v3165_v14 = vpop.f32.mrb[59].mxu0 }
 0x86f   : > { %v3166_v15 = vadd.f32 %v6811_v34, %v3165_v14  ;;  %8037 = vmatprep.mubr.f32.mxu1 %v3202_v2 }
 0x870   : > { %8038 = vmatmul.mubr.f32.gmra.mrb[56].mxu1 %v3203_v12  ;;  %v3205_v20 = vmax.f32 %v3171_v13, 0.0 }
 0x871   : > { %v3204_v16 = vmax.f32 %v3166_v15, 0.0  ;;  %v7989_v18 = vpop.f32.mrb[60].mxu0 }
 0x872   : > { %v3181_v21 = vadd.f32 %v7989_v18, %v6811_v34  ;;  %v3175_v22 = vpop.f32.mrb[61].mxu0 }
 0x873   : > { %v3176_v23 = vadd.f32 %v6811_v34, %v3175_v22  ;;  %8040 = vmatprep.mubr.f32.mxu1 %v3204_v16 }
 0x874   : > { %8041 = vmatmul.mubr.f32.gmra.mrb[58].mxu1 %v3205_v20  ;;  %v3207_v28 = vmax.f32 %v3181_v21, 0.0 }
 0x875   : > { %v3206_v24 = vmax.f32 %v3176_v23, 0.0  ;;  %v7992_v26 = vpop.f32.mrb[62].mxu0 }
 0x876   : > { %v3191_v29 = vadd.f32 %v7992_v26, %v6811_v34  ;;  %v3185_v30 = vpop.f32.mrb[63].mxu0 }
 0x877   : > { %v3186_v31 = vadd.f32 %v6811_v34, %v3185_v30  ;;  %8043 = vmatprep.mubr.f32.mxu1 %v3206_v24  ;;  %v9241_v34 = vpack.c.bf16 %v3583_v50, %v3582_v48 }
 0x878   : > { %8044 = vmatmul.mubr.f32.gmra.mrb[60].mxu1 %v3207_v28  ;;  %v3209_v36 = vmax.f32 %v3191_v29, 0.0 }
 0x879   : > { %v3208_v32 = vmax.f32 %v3186_v31, 0.0  ;;  %9242 = vmatprep.subr.bf16.mxu1 %v9241_v34 }
 0x87a   : > { %9244 = vmatpush3.bf16.msra.mxu1 %v9241_v34 }
 0x87b   : > { %8046 = vmatprep.mubr.f32.mxu1 %v3208_v32  ;;  %9246 = vmatprep.subr.bf16.mxu1 %v9245_v54 }
 0x87c   : > { %8047 = vmatmul.mubr.f32.gmra.mrb[62].mxu1 %v3209_v36 }
 0x87e   : > { %9248 = vmatpush3.bf16.msra.mxu1 %v9245_v54 }
 0x87f   : > { %9250 = vmatprep.subr.bf16.mxu1 %v9249_v58 }
 0x882   : > { %9252 = vmatpush3.bf16.msra.mxu1 %v9249_v58 }
 0x883   : > { %9254 = vmatprep.subr.bf16.mxu1 %v9253_v62 }
 0x886   : > { %9256 = vmatpush3.bf16.msra.mxu1 %v9253_v62 }
 0x887   : > { %9258 = vmatprep.subr.bf16.mxu1 %v9257_v4 }
 0x88a   : > { %9260 = vmatpush3.bf16.msra.mxu1 %v9257_v4 }
 0x933   : > { %v8027_v6 = vpop.f32.mrb[48].mxu1 }
 0x934   : > { %v3305_v7 = vadd.f32 %v8027_v6, %v6812_v5  ;;  %v3299_v8 = vpop.f32.mrb[49].mxu1 }
 0x935   : > { %v3300_v2 = vadd.f32 %v6812_v5, %v3299_v8  ;;  %v3593_v8 = vld [vmem:[#allocation9 + $0x78] sm:$0xff] }
 0x936   : > { %v3379_v13 = vmax.f32 %v3305_v7, 0.0  ;;  %v3592_v7 = vld [vmem:[#allocation9 + $0x70] sm:$0xff] }
 0x937   : > { %v3378_v10 = vmax.f32 %v3300_v2, 0.0  ;;  %v8030_v12 = vpop.f32.mrb[50].mxu1  ;;  %v9261_v2 = vpack.c.bf16 %v3593_v8, %v3592_v7 }
 0x938   : > { %v3315_v14 = vadd.f32 %v8030_v12, %v6812_v5  ;;  %v3309_v15 = vpop.f32.mrb[51].mxu1  ;;  %v3763_v12 = vld [vmem:[#allocation10 + $0x8] sm:$0xff] }
 0x939   : > { %v3310_v16 = vadd.f32 %v6812_v5, %v3309_v15  ;;  %8081 = vmatprep.mubr.f32.mxu0 %v3378_v10  ;;  %9262 = vmatprep.subr.bf16.mxu1 %v9261_v2  ;;  %v3762_v10 = vld [vmem:[#allocation10] sm:$0xff]  ;;  %v3765_v15 = vld [vmem:[#allocation10 + $0x18] sm:$0xff] }
 0x93a   : > { %8082 = vmatmul.mubr.f32.vlgmr.msra.gmra.mrb[64].mxu0 %v3379_v13  ;;  %v3381_v21 = vmax.f32 %v3315_v14, 0.0  ;;  %9264 = vmatpush3.bf16.msra.mxu1 %v9261_v2  ;;  %v3764_v13 = vld [vmem:[#allocation10 + $0x10] sm:$0xff]  ;;  %v9265_v14 = vpack.c.bf16 %v3763_v12, %v3762_v10 }
 0x93b   : > { %v3380_v18 = vmax.f32 %v3310_v16, 0.0  ;;  %v8033_v20 = vpop.f32.mrb[52].mxu1  ;;  %v9269_v16 = vpack.c.bf16 %v3765_v15, %v3764_v13 }
 0x93c   : > { %v3325_v22 = vadd.f32 %v8033_v20, %v6812_v5  ;;  %v3319_v23 = vpop.f32.mrb[53].mxu1  ;;  %v3767_v20 = vld [vmem:[#allocation10 + $0x28] sm:$0xff]  ;;  %9266 = vmatprep.subr.bf16.mxu0 %v9265_v14 }
 0x93d   : > { %v3320_v24 = vadd.f32 %v6812_v5, %v3319_v23  ;;  %8084 = vmatprep.mubr.f32.mxu0 %v3380_v18  ;;  %v3766_v18 = vld [vmem:[#allocation10 + $0x20] sm:$0xff]  ;;  %9268 = vmatpush3.bf16.msra.mxu0 %v9265_v14 }
 0x93e   : > { %8085 = vmatmul.mubr.f32.gmra.mrb[66].mxu0 %v3381_v21  ;;  %v3383_v29 = vmax.f32 %v3325_v22, 0.0  ;;  %9270 = vmatprep.subr.bf16.mxu0 %v9269_v16  ;;  %v3768_v21 = vld [vmem:[#allocation10 + $0x30] sm:$0xff]  ;;  %v3769_v22 = vld [vmem:[#allocation10 + $0x38] sm:$0xff] }
 0x93f   : > { %v3382_v26 = vmax.f32 %v3320_v24, 0.0  ;;  %v8036_v28 = vpop.f32.mrb[54].mxu1  ;;  %v9277_v23 = vpack.c.bf16 %v3769_v22, %v3768_v21  ;;  %v3770_v24 = vld [vmem:[#allocation10 + $0x40] sm:$0xff] }
 0x940   : > { %v3335_v30 = vadd.f32 %v8036_v28, %v6812_v5  ;;  %v3329_v31 = vpop.f32.mrb[55].mxu1 }
 0x941   : > { %v3330_v32 = vadd.f32 %v6812_v5, %v3329_v31  ;;  %8087 = vmatprep.mubr.f32.mxu0 %v3382_v26  ;;  %9272 = vmatpush3.bf16.msra.mxu0 %v9269_v16  ;;  %v3771_v26 = vld [vmem:[#allocation10 + $0x48] sm:$0xff] }
 0x942   : > { %8088 = vmatmul.mubr.f32.gmra.mrb[68].mxu0 %v3383_v29  ;;  %v3385_v38 = vmax.f32 %v3335_v30, 0.0  ;;  %v9281_v28 = vpack.c.bf16 %v3771_v26, %v3770_v24  ;;  %v3772_v29 = vld [vmem:[#allocation10 + $0x50] sm:$0xff]  ;;  %v3773_v30 = vld [vmem:[#allocation10 + $0x58] sm:$0xff] }
 0x943   : > { %v3384_v36 = vmax.f32 %v3330_v32, 0.0  ;;  %v8039_v37 = vpop.f32.mrb[56].mxu1  ;;  %v9285_v31 = vpack.c.bf16 %v3773_v30, %v3772_v29  ;;  %v3774_v32 = vld [vmem:[#allocation10 + $0x60] sm:$0xff] }
 0x944   : > { %v3345_v39 = vadd.f32 %v8039_v37, %v6812_v5  ;;  %v3339_v40 = vpop.f32.mrb[57].mxu1 }
 0x945   : > { %v3340_v42 = vadd.f32 %v6812_v5, %v3339_v40  ;;  %8090 = vmatprep.mubr.f32.mxu0 %v3384_v36  ;;  %v3775_v36 = vld [vmem:[#allocation10 + $0x68] sm:$0xff] }
 0x946   : > { %8091 = vmatmul.mubr.f32.gmra.mrb[70].mxu0 %v3385_v38  ;;  %v3387_v46 = vmax.f32 %v3345_v39, 0.0  ;;  %v9289_v37 = vpack.c.bf16 %v3775_v36, %v3774_v32  ;;  %v6813_v38 = vld [vmem:[%s11860_s2] ss:$0 sm:$0xff]  ;;  %s11865_s2 = sld [smem:[#allocation67_spill]] }
 0x947   : > { %v3386_v44 = vmax.f32 %v3340_v42, 0.0  ;;  %v8042_v45 = vpop.f32.mrb[58].mxu1 }
 0x948   : > { %v3355_v47 = vadd.f32 %v8042_v45, %v6812_v5  ;;  %v3349_v48 = vpop.f32.mrb[59].mxu1 }
 0x949   : > { %v3350_v50 = vadd.f32 %v6812_v5, %v3349_v48  ;;  %8093 = vmatprep.mubr.f32.mxu0 %v3386_v44 }
 0x94a   : > { %8094 = vmatmul.mubr.f32.gmra.mrb[72].mxu0 %v3387_v46  ;;  %v3389_v53 = vmax.f32 %v3355_v47, 0.0 }
 0x94b   : > { %v3388_v34 = vmax.f32 %v3350_v50, 0.0  ;;  %v8045_v52 = vpop.f32.mrb[60].mxu1 }
 0x94c   : > { %v3365_v54 = vadd.f32 %v8045_v52, %v6812_v5  ;;  %v3359_v55 = vpop.f32.mrb[61].mxu1 }
 0x94d   : > { %v3360_v56 = vadd.f32 %v6812_v5, %v3359_v55  ;;  %8096 = vmatprep.mubr.f32.mxu0 %v3388_v34 }
 0x94e   : > { %8097 = vmatmul.mubr.f32.gmra.mrb[74].mxu0 %v3389_v53  ;;  %v3391_v61 = vmax.f32 %v3365_v54, 0.0 }
 0x94f   : > { %v3390_v58 = vmax.f32 %v3360_v56, 0.0  ;;  %v8048_v60 = vpop.f32.mrb[62].mxu1 }
 0x950   : > { %v3375_v62 = vadd.f32 %v8048_v60, %v6812_v5  ;;  %v3369_v63 = vpop.f32.mrb[63].mxu1 }
 0x951   : > { %v3370_v0 = vadd.f32 %v6812_v5, %v3369_v63  ;;  %8099 = vmatprep.mubr.f32.mxu0 %v3390_v58  ;;  %v9273_v5 = vpack.c.bf16 %v3767_v20, %v3766_v18 }
 0x952   : > { %8100 = vmatmul.mubr.f32.gmra.mrb[76].mxu0 %v3391_v61  ;;  %v3393_v6 = vmax.f32 %v3375_v62, 0.0 }
 0x953   : > { %v3392_v4 = vmax.f32 %v3370_v0, 0.0  ;;  %9274 = vmatprep.subr.bf16.mxu0 %v9273_v5 }
 0x954   : > { %9276 = vmatpush3.bf16.msra.mxu0 %v9273_v5 }
 0x955   : > { %8102 = vmatprep.mubr.f32.mxu0 %v3392_v4  ;;  %9278 = vmatprep.subr.bf16.mxu0 %v9277_v23 }
 0x956   : > { %8103 = vmatmul.mubr.f32.gmra.mrb[78].mxu0 %v3393_v6 }
 0x958   : > { %9280 = vmatpush3.bf16.msra.mxu0 %v9277_v23 }
 0x959   : > { %9282 = vmatprep.subr.bf16.mxu0 %v9281_v28 }
 0x95c   : > { %9284 = vmatpush3.bf16.msra.mxu0 %v9281_v28 }
 0x95d   : > { %9286 = vmatprep.subr.bf16.mxu0 %v9285_v31 }
 0x960   : > { %9288 = vmatpush3.bf16.msra.mxu0 %v9285_v31 }
 0x961   : > { %9290 = vmatprep.subr.bf16.mxu0 %v9289_v37 }
 0x964   : > { %9292 = vmatpush3.bf16.msra.mxu0 %v9289_v37 }
 0xa0d   : > { %v8083_v39 = vpop.f32.mrb[64].mxu0 }
 0xa0e   : > { %v3489_v40 = vadd.f32 %v8083_v39, %v6813_v38  ;;  %v3483_v42 = vpop.f32.mrb[65].mxu0 }
 0xa0f   : > { %v3484_v44 = vadd.f32 %v6813_v38, %v3483_v42  ;;  %v3777_v42 = vld [vmem:[#allocation10 + $0x78] sm:$0xff] }
 0xa10   : > { %v3563_v47 = vmax.f32 %v3489_v40, 0.0  ;;  %v3776_v40 = vld [vmem:[#allocation10 + $0x70] sm:$0xff] }
 0xa11   : > { %v3562_v45 = vmax.f32 %v3484_v44, 0.0  ;;  %v8086_v46 = vpop.f32.mrb[66].mxu0  ;;  %v9293_v44 = vpack.c.bf16 %v3777_v42, %v3776_v40 }
 0xa12   : > { %v3499_v48 = vadd.f32 %v8086_v46, %v6813_v38  ;;  %v3493_v50 = vpop.f32.mrb[67].mxu0  ;;  %v4131_v46 = vld [vmem:[#allocation13 + $0x8] sm:$0xff] }
 0xa13   : > { %v3494_v34 = vadd.f32 %v6813_v38, %v3493_v50  ;;  %8137 = vmatprep.mubr.f32.mxu1 %v3562_v45  ;;  %9294 = vmatprep.subr.bf16.mxu0 %v9293_v44  ;;  %v4130_v45 = vld [vmem:[#allocation13] sm:$0xff]  ;;  %v3947_v50 = vld [vmem:[#allocation12 + $0x8] sm:$0xff] }
 0xa14   : > { %8138 = vmatmul.mubr.f32.vlgmr.msra.gmra.mrb[64].mxu1 %v3563_v47  ;;  %v3565_v54 = vmax.f32 %v3499_v48, 0.0  ;;  %9296 = vmatpush3.bf16.msra.mxu0 %v9293_v44  ;;  %v9329_v47 = vpack.c.bf16 %v4131_v46, %v4130_v45  ;;  %v3946_v48 = vld [vmem:[#allocation12] sm:$0xff]  ;;  %v4136_v44 = vld [vmem:[#allocation13 + $0x30] sm:$0xff]  ;;  %v4137_v45 = vld [vmem:[#allocation13 + $0x38] sm:$0xff] }
 0xa15   : > { %v3564_v52 = vmax.f32 %v3494_v34, 0.0  ;;  %v8089_v53 = vpop.f32.mrb[68].mxu0  ;;  %v3948_v34 = vld [vmem:[#allocation12 + $0x10] sm:$0xff] }
 0xa16   : > { %v3509_v55 = vadd.f32 %v8089_v53, %v6813_v38  ;;  %v3503_v56 = vpop.f32.mrb[69].mxu0  ;;  %9330 = vmatprep.subr.bf16.mxu0 %v9329_v47 }
 0xa17   : > { %v3504_v58 = vadd.f32 %v6813_v38, %v3503_v56  ;;  %8140 = vmatprep.mubr.f32.mxu1 %v3564_v52  ;;  %v9297_v52 = vpack.c.bf16 %v3947_v50, %v3946_v48 }
 0xa18   : > { %8141 = vmatmul.mubr.f32.gmra.mrb[66].mxu1 %v3565_v54  ;;  %v3567_v62 = vmax.f32 %v3509_v55, 0.0  ;;  %v3950_v54 = vld [vmem:[#allocation12 + $0x20] sm:$0xff]  ;;  %v3951_v55 = vld [vmem:[#allocation12 + $0x28] sm:$0xff] }
 0xa19   : > { %v3566_v60 = vmax.f32 %v3504_v58, 0.0  ;;  %v8092_v61 = vpop.f32.mrb[70].mxu0  ;;  %9298 = vmatprep.subr.bf16.mxu1 %v9297_v52  ;;  %v9305_v56 = vpack.c.bf16 %v3951_v55, %v3950_v54  ;;  %v3952_v58 = vld [vmem:[#allocation12 + $0x30] sm:$0xff]  ;;  %v4139_v54 = vld [vmem:[#allocation13 + $0x48] sm:$0xff] }
 0xa1a   : > { %v3519_v63 = vadd.f32 %v8092_v61, %v6813_v38  ;;  %v3513_v0 = vpop.f32.mrb[71].mxu0  ;;  %9300 = vmatpush3.bf16.msra.mxu1 %v9297_v52  ;;  %v9341_v52 = vpack.c.bf16 %v4137_v45, %v4136_v44  ;;  %v3961_v44 = vld [vmem:[#allocation12 + $0x78] sm:$0xff] }
 0xa1b   : > { %v3514_v4 = vadd.f32 %v6813_v38, %v3513_v0  ;;  %8143 = vmatprep.mubr.f32.mxu1 %v3566_v60  ;;  %v3953_v60 = vld [vmem:[#allocation12 + $0x38] sm:$0xff] }
 0xa1c   : > { %8144 = vmatmul.mubr.f32.gmra.mrb[68].mxu1 %v3567_v62  ;;  %v3569_v8 = vmax.f32 %v3519_v63, 0.0  ;;  %v9309_v61 = vpack.c.bf16 %v3953_v60, %v3952_v58  ;;  %v3954_v62 = vld [vmem:[#allocation12 + $0x40] sm:$0xff]  ;;  %v3955_v63 = vld [vmem:[#allocation12 + $0x48] sm:$0xff] }
 0xa1d   : > { %v3568_v6 = vmax.f32 %v3514_v4, 0.0  ;;  %v8095_v7 = vpop.f32.mrb[72].mxu0  ;;  %v9313_v0 = vpack.c.bf16 %v3955_v63, %v3954_v62  ;;  %v3956_v4 = vld [vmem:[#allocation12 + $0x50] sm:$0xff] }
 0xa1e   : > { %v3529_v2 = vadd.f32 %v8095_v7, %v6813_v38  ;;  %v3523_v10 = vpop.f32.mrb[73].mxu0 }
 0xa1f   : > { %v3524_v12 = vadd.f32 %v6813_v38, %v3523_v10  ;;  %8146 = vmatprep.mubr.f32.mxu1 %v3568_v6  ;;  %v3957_v6 = vld [vmem:[#allocation12 + $0x58] sm:$0xff] }
 0xa20   : > { %8147 = vmatmul.mubr.f32.gmra.mrb[70].mxu1 %v3569_v8  ;;  %v3571_v15 = vmax.f32 %v3529_v2, 0.0  ;;  %v9317_v7 = vpack.c.bf16 %v3957_v6, %v3956_v4  ;;  %v3958_v8 = vld [vmem:[#allocation12 + $0x60] sm:$0xff]  ;;  %v3959_v2 = vld [vmem:[#allocation12 + $0x68] sm:$0xff]  ;;  %v4141_v4 = vld [vmem:[#allocation13 + $0x58] sm:$0xff] }
 0xa21   : > { %v3570_v13 = vmax.f32 %v3524_v12, 0.0  ;;  %v8098_v14 = vpop.f32.mrb[74].mxu0  ;;  %v9321_v10 = vpack.c.bf16 %v3959_v2, %v3958_v8  ;;  %v11521_v12 = vld [vmem:[%s11861_s3] ss:$0 sm:$0xff]  ;;  %s11866_s3 = sld [smem:[#allocation69_spill]] }
 0xa22   : > { %v3539_v16 = vadd.f32 %v8098_v14, %v6813_v38  ;;  %v3533_v18 = vpop.f32.mrb[75].mxu0 }
 0xa23   : > { %v3534_v20 = vadd.f32 %v6813_v38, %v3533_v18  ;;  %8149 = vmatprep.mubr.f32.mxu1 %v3570_v13  ;;  %v4132_v18 = vld [vmem:[#allocation13 + $0x10] sm:$0xff] }
 0xa24   : > { %8150 = vmatmul.mubr.f32.gmra.mrb[72].mxu1 %v3571_v15  ;;  %v3573_v22 = vmax.f32 %v3539_v16, 0.0 }
 0xa25   : > { %v3572_v5 = vmax.f32 %v3534_v20, 0.0  ;;  %v8101_v21 = vpop.f32.mrb[76].mxu0  ;;  %v4133_v20 = vld [vmem:[#allocation13 + $0x18] sm:$0xff] }
 0xa26   : > { %v3549_v23 = vadd.f32 %v8101_v21, %v6813_v38  ;;  %v3543_v24 = vpop.f32.mrb[77].mxu0 }
 0xa27   : > { %v3544_v26 = vadd.f32 %v6813_v38, %v3543_v24  ;;  %8152 = vmatprep.mubr.f32.mxu1 %v3572_v5 }
 0xa28   : > { %8153 = vmatmul.mubr.f32.gmra.mrb[74].mxu1 %v3573_v22  ;;  %v3575_v30 = vmax.f32 %v3549_v23, 0.0 }
 0xa29   : > { %v3574_v28 = vmax.f32 %v3544_v26, 0.0  ;;  %v8104_v29 = vpop.f32.mrb[78].mxu0  ;;  %v9333_v26 = vpack.c.bf16 %v4133_v20, %v4132_v18 }
 0xa2a   : > { %v3559_v31 = vadd.f32 %v8104_v29, %v6813_v38  ;;  %v3553_v32 = vpop.f32.mrb[79].mxu0  ;;  %v4134_v29 = vld [vmem:[#allocation13 + $0x20] sm:$0xff] }
 0xa2b   : > { %v3554_v36 = vadd.f32 %v6813_v38, %v3553_v32  ;;  %8155 = vmatprep.mubr.f32.mxu1 %v3574_v28  ;;  %v3949_v38 = vld [vmem:[#allocation12 + $0x18] sm:$0xff] }
 0xa2c   : > { %8156 = vmatmul.mubr.f32.gmra.mrb[76].mxu1 %v3575_v30  ;;  %v3577_v39 = vmax.f32 %v3559_v31, 0.0  ;;  %v9301_v53 = vpack.c.bf16 %v3949_v38, %v3948_v34  ;;  %v4135_v30 = vld [vmem:[#allocation13 + $0x28] sm:$0xff] }
 0xa2d   : > { %v3576_v37 = vmax.f32 %v3554_v36, 0.0  ;;  %v9337_v40 = vpack.c.bf16 %v4135_v30, %v4134_v29 }
 0xa2e   : > { %9302 = vmatprep.subr.bf16.mxu1 %v9301_v53 }
 0xa2f   : > { %8158 = vmatprep.mubr.f32.mxu1 %v3576_v37  ;;  %9304 = vmatpush3.bf16.msra.mxu1 %v9301_v53  ;;  %v4138_v53 = vld [vmem:[#allocation13 + $0x40] sm:$0xff] }
 0xa30   : > { %8159 = vmatmul.mubr.f32.gmra.mrb[78].mxu1 %v3577_v39  ;;  %9306 = vmatprep.subr.bf16.mxu1 %v9305_v56  ;;  %v9345_v62 = vpack.c.bf16 %v4139_v54, %v4138_v53  ;;  %v4501_v53 = vld [vmem:[#allocation16 + $0x18] sm:$0xff] }
 0xa33   : > { %9308 = vmatpush3.bf16.msra.mxu1 %v9305_v56 }
 0xa34   : > { %9310 = vmatprep.subr.bf16.mxu1 %v9309_v61 }
 0xa37   : > { %9312 = vmatpush3.bf16.msra.mxu1 %v9309_v61 }
 0xa38   : > { %9314 = vmatprep.subr.bf16.mxu1 %v9313_v0 }
 0xa3b   : > { %9316 = vmatpush3.bf16.msra.mxu1 %v9313_v0  ;;  %v4140_v0 = vld [vmem:[#allocation13 + $0x50] sm:$0xff] }
 0xa3c   : > { %9318 = vmatprep.subr.bf16.mxu1 %v9317_v7 }
 0xa3f   : > { %9320 = vmatpush3.bf16.msra.mxu1 %v9317_v7 }
 0xa40   : > { %9322 = vmatprep.subr.bf16.mxu1 %v9321_v10 }
 0xa43   : > { %9324 = vmatpush3.bf16.msra.mxu1 %v9321_v10 }
 0xae7   : > { %v8139_v13 = vpop.f32.mrb[64].mxu1 }
 0xae8   : > { %v3673_v14 = vadd.f32 %v8139_v13, %v11521_v12  ;;  %v3667_v15 = vpop.f32.mrb[65].mxu1  ;;  %v9349_v13 = vpack.c.bf16 %v4141_v4, %v4140_v0  ;;  %v4507_v0 = vld [vmem:[#allocation16 + $0x48] sm:$0xff] }
 0xae9   : > { %v3668_v16 = vadd.f32 %v11521_v12, %v3667_v15  ;;  %v4142_v15 = vld [vmem:[#allocation13 + $0x60] sm:$0xff] }
 0xaea   : > { %v3747_v22 = vmax.f32 %v3673_v14, 0.0 }
 0xaeb   : > { %v3746_v5 = vmax.f32 %v3668_v16, 0.0  ;;  %v8142_v21 = vpop.f32.mrb[66].mxu1  ;;  %v4143_v16 = vld [vmem:[#allocation13 + $0x68] sm:$0xff] }
 0xaec   : > { %v3683_v23 = vadd.f32 %v8142_v21, %v11521_v12  ;;  %v3677_v24 = vpop.f32.mrb[67].mxu1 }
 0xaed   : > { %v3678_v28 = vadd.f32 %v11521_v12, %v3677_v24  ;;  %8193 = vmatprep.mubr.f32.mxu0 %v3746_v5 }
 0xaee   : > { %8194 = vmatmul.mubr.f32.vlgmr.msra.gmra.mrb[80].mxu0 %v3747_v22  ;;  %v3749_v36 = vmax.f32 %v3683_v23, 0.0  ;;  %v9353_v23 = vpack.c.bf16 %v4143_v16, %v4142_v15 }
 0xaef   : > { %v3748_v31 = vmax.f32 %v3678_v28, 0.0  ;;  %9332 = vmatpush3.bf16.msra.mxu0 %v9329_v47  ;;  %v8145_v32 = vpop.f32.mrb[68].mxu1  ;;  %v4145_v28 = vld [vmem:[#allocation13 + $0x78] sm:$0xff] }
 0xaf0   : > { %v3693_v37 = vadd.f32 %v8145_v32, %v11521_v12  ;;  %v3687_v39 = vpop.f32.mrb[69].mxu1  ;;  %9334 = vmatprep.subr.bf16.mxu0 %v9333_v26 }
 0xaf1   : > { %v3688_v42 = vadd.f32 %v11521_v12, %v3687_v39  ;;  %8196 = vmatprep.mubr.f32.mxu0 %v3748_v31 }
 0xaf2   : > { %8197 = vmatmul.mubr.f32.gmra.mrb[82].mxu0 %v3749_v36  ;;  %v3751_v50 = vmax.f32 %v3693_v37, 0.0 }
 0xaf3   : > { %v3750_v46 = vmax.f32 %v3688_v42, 0.0  ;;  %9336 = vmatpush3.bf16.msra.mxu0 %v9333_v26  ;;  %v8148_v48 = vpop.f32.mrb[70].mxu1  ;;  %v4144_v26 = vld [vmem:[#allocation13 + $0x70] sm:$0xff] }
 0xaf4   : > { %v3703_v34 = vadd.f32 %v8148_v48, %v11521_v12  ;;  %v3697_v47 = vpop.f32.mrb[71].mxu1  ;;  %9338 = vmatprep.subr.bf16.mxu0 %v9337_v40  ;;  %v9357_v37 = vpack.c.bf16 %v4145_v28, %v4144_v26  ;;  %v4315_v48 = vld [vmem:[#allocation15 + $0x8] sm:$0xff] }
 0xaf5   : > { %v3698_v38 = vadd.f32 %v11521_v12, %v3697_v47  ;;  %8199 = vmatprep.mubr.f32.mxu0 %v3750_v46  ;;  %v4314_v46 = vld [vmem:[#allocation15] sm:$0xff]  ;;  %v4499_v47 = vld [vmem:[#allocation16 + $0x8] sm:$0xff] }
 0xaf6   : > { %8200 = vmatmul.mubr.f32.gmra.mrb[84].mxu0 %v3751_v50  ;;  %v3753_v58 = vmax.f32 %v3703_v34, 0.0  ;;  %v9361_v50 = vpack.c.bf16 %v4315_v48, %v4314_v46  ;;  %v4498_v34 = vld [vmem:[#allocation16] sm:$0xff]  ;;  %v4321_v46 = vld [vmem:[#allocation15 + $0x38] sm:$0xff] }
 0xaf7   : > { %v3752_v55 = vmax.f32 %v3698_v38, 0.0  ;;  %9340 = vmatpush3.bf16.msra.mxu0 %v9337_v40  ;;  %v8151_v56 = vpop.f32.mrb[72].mxu1  ;;  %v9393_v38 = vpack.c.bf16 %v4499_v47, %v4498_v34 }
 0xaf8   : > { %v3713_v60 = vadd.f32 %v8151_v56, %v11521_v12  ;;  %v3707_v61 = vpop.f32.mrb[73].mxu1  ;;  %9342 = vmatprep.subr.bf16.mxu0 %v9341_v52  ;;  %v4503_v56 = vld [vmem:[#allocation16 + $0x28] sm:$0xff] }
 0xaf9   : > { %v3708_v63 = vadd.f32 %v11521_v12, %v3707_v61  ;;  %8202 = vmatprep.mubr.f32.mxu0 %v3752_v55  ;;  %v4502_v55 = vld [vmem:[#allocation16 + $0x20] sm:$0xff]  ;;  %v4505_v61 = vld [vmem:[#allocation16 + $0x38] sm:$0xff] }
 0xafa   : > { %8203 = vmatmul.mubr.f32.gmra.mrb[86].mxu0 %v3753_v58  ;;  %v3755_v8 = vmax.f32 %v3713_v60, 0.0  ;;  %v9401_v58 = vpack.c.bf16 %v4503_v56, %v4502_v55  ;;  %v4504_v60 = vld [vmem:[#allocation16 + $0x30] sm:$0xff]  ;;  %v4323_v55 = vld [vmem:[#allocation15 + $0x48] sm:$0xff] }
 0xafb   : > { %v3754_v6 = vmax.f32 %v3708_v63, 0.0  ;;  %9344 = vmatpush3.bf16.msra.mxu0 %v9341_v52  ;;  %v8154_v7 = vpop.f32.mrb[74].mxu1  ;;  %v4500_v52 = vld [vmem:[#allocation16 + $0x10] sm:$0xff]  ;;  %v4506_v63 = vld [vmem:[#allocation16 + $0x40] sm:$0xff] }
 0xafc   : > { %v3723_v2 = vadd.f32 %v8154_v7, %v11521_v12  ;;  %v3717_v10 = vpop.f32.mrb[75].mxu1  ;;  %9346 = vmatprep.subr.bf16.mxu0 %v9345_v62  ;;  %v9397_v54 = vpack.c.bf16 %v4501_v53, %v4500_v52  ;;  %v9409_v4 = vpack.c.bf16 %v4507_v0, %v4506_v63  ;;  %v4509_v7 = vld [vmem:[#allocation16 + $0x58] sm:$0xff] }
 0xafd   : > { %v3718_v14 = vadd.f32 %v11521_v12, %v3717_v10  ;;  %8205 = vmatprep.mubr.f32.mxu0 %v3754_v6  ;;  %v4508_v6 = vld [vmem:[#allocation16 + $0x50] sm:$0xff]  ;;  %v4511_v10 = vld [vmem:[#allocation16 + $0x68] sm:$0xff] }
 0xafe   : > { %8206 = vmatmul.mubr.f32.gmra.mrb[88].mxu0 %v3755_v8  ;;  %v3757_v5 = vmax.f32 %v3723_v2, 0.0  ;;  %v9413_v8 = vpack.c.bf16 %v4509_v7, %v4508_v6  ;;  %v4510_v2 = vld [vmem:[#allocation16 + $0x60] sm:$0xff]  ;;  %v4325_v6 = vld [vmem:[#allocation15 + $0x58] sm:$0xff] }
 0xaff   : > { %v3756_v18 = vmax.f32 %v3718_v14, 0.0  ;;  %9348 = vmatpush3.bf16.msra.mxu0 %v9345_v62  ;;  %v8157_v20 = vpop.f32.mrb[76].mxu1  ;;  %v9405_v62 = vpack.c.bf16 %v4505_v61, %v4504_v60  ;;  %v11556_v14 = vld [vmem:[%s11862_s8] ss:$0 sm:$0xff]  ;;  %s11867_s8 = sld [smem:[#allocation70_spill]] }
 0xb00   : > { %v3733_v21 = vadd.f32 %v8157_v20, %v11521_v12  ;;  %v3727_v22 = vpop.f32.mrb[77].mxu1  ;;  %9350 = vmatprep.subr.bf16.mxu0 %v9349_v13 }
 0xb01   : > { %v3728_v24 = vadd.f32 %v11521_v12, %v3727_v22  ;;  %8208 = vmatprep.mubr.f32.mxu0 %v3756_v18 }
 0xb02   : > { %8209 = vmatmul.mubr.f32.gmra.mrb[90].mxu0 %v3757_v5  ;;  %v3759_v31 = vmax.f32 %v3733_v21, 0.0  ;;  %v4316_v5 = vld [vmem:[#allocation15 + $0x10] sm:$0xff]  ;;  %v4317_v21 = vld [vmem:[#allocation15 + $0x18] sm:$0xff] }
 0xb03   : > { %v3758_v29 = vmax.f32 %v3728_v24, 0.0  ;;  %9352 = vmatpush3.bf16.msra.mxu0 %v9349_v13  ;;  %v8160_v30 = vpop.f32.mrb[78].mxu1  ;;  %v9417_v13 = vpack.c.bf16 %v4511_v10, %v4510_v2 }
 0xb04   : > { %v3743_v32 = vadd.f32 %v8160_v30, %v11521_v12  ;;  %v3737_v36 = vpop.f32.mrb[79].mxu1  ;;  %9354 = vmatprep.subr.bf16.mxu0 %v9353_v23 }
 0xb05   : > { %v3738_v39 = vadd.f32 %v11521_v12, %v3737_v36  ;;  %8211 = vmatprep.mubr.f32.mxu0 %v3758_v29  ;;  %v3960_v12 = vld [vmem:[#allocation12 + $0x70] sm:$0xff]  ;;  %v9365_v29 = vpack.c.bf16 %v4317_v21, %v4316_v5 }
 0xb06   : > { %8212 = vmatmul.mubr.f32.gmra.mrb[92].mxu0 %v3759_v31  ;;  %v3761_v42 = vmax.f32 %v3743_v32, 0.0  ;;  %v9325_v45 = vpack.c.bf16 %v3961_v44, %v3960_v12  ;;  %v4318_v31 = vld [vmem:[#allocation15 + $0x20] sm:$0xff]  ;;  %v4319_v32 = vld [vmem:[#allocation15 + $0x28] sm:$0xff] }
 0xb07   : > { %v3760_v40 = vmax.f32 %v3738_v39, 0.0  ;;  %9356 = vmatpush3.bf16.msra.mxu0 %v9353_v23  ;;  %v9369_v12 = vpack.c.bf16 %v4319_v32, %v4318_v31 }
 0xb08   : > { %9358 = vmatprep.subr.bf16.mxu0 %v9357_v37  ;;  %9326 = vmatprep.subr.bf16.mxu1 %v9325_v45 }
 0xb09   : > { %8214 = vmatprep.mubr.f32.mxu0 %v3760_v40  ;;  %9328 = vmatpush3.bf16.msra.mxu1 %v9325_v45  ;;  %v4320_v45 = vld [vmem:[#allocation15 + $0x30] sm:$0xff] }
 0xb0a   : > { %8215 = vmatmul.mubr.f32.gmra.mrb[94].mxu0 %v3761_v42  ;;  %9362 = vmatprep.subr.bf16.mxu1 %v9361_v50 }
 0xb0b   : > { %9360 = vmatpush3.bf16.msra.mxu0 %v9357_v37  ;;  %8305 = vmatprep.mubr.f32.mxu0 %v11441_v9 }
 0xb0c   : > { %9394 = vmatprep.subr.bf16.mxu0 %v9393_v38 }
 0xb0e   : > { %8306 = vmatmul.mubr.f32.vlgmr.msra.gmra.mrb[96].mxu0 %v11443_v11 }
 0xb0f   : > { %8308 = vmatprep.mubr.f32.mxu0 %v11451_v17  ;;  %9396 = vmatpush3.bf16.msra.mxu0 %v9393_v38  ;;  %v9373_v38 = vpack.c.bf16 %v4321_v46, %v4320_v45 }
 0xb10   : > { %9398 = vmatprep.subr.bf16.mxu0 %v9397_v54 }
 0xb12   : > { %8309 = vmatmul.mubr.f32.gmra.mrb[98].mxu0 %v11453_v19 }
 0xb13   : > { %8311 = vmatprep.mubr.f32.mxu0 %v11461_v25  ;;  %9400 = vmatpush3.bf16.msra.mxu0 %v9397_v54  ;;  %v4322_v54 = vld [vmem:[#allocation15 + $0x40] sm:$0xff] }
 0xb14   : > { %9402 = vmatprep.subr.bf16.mxu0 %v9401_v58  ;;  %v9377_v63 = vpack.c.bf16 %v4323_v55, %v4322_v54 }
 0xb16   : > { %8312 = vmatmul.mubr.f32.gmra.mrb[100].mxu0 %v11463_v27 }
 0xb17   : > { %8314 = vmatprep.mubr.f32.mxu0 %v11471_v33  ;;  %9404 = vmatpush3.bf16.msra.mxu0 %v9401_v58 }
 0xb18   : > { %9406 = vmatprep.subr.bf16.mxu0 %v9405_v62 }
 0xb1a   : > { %8315 = vmatmul.mubr.f32.gmra.mrb[102].mxu0 %v11473_v35 }
 0xb1b   : > { %8317 = vmatprep.mubr.f32.mxu0 %v11481_v41  ;;  %9408 = vmatpush3.bf16.msra.mxu0 %v9405_v62 }
 0xb1c   : > { %9410 = vmatprep.subr.bf16.mxu0 %v9409_v4 }
 0xb1e   : > { %8318 = vmatmul.mubr.f32.gmra.mrb[104].mxu0 %v11483_v43 }
 0xb1f   : > { %8320 = vmatprep.mubr.f32.mxu0 %v11491_v49  ;;  %9412 = vmatpush3.bf16.msra.mxu0 %v9409_v4  ;;  %v4324_v4 = vld [vmem:[#allocation15 + $0x50] sm:$0xff] }
 0xb20   : > { %9414 = vmatprep.subr.bf16.mxu0 %v9413_v8 }
 0xb22   : > { %8321 = vmatmul.mubr.f32.gmra.mrb[106].mxu0 %v11493_v51 }
 0xb23   : > { %8323 = vmatprep.mubr.f32.mxu0 %v11501_v57  ;;  %9416 = vmatpush3.bf16.msra.mxu0 %v9413_v8 }
 0xb24   : > { %9418 = vmatprep.subr.bf16.mxu0 %v9417_v13 }
 0xb26   : > { %8324 = vmatmul.mubr.f32.gmra.mrb[108].mxu0 %v11503_v59 }
 0xb27   : > { %8326 = vmatprep.mubr.f32.mxu0 %v11511_v1  ;;  %9420 = vmatpush3.bf16.msra.mxu0 %v9417_v13 }
 0xb2a   : > { %8327 = vmatmul.mubr.f32.gmra.mrb[110].mxu0 %v11513_v3 }
 0xbc1   : > { %v8195_v15 = vpop.f32.mrb[80].mxu0 }
 0xbc2   : > { %v3857_v16 = vadd.f32 %v8195_v15, %v11556_v14  ;;  %v3851_v18 = vpop.f32.mrb[81].mxu0  ;;  %v9381_v15 = vpack.c.bf16 %v4325_v6, %v4324_v4 }
 0xbc3   : > { %v3852_v20 = vadd.f32 %v11556_v14, %v3851_v18  ;;  %v4326_v18 = vld [vmem:[#allocation15 + $0x60] sm:$0xff] }
 0xbc4   : > { %v3931_v24 = vmax.f32 %v3857_v16, 0.0 }
 0xbc5   : > { %v3930_v22 = vmax.f32 %v3852_v20, 0.0  ;;  %v8198_v23 = vpop.f32.mrb[82].mxu0  ;;  %v4327_v20 = vld [vmem:[#allocation15 + $0x68] sm:$0xff] }
 0xbc6   : > { %v3867_v26 = vadd.f32 %v8198_v23, %v11556_v14  ;;  %v3861_v28 = vpop.f32.mrb[83].mxu0 }
 0xbc7   : > { %v3862_v30 = vadd.f32 %v11556_v14, %v3861_v28  ;;  %8249 = vmatprep.mubr.f32.mxu1 %v3930_v22 }
 0xbc8   : > { %8250 = vmatmul.mubr.f32.vlgmr.msra.gmra.mrb[80].mxu1 %v3931_v24  ;;  %v3933_v39 = vmax.f32 %v3867_v26, 0.0  ;;  %v9385_v26 = vpack.c.bf16 %v4327_v20, %v4326_v18 }
 0xbc9   : > { %v3932_v36 = vmax.f32 %v3862_v30, 0.0  ;;  %9364 = vmatpush3.bf16.msra.mxu1 %v9361_v50  ;;  %v8201_v37 = vpop.f32.mrb[84].mxu0  ;;  %v4329_v30 = vld [vmem:[#allocation15 + $0x78] sm:$0xff] }
 0xbca   : > { %v3877_v40 = vadd.f32 %v8201_v37, %v11556_v14  ;;  %v3871_v42 = vpop.f32.mrb[85].mxu0  ;;  %9366 = vmatprep.subr.bf16.mxu1 %v9365_v29 }
 0xbcb   : > { %v3872_v44 = vadd.f32 %v11556_v14, %v3871_v42  ;;  %8252 = vmatprep.mubr.f32.mxu1 %v3932_v36 }
 0xbcc   : > { %8253 = vmatmul.mubr.f32.gmra.mrb[82].mxu1 %v3933_v39  ;;  %v3935_v47 = vmax.f32 %v3877_v40, 0.0 }
 0xbcd   : > { %v3934_v48 = vmax.f32 %v3872_v44, 0.0  ;;  %9368 = vmatpush3.bf16.msra.mxu1 %v9365_v29  ;;  %v8204_v34 = vpop.f32.mrb[86].mxu0  ;;  %v4328_v29 = vld [vmem:[#allocation15 + $0x70] sm:$0xff] }
 0xbce   : > { %v3887_v52 = vadd.f32 %v8204_v34, %v11556_v14  ;;  %v3881_v50 = vpop.f32.mrb[87].mxu0  ;;  %9370 = vmatprep.subr.bf16.mxu1 %v9369_v12  ;;  %v9389_v40 = vpack.c.bf16 %v4329_v30, %v4328_v29 }
 0xbcf   : > { %v3882_v53 = vadd.f32 %v11556_v14, %v3881_v50  ;;  %8255 = vmatprep.mubr.f32.mxu1 %v3934_v48 }
 0xbd0   : > { %8256 = vmatmul.mubr.f32.gmra.mrb[84].mxu1 %v3935_v47  ;;  %v3937_v60 = vmax.f32 %v3887_v52, 0.0 }
 0xbd1   : > { %v3936_v56 = vmax.f32 %v3882_v53, 0.0  ;;  %9372 = vmatpush3.bf16.msra.mxu1 %v9369_v12  ;;  %v8207_v58 = vpop.f32.mrb[88].mxu0  ;;  %v11575_v12 = vld [vmem:[%s11863_s23] ss:$0 sm:$0xff]  ;;  %s11868_s23 = sld [smem:[#allocation63_spill]] }
 0xbd2   : > { %v3897_v61 = vadd.f32 %v8207_v58, %v11556_v14  ;;  %v3891_v62 = vpop.f32.mrb[89].mxu0  ;;  %9374 = vmatprep.subr.bf16.mxu1 %v9373_v38 }
 0xbd3   : > { %v3892_v0 = vadd.f32 %v11556_v14, %v3891_v62  ;;  %8258 = vmatprep.mubr.f32.mxu1 %v3936_v56 }
 0xbd4   : > { %8259 = vmatmul.mubr.f32.gmra.mrb[86].mxu1 %v3937_v60  ;;  %v3939_v2 = vmax.f32 %v3897_v61, 0.0 }
 0xbd5   : > { %v3938_v7 = vmax.f32 %v3892_v0, 0.0  ;;  %9376 = vmatpush3.bf16.msra.mxu1 %v9373_v38  ;;  %v8210_v8 = vpop.f32.mrb[90].mxu0 }
 0xbd6   : > { %v3907_v10 = vadd.f32 %v8210_v8, %v11556_v14  ;;  %v3901_v13 = vpop.f32.mrb[91].mxu0  ;;  %9378 = vmatprep.subr.bf16.mxu1 %v9377_v63 }
 0xbd7   : > { %v3902_v16 = vadd.f32 %v11556_v14, %v3901_v13  ;;  %8261 = vmatprep.mubr.f32.mxu1 %v3938_v7 }
 0xbd8   : > { %8262 = vmatmul.mubr.f32.gmra.mrb[88].mxu1 %v3939_v2  ;;  %v3941_v22 = vmax.f32 %v3907_v10, 0.0 }
 0xbd9   : > { %v3940_v5 = vmax.f32 %v3902_v16, 0.0  ;;  %9380 = vmatpush3.bf16.msra.mxu1 %v9377_v63  ;;  %v8213_v21 = vpop.f32.mrb[92].mxu0 }
 0xbda   : > { %v3917_v23 = vadd.f32 %v8213_v21, %v11556_v14  ;;  %v3911_v24 = vpop.f32.mrb[93].mxu0  ;;  %9382 = vmatprep.subr.bf16.mxu1 %v9381_v15 }
 0xbdb   : > { %v3912_v28 = vadd.f32 %v11556_v14, %v3911_v24  ;;  %8264 = vmatprep.mubr.f32.mxu1 %v3940_v5 }
 0xbdc   : > { %8265 = vmatmul.mubr.f32.gmra.mrb[90].mxu1 %v3941_v22  ;;  %v3943_v36 = vmax.f32 %v3917_v23, 0.0 }
 0xbdd   : > { %v3942_v31 = vmax.f32 %v3912_v28, 0.0  ;;  %9384 = vmatpush3.bf16.msra.mxu1 %v9381_v15  ;;  %v8216_v32 = vpop.f32.mrb[94].mxu0 }
 0xbde   : > { %v3927_v37 = vadd.f32 %v8216_v32, %v11556_v14  ;;  %v3921_v39 = vpop.f32.mrb[95].mxu0  ;;  %9386 = vmatprep.subr.bf16.mxu1 %v9385_v26 }
 0xbdf   : > { %v3922_v42 = vadd.f32 %v11556_v14, %v3921_v39  ;;  %8267 = vmatprep.mubr.f32.mxu1 %v3942_v31 }
 0xbe0   : > { %8268 = vmatmul.mubr.f32.gmra.mrb[92].mxu1 %v3943_v36  ;;  %v3945_v46 = vmax.f32 %v3927_v37, 0.0 }
 0xbe1   : > { %v3944_v44 = vmax.f32 %v3922_v42, 0.0  ;;  %9388 = vmatpush3.bf16.msra.mxu1 %v9385_v26  ;;  %v8307_v45 = vpop.f32.mrb[96].mxu0 }
 0xbe2   : > { %v4225_v48 = vadd.f32 %v8307_v45, %v11575_v12  ;;  %v4219_v34 = vpop.f32.mrb[97].mxu0  ;;  %9390 = vmatprep.subr.bf16.mxu1 %v9389_v40 }
 0xbe3   : > { %v4220_v47 = vadd.f32 %v11575_v12, %v4219_v34  ;;  %8270 = vmatprep.mubr.f32.mxu1 %v3944_v44  ;;  %v4513_v34 = vld [vmem:[#allocation16 + $0x78] sm:$0xff] }
 0xbe4   : > { %8271 = vmatmul.mubr.f32.gmra.mrb[94].mxu1 %v3945_v46  ;;  %v4299_v14 = vmax.f32 %v4225_v48, 0.0  ;;  %v4512_v48 = vld [vmem:[#allocation16 + $0x70] sm:$0xff] }
 0xbe5   : > { %v4298_v52 = vmax.f32 %v4220_v47, 0.0  ;;  %9392 = vmatpush3.bf16.msra.mxu1 %v9389_v40  ;;  %v8310_v50 = vpop.f32.mrb[98].mxu0  ;;  %v9421_v47 = vpack.c.bf16 %v4513_v34, %v4512_v48 }
 0xbe6   : > { %v4235_v38 = vadd.f32 %v8310_v50, %v11575_v12  ;;  %v4229_v53 = vpop.f32.mrb[99].mxu0  ;;  %v4683_v50 = vld [vmem:[#allocation18 + $0x8] sm:$0xff] }
 0xbe7   : > { %v4230_v54 = vadd.f32 %v11575_v12, %v4229_v53  ;;  %8361 = vmatprep.mubr.f32.mxu1 %v4298_v52  ;;  %9422 = vmatprep.subr.bf16.mxu0 %v9421_v47  ;;  %v4682_v52 = vld [vmem:[#allocation18] sm:$0xff]  ;;  %v4685_v53 = vld [vmem:[#allocation18 + $0x18] sm:$0xff] }
 0xbe8   : > { %8362 = vmatmul.mubr.f32.vlgmr.msra.gmra.mrb[96].mxu1 %v4299_v14  ;;  %v4301_v58 = vmax.f32 %v4235_v38, 0.0  ;;  %9424 = vmatpush3.bf16.msra.mxu0 %v9421_v47  ;;  %v4684_v14 = vld [vmem:[#allocation18 + $0x10] sm:$0xff]  ;;  %v9425_v38 = vpack.c.bf16 %v4683_v50, %v4682_v52 }
 0xbe9   : > { %v4300_v55 = vmax.f32 %v4230_v54, 0.0  ;;  %v8313_v56 = vpop.f32.mrb[100].mxu0  ;;  %v9429_v54 = vpack.c.bf16 %v4685_v53, %v4684_v14 }
 0xbea   : > { %v4245_v60 = vadd.f32 %v8313_v56, %v11575_v12  ;;  %v4239_v61 = vpop.f32.mrb[101].mxu0  ;;  %v4687_v56 = vld [vmem:[#allocation18 + $0x28] sm:$0xff]  ;;  %9426 = vmatprep.subr.bf16.mxu1 %v9425_v38 }
 0xbeb   : > { %v4240_v62 = vadd.f32 %v11575_v12, %v4239_v61  ;;  %8364 = vmatprep.mubr.f32.mxu1 %v4300_v55  ;;  %v4686_v55 = vld [vmem:[#allocation18 + $0x20] sm:$0xff]  ;;  %9428 = vmatpush3.bf16.msra.mxu1 %v9425_v38 }
 0xbec   : > { %8365 = vmatmul.mubr.f32.gmra.mrb[98].mxu1 %v4301_v58  ;;  %v4303_v4 = vmax.f32 %v4245_v60, 0.0  ;;  %9430 = vmatprep.subr.bf16.mxu1 %v9429_v54  ;;  %v4688_v58 = vld [vmem:[#allocation18 + $0x30] sm:$0xff]  ;;  %v4689_v60 = vld [vmem:[#allocation18 + $0x38] sm:$0xff] }
 0xbed   : > { %v4302_v63 = vmax.f32 %v4240_v62, 0.0  ;;  %v8316_v0 = vpop.f32.mrb[102].mxu0  ;;  %v9437_v61 = vpack.c.bf16 %v4689_v60, %v4688_v58  ;;  %v4690_v62 = vld [vmem:[#allocation18 + $0x40] sm:$0xff] }
 0xbee   : > { %v4255_v6 = vadd.f32 %v8316_v0, %v11575_v12  ;;  %v4249_v7 = vpop.f32.mrb[103].mxu0 }
 0xbef   : > { %v4250_v8 = vadd.f32 %v11575_v12, %v4249_v7  ;;  %8367 = vmatprep.mubr.f32.mxu1 %v4302_v63  ;;  %9432 = vmatpush3.bf16.msra.mxu1 %v9429_v54  ;;  %v4691_v63 = vld [vmem:[#allocation18 + $0x48] sm:$0xff] }
 0xbf0   : > { %8368 = vmatmul.mubr.f32.gmra.mrb[100].mxu1 %v4303_v4  ;;  %v4305_v13 = vmax.f32 %v4255_v6, 0.0  ;;  %v9441_v0 = vpack.c.bf16 %v4691_v63, %v4690_v62  ;;  %v4692_v4 = vld [vmem:[#allocation18 + $0x50] sm:$0xff]  ;;  %v4693_v6 = vld [vmem:[#allocation18 + $0x58] sm:$0xff] }
 0xbf1   : > { %v4304_v2 = vmax.f32 %v4250_v8, 0.0  ;;  %v8319_v10 = vpop.f32.mrb[104].mxu0  ;;  %v9445_v7 = vpack.c.bf16 %v4693_v6, %v4692_v4  ;;  %v4694_v8 = vld [vmem:[#allocation18 + $0x60] sm:$0xff] }
 0xbf2   : > { %v4265_v15 = vadd.f32 %v8319_v10, %v11575_v12  ;;  %v4259_v16 = vpop.f32.mrb[105].mxu0 }
 0xbf3   : > { %v4260_v18 = vadd.f32 %v11575_v12, %v4259_v16  ;;  %8370 = vmatprep.mubr.f32.mxu1 %v4304_v2  ;;  %v4695_v2 = vld [vmem:[#allocation18 + $0x68] sm:$0xff] }
 0xbf4   : > { %8371 = vmatmul.mubr.f32.gmra.mrb[102].mxu1 %v4305_v13  ;;  %v4307_v21 = vmax.f32 %v4265_v15, 0.0  ;;  %v9449_v10 = vpack.c.bf16 %v4695_v2, %v4694_v8  ;;  %v6818_v13 = vld [vmem:[%s11864_s18] ss:$0 sm:$0xff]  ;;  %s11869_s18 = sld [smem:[#allocation72_spill]] }
 0xbf5   : > { %v4306_v20 = vmax.f32 %v4260_v18, 0.0  ;;  %v8322_v5 = vpop.f32.mrb[106].mxu0 }
 0xbf6   : > { %v4275_v22 = vadd.f32 %v8322_v5, %v11575_v12  ;;  %v4269_v23 = vpop.f32.mrb[107].mxu0 }
 0xbf7   : > { %v4270_v24 = vadd.f32 %v11575_v12, %v4269_v23  ;;  %8373 = vmatprep.mubr.f32.mxu1 %v4306_v20 }
 0xbf8   : > { %8374 = vmatmul.mubr.f32.gmra.mrb[104].mxu1 %v4307_v21  ;;  %v4309_v29 = vmax.f32 %v4275_v22, 0.0 }
 0xbf9   : > { %v4308_v26 = vmax.f32 %v4270_v24, 0.0  ;;  %v8325_v28 = vpop.f32.mrb[108].mxu0 }
 0xbfa   : > { %v4285_v30 = vadd.f32 %v8325_v28, %v11575_v12  ;;  %v4279_v31 = vpop.f32.mrb[109].mxu0 }
 0xbfb   : > { %v4280_v32 = vadd.f32 %v11575_v12, %v4279_v31  ;;  %8376 = vmatprep.mubr.f32.mxu1 %v4308_v26 }
 0xbfc   : > { %8377 = vmatmul.mubr.f32.gmra.mrb[106].mxu1 %v4309_v29  ;;  %v4311_v39 = vmax.f32 %v4285_v30, 0.0 }
 0xbfd   : > { %v4310_v36 = vmax.f32 %v4280_v32, 0.0  ;;  %v8328_v37 = vpop.f32.mrb[110].mxu0 }
 0xbfe   : > { %v4295_v40 = vadd.f32 %v8328_v37, %v11575_v12  ;;  %v4289_v42 = vpop.f32.mrb[111].mxu0 }
 0xbff   : > { %v4290_v44 = vadd.f32 %v11575_v12, %v4289_v42  ;;  %8379 = vmatprep.mubr.f32.mxu1 %v4310_v36  ;;  %v9433_v12 = vpack.c.bf16 %v4687_v56, %v4686_v55 }
 0xc00   : > { %8380 = vmatmul.mubr.f32.gmra.mrb[108].mxu1 %v4311_v39  ;;  %v4313_v46 = vmax.f32 %v4295_v40, 0.0 }
 0xc01   : > { %v4312_v45 = vmax.f32 %v4290_v44, 0.0  ;;  %9434 = vmatprep.subr.bf16.mxu1 %v9433_v12 }
 0xc02   : > { %9436 = vmatpush3.bf16.msra.mxu1 %v9433_v12 }
 0xc03   : > { %8382 = vmatprep.mubr.f32.mxu1 %v4312_v45  ;;  %9438 = vmatprep.subr.bf16.mxu1 %v9437_v61 }
 0xc04   : > { %8383 = vmatmul.mubr.f32.gmra.mrb[110].mxu1 %v4313_v46 }
 0xc06   : > { %9440 = vmatpush3.bf16.msra.mxu1 %v9437_v61 }
 0xc07   : > { %9442 = vmatprep.subr.bf16.mxu1 %v9441_v0 }
 0xc0a   : > { %9444 = vmatpush3.bf16.msra.mxu1 %v9441_v0 }
 0xc0b   : > { %9446 = vmatprep.subr.bf16.mxu1 %v9445_v7 }
 0xc0e   : > { %9448 = vmatpush3.bf16.msra.mxu1 %v9445_v7 }
 0xc0f   : > { %9450 = vmatprep.subr.bf16.mxu1 %v9449_v10 }
 0xc12   : > { %9452 = vmatpush3.bf16.msra.mxu1 %v9449_v10 }
 0xcbb   : > { %v8363_v15 = vpop.f32.mrb[96].mxu1 }
 0xcbc   : > { %v4409_v16 = vadd.f32 %v8363_v15, %v6818_v13  ;;  %v4403_v18 = vpop.f32.mrb[97].mxu1 }
 0xcbd   : > { %v4404_v20 = vadd.f32 %v6818_v13, %v4403_v18  ;;  %v4697_v18 = vld [vmem:[#allocation18 + $0x78] sm:$0xff] }
 0xcbe   : > { %v4483_v22 = vmax.f32 %v4409_v16, 0.0  ;;  %v4696_v16 = vld [vmem:[#allocation18 + $0x70] sm:$0xff] }
 0xcbf   : > { %v4482_v5 = vmax.f32 %v4404_v20, 0.0  ;;  %v8366_v21 = vpop.f32.mrb[98].mxu1  ;;  %v9453_v20 = vpack.c.bf16 %v4697_v18, %v4696_v16 }
 0xcc0   : > { %v4419_v23 = vadd.f32 %v8366_v21, %v6818_v13  ;;  %v4413_v24 = vpop.f32.mrb[99].mxu1  ;;  %v4867_v21 = vld [vmem:[#allocation19 + $0x8] sm:$0xff] }
 0xcc1   : > { %v4414_v26 = vadd.f32 %v6818_v13, %v4413_v24  ;;  %8417 = vmatprep.mubr.f32.mxu0 %v4482_v5  ;;  %9454 = vmatprep.subr.bf16.mxu1 %v9453_v20  ;;  %v4866_v5 = vld [vmem:[#allocation19] sm:$0xff]  ;;  %v4869_v24 = vld [vmem:[#allocation19 + $0x18] sm:$0xff] }
 0xcc2   : > { %8418 = vmatmul.mubr.f32.vlgmr.msra.gmra.mrb[112].mxu0 %v4483_v22  ;;  %v4485_v30 = vmax.f32 %v4419_v23, 0.0  ;;  %9456 = vmatpush3.bf16.msra.mxu1 %v9453_v20  ;;  %v4868_v22 = vld [vmem:[#allocation19 + $0x10] sm:$0xff]  ;;  %v9457_v23 = vpack.c.bf16 %v4867_v21, %v4866_v5 }
 0xcc3   : > { %v4484_v28 = vmax.f32 %v4414_v26, 0.0  ;;  %v8369_v29 = vpop.f32.mrb[100].mxu1  ;;  %v9461_v26 = vpack.c.bf16 %v4869_v24, %v4868_v22 }
 0xcc4   : > { %v4429_v31 = vadd.f32 %v8369_v29, %v6818_v13  ;;  %v4423_v32 = vpop.f32.mrb[101].mxu1  ;;  %v4871_v29 = vld [vmem:[#allocation19 + $0x28] sm:$0xff]  ;;  %9458 = vmatprep.subr.bf16.mxu0 %v9457_v23 }
 0xcc5   : > { %v4424_v36 = vadd.f32 %v6818_v13, %v4423_v32  ;;  %8420 = vmatprep.mubr.f32.mxu0 %v4484_v28  ;;  %v4870_v28 = vld [vmem:[#allocation19 + $0x20] sm:$0xff]  ;;  %9460 = vmatpush3.bf16.msra.mxu0 %v9457_v23 }
 0xcc6   : > { %8421 = vmatmul.mubr.f32.gmra.mrb[114].mxu0 %v4485_v30  ;;  %v4487_v40 = vmax.f32 %v4429_v31, 0.0  ;;  %9462 = vmatprep.subr.bf16.mxu0 %v9461_v26  ;;  %v4872_v30 = vld [vmem:[#allocation19 + $0x30] sm:$0xff]  ;;  %v4873_v31 = vld [vmem:[#allocation19 + $0x38] sm:$0xff] }
 0xcc7   : > { %v4486_v37 = vmax.f32 %v4424_v36, 0.0  ;;  %v8372_v39 = vpop.f32.mrb[102].mxu1  ;;  %v9469_v32 = vpack.c.bf16 %v4873_v31, %v4872_v30  ;;  %v4874_v36 = vld [vmem:[#allocation19 + $0x40] sm:$0xff] }
 0xcc8   : > { %v4439_v42 = vadd.f32 %v8372_v39, %v6818_v13  ;;  %v4433_v44 = vpop.f32.mrb[103].mxu1 }
 0xcc9   : > { %v4434_v45 = vadd.f32 %v6818_v13, %v4433_v44  ;;  %8423 = vmatprep.mubr.f32.mxu0 %v4486_v37  ;;  %9464 = vmatpush3.bf16.msra.mxu0 %v9461_v26  ;;  %v4875_v37 = vld [vmem:[#allocation19 + $0x48] sm:$0xff] }
 0xcca   : > { %8424 = vmatmul.mubr.f32.gmra.mrb[116].mxu0 %v4487_v40  ;;  %v4489_v34 = vmax.f32 %v4439_v42, 0.0  ;;  %v9473_v39 = vpack.c.bf16 %v4875_v37, %v4874_v36  ;;  %v4876_v40 = vld [vmem:[#allocation19 + $0x50] sm:$0xff]  ;;  %v4877_v42 = vld [vmem:[#allocation19 + $0x58] sm:$0xff] }
 0xccb   : > { %v4488_v46 = vmax.f32 %v4434_v45, 0.0  ;;  %v8375_v48 = vpop.f32.mrb[104].mxu1  ;;  %v9477_v44 = vpack.c.bf16 %v4877_v42, %v4876_v40  ;;  %v4878_v45 = vld [vmem:[#allocation19 + $0x60] sm:$0xff] }
 0xccc   : > { %v4449_v47 = vadd.f32 %v8375_v48, %v6818_v13  ;;  %v4443_v52 = vpop.f32.mrb[105].mxu1 }
 0xccd   : > { %v4444_v50 = vadd.f32 %v6818_v13, %v4443_v52  ;;  %8426 = vmatprep.mubr.f32.mxu0 %v4488_v46  ;;  %v4879_v46 = vld [vmem:[#allocation19 + $0x68] sm:$0xff] }
 0xcce   : > { %8427 = vmatmul.mubr.f32.gmra.mrb[118].mxu0 %v4489_v34  ;;  %v4491_v53 = vmax.f32 %v4449_v47, 0.0  ;;  %v9481_v48 = vpack.c.bf16 %v4879_v46, %v4878_v45  ;;  %v6819_v34 = vld [vmem:[%s11865_s2] ss:$0 sm:$0xff]  ;;  %s11870_s2 = sld [smem:[#allocation43_spill]] }
 0xccf   : > { %v4490_v14 = vmax.f32 %v4444_v50, 0.0  ;;  %v8378_v38 = vpop.f32.mrb[106].mxu1 }
 0xcd0   : > { %v4459_v54 = vadd.f32 %v8378_v38, %v6818_v13  ;;  %v4453_v55 = vpop.f32.mrb[107].mxu1 }
 0xcd1   : > { %v4454_v56 = vadd.f32 %v6818_v13, %v4453_v55  ;;  %8429 = vmatprep.mubr.f32.mxu0 %v4490_v14 }
 0xcd2   : > { %8430 = vmatmul.mubr.f32.gmra.mrb[120].mxu0 %v4491_v53  ;;  %v4493_v60 = vmax.f32 %v4459_v54, 0.0 }
 0xcd3   : > { %v4492_v12 = vmax.f32 %v4454_v56, 0.0  ;;  %v8381_v58 = vpop.f32.mrb[108].mxu1 }
 0xcd4   : > { %v4469_v61 = vadd.f32 %v8381_v58, %v6818_v13  ;;  %v4463_v62 = vpop.f32.mrb[109].mxu1 }
 0xcd5   : > { %v4464_v63 = vadd.f32 %v6818_v13, %v4463_v62  ;;  %8432 = vmatprep.mubr.f32.mxu0 %v4492_v12 }
 0xcd6   : > { %8433 = vmatmul.mubr.f32.gmra.mrb[122].mxu0 %v4493_v60  ;;  %v4495_v6 = vmax.f32 %v4469_v61, 0.0 }
 0xcd7   : > { %v4494_v0 = vmax.f32 %v4464_v63, 0.0  ;;  %v8384_v4 = vpop.f32.mrb[110].mxu1 }
 0xcd8   : > { %v4479_v7 = vadd.f32 %v8384_v4, %v6818_v13  ;;  %v4473_v8 = vpop.f32.mrb[111].mxu1 }
 0xcd9   : > { %v4474_v2 = vadd.f32 %v6818_v13, %v4473_v8  ;;  %8435 = vmatprep.mubr.f32.mxu0 %v4494_v0  ;;  %v9465_v13 = vpack.c.bf16 %v4871_v29, %v4870_v28 }
 0xcda   : > { %8436 = vmatmul.mubr.f32.gmra.mrb[124].mxu0 %v4495_v6  ;;  %v4497_v15 = vmax.f32 %v4479_v7, 0.0 }
 0xcdb   : > { %v4496_v10 = vmax.f32 %v4474_v2, 0.0  ;;  %9466 = vmatprep.subr.bf16.mxu0 %v9465_v13 }
 0xcdc   : > { %9468 = vmatpush3.bf16.msra.mxu0 %v9465_v13 }
 0xcdd   : > { %8438 = vmatprep.mubr.f32.mxu0 %v4496_v10  ;;  %9470 = vmatprep.subr.bf16.mxu0 %v9469_v32 }
 0xcde   : > { %8439 = vmatmul.mubr.f32.gmra.mrb[126].mxu0 %v4497_v15 }
 0xce0   : > { %9472 = vmatpush3.bf16.msra.mxu0 %v9469_v32 }
 0xce1   : > { %9474 = vmatprep.subr.bf16.mxu0 %v9473_v39 }
 0xce4   : > { %9476 = vmatpush3.bf16.msra.mxu0 %v9473_v39 }
 0xce5   : > { %9478 = vmatprep.subr.bf16.mxu0 %v9477_v44 }
 0xce8   : > { %9480 = vmatpush3.bf16.msra.mxu0 %v9477_v44 }
 0xce9   : > { %9482 = vmatprep.subr.bf16.mxu0 %v9481_v48 }
 0xcec   : > { %9484 = vmatpush3.bf16.msra.mxu0 %v9481_v48 }
 0xd95   : > { %v8419_v47 = vpop.f32.mrb[112].mxu0 }
 0xd96   : > { %v4593_v52 = vadd.f32 %v8419_v47, %v6819_v34  ;;  %v4587_v50 = vpop.f32.mrb[113].mxu0 }
 0xd97   : > { %v4588_v14 = vadd.f32 %v6819_v34, %v4587_v50  ;;  %v4881_v50 = vld [vmem:[#allocation19 + $0x78] sm:$0xff] }
 0xd98   : > { %v4667_v54 = vmax.f32 %v4593_v52, 0.0  ;;  %v4880_v52 = vld [vmem:[#allocation19 + $0x70] sm:$0xff] }
 0xd99   : > { %v4666_v38 = vmax.f32 %v4588_v14, 0.0  ;;  %v8422_v53 = vpop.f32.mrb[114].mxu0  ;;  %v9485_v14 = vpack.c.bf16 %v4881_v50, %v4880_v52 }
 0xd9a   : > { %v4603_v55 = vadd.f32 %v8422_v53, %v6819_v34  ;;  %v4597_v56 = vpop.f32.mrb[115].mxu0  ;;  %v5051_v53 = vld [vmem:[#allocation21 + $0x8] sm:$0xff] }
 0xd9b   : > { %v4598_v12 = vadd.f32 %v6819_v34, %v4597_v56  ;;  %8473 = vmatprep.mubr.f32.mxu1 %v4666_v38  ;;  %9486 = vmatprep.subr.bf16.mxu0 %v9485_v14  ;;  %v5050_v38 = vld [vmem:[#allocation21] sm:$0xff]  ;;  %v5053_v56 = vld [vmem:[#allocation21 + $0x18] sm:$0xff] }
 0xd9c   : > { %8474 = vmatmul.mubr.f32.vlgmr.msra.gmra.mrb[112].mxu1 %v4667_v54  ;;  %v4669_v61 = vmax.f32 %v4603_v55, 0.0  ;;  %9488 = vmatpush3.bf16.msra.mxu0 %v9485_v14  ;;  %v5052_v54 = vld [vmem:[#allocation21 + $0x10] sm:$0xff]  ;;  %v9489_v55 = vpack.c.bf16 %v5051_v53, %v5050_v38 }
 0xd9d   : > { %v4668_v58 = vmax.f32 %v4598_v12, 0.0  ;;  %v8425_v60 = vpop.f32.mrb[116].mxu0  ;;  %v9493_v12 = vpack.c.bf16 %v5053_v56, %v5052_v54 }
 0xd9e   : > { %v4613_v62 = vadd.f32 %v8425_v60, %v6819_v34  ;;  %v4607_v63 = vpop.f32.mrb[117].mxu0  ;;  %v5055_v60 = vld [vmem:[#allocation21 + $0x28] sm:$0xff]  ;;  %9490 = vmatprep.subr.bf16.mxu1 %v9489_v55 }
 0xd9f   : > { %v4608_v0 = vadd.f32 %v6819_v34, %v4607_v63  ;;  %8476 = vmatprep.mubr.f32.mxu1 %v4668_v58  ;;  %v5054_v58 = vld [vmem:[#allocation21 + $0x20] sm:$0xff]  ;;  %9492 = vmatpush3.bf16.msra.mxu1 %v9489_v55 }
 0xda0   : > { %8477 = vmatmul.mubr.f32.gmra.mrb[114].mxu1 %v4669_v61  ;;  %v4671_v7 = vmax.f32 %v4613_v62, 0.0  ;;  %9494 = vmatprep.subr.bf16.mxu1 %v9493_v12  ;;  %v5056_v61 = vld [vmem:[#allocation21 + $0x30] sm:$0xff]  ;;  %v5057_v62 = vld [vmem:[#allocation21 + $0x38] sm:$0xff] }
 0xda1   : > { %v4670_v4 = vmax.f32 %v4608_v0, 0.0  ;;  %v8428_v6 = vpop.f32.mrb[118].mxu0  ;;  %v9501_v63 = vpack.c.bf16 %v5057_v62, %v5056_v61  ;;  %v5058_v0 = vld [vmem:[#allocation21 + $0x40] sm:$0xff] }
 0xda2   : > { %v4623_v8 = vadd.f32 %v8428_v6, %v6819_v34  ;;  %v4617_v2 = vpop.f32.mrb[119].mxu0 }
 0xda3   : > { %v4618_v10 = vadd.f32 %v6819_v34, %v4617_v2  ;;  %8479 = vmatprep.mubr.f32.mxu1 %v4670_v4  ;;  %9496 = vmatpush3.bf16.msra.mxu1 %v9493_v12  ;;  %v5059_v4 = vld [vmem:[#allocation21 + $0x48] sm:$0xff] }
 0xda4   : > { %8480 = vmatmul.mubr.f32.gmra.mrb[116].mxu1 %v4671_v7  ;;  %v4673_v18 = vmax.f32 %v4623_v8, 0.0  ;;  %v9505_v6 = vpack.c.bf16 %v5059_v4, %v5058_v0  ;;  %v5060_v7 = vld [vmem:[#allocation21 + $0x50] sm:$0xff]  ;;  %v5061_v8 = vld [vmem:[#allocation21 + $0x58] sm:$0xff] }
 0xda5   : > { %v4672_v15 = vmax.f32 %v4618_v10, 0.0  ;;  %v8431_v16 = vpop.f32.mrb[120].mxu0  ;;  %v9509_v2 = vpack.c.bf16 %v5061_v8, %v5060_v7  ;;  %v5062_v10 = vld [vmem:[#allocation21 + $0x60] sm:$0xff] }
 0xda6   : > { %v4633_v20 = vadd.f32 %v8431_v16, %v6819_v34  ;;  %v4627_v5 = vpop.f32.mrb[121].mxu0 }
 0xda7   : > { %v4628_v21 = vadd.f32 %v6819_v34, %v4627_v5  ;;  %8482 = vmatprep.mubr.f32.mxu1 %v4672_v15  ;;  %v5063_v15 = vld [vmem:[#allocation21 + $0x68] sm:$0xff] }
 0xda8   : > { %8483 = vmatmul.mubr.f32.gmra.mrb[118].mxu1 %v4673_v18  ;;  %v4675_v24 = vmax.f32 %v4633_v20, 0.0  ;;  %v9513_v16 = vpack.c.bf16 %v5063_v15, %v5062_v10  ;;  %v6820_v18 = vld [vmem:[%s11866_s3] ss:$0 sm:$0xff]  ;;  %s11623_s3 = scalar_lea.vmem %s10969_s19, %s11323_s1 }
 0xda9   : > { %v4674_v22 = vmax.f32 %v4628_v21, 0.0  ;;  %v8434_v23 = vpop.f32.mrb[122].mxu0 }
 0xdaa   : > { %v4643_v26 = vadd.f32 %v8434_v23, %v6819_v34  ;;  %v4637_v28 = vpop.f32.mrb[123].mxu0 }
 0xdab   : > { %v4638_v29 = vadd.f32 %v6819_v34, %v4637_v28  ;;  %8485 = vmatprep.mubr.f32.mxu1 %v4674_v22 }
 0xdac   : > { %8486 = vmatmul.mubr.f32.gmra.mrb[120].mxu1 %v4675_v24  ;;  %v4677_v31 = vmax.f32 %v4643_v26, 0.0 }
 0xdad   : > { %v4676_v13 = vmax.f32 %v4638_v29, 0.0  ;;  %v8437_v30 = vpop.f32.mrb[124].mxu0 }
 0xdae   : > { %v4653_v32 = vadd.f32 %v8437_v30, %v6819_v34  ;;  %v4647_v36 = vpop.f32.mrb[125].mxu0 }
 0xdaf   : > { %v4648_v37 = vadd.f32 %v6819_v34, %v4647_v36  ;;  %8488 = vmatprep.mubr.f32.mxu1 %v4676_v13 }
 0xdb0   : > { %8489 = vmatmul.mubr.f32.gmra.mrb[122].mxu1 %v4677_v31  ;;  %v4679_v42 = vmax.f32 %v4653_v32, 0.0 }
 0xdb1   : > { %v4678_v39 = vmax.f32 %v4648_v37, 0.0  ;;  %v8440_v40 = vpop.f32.mrb[126].mxu0 }
 0xdb2   : > { %v4663_v44 = vadd.f32 %v8440_v40, %v6819_v34  ;;  %v4657_v45 = vpop.f32.mrb[127].mxu0 }
 0xdb3   : > { %v4658_v46 = vadd.f32 %v6819_v34, %v4657_v45  ;;  %8491 = vmatprep.mubr.f32.mxu1 %v4678_v39  ;;  %v9497_v34 = vpack.c.bf16 %v5055_v60, %v5054_v58 }
 0xdb4   : > { %8492 = vmatmul.mubr.f32.gmra.mrb[124].mxu1 %v4679_v42  ;;  %v4681_v47 = vmax.f32 %v4663_v44, 0.0 }
 0xdb5   : > { %v4680_v48 = vmax.f32 %v4658_v46, 0.0  ;;  %9498 = vmatprep.subr.bf16.mxu1 %v9497_v34 }
 0xdb6   : > { %9500 = vmatpush3.bf16.msra.mxu1 %v9497_v34 }
 0xdb7   : > { %8494 = vmatprep.mubr.f32.mxu1 %v4680_v48  ;;  %9502 = vmatprep.subr.bf16.mxu1 %v9501_v63 }
 0xdb8   : > { %8495 = vmatmul.mubr.f32.gmra.mrb[126].mxu1 %v4681_v47 }
 0xdba   : > { %9504 = vmatpush3.bf16.msra.mxu1 %v9501_v63 }
 0xdbb   : > { %9506 = vmatprep.subr.bf16.mxu1 %v9505_v6 }
 0xdbe   : > { %9508 = vmatpush3.bf16.msra.mxu1 %v9505_v6 }
 0xdbf   : > { %9510 = vmatprep.subr.bf16.mxu1 %v9509_v2 }
 0xdc2   : > { %9512 = vmatpush3.bf16.msra.mxu1 %v9509_v2 }
 0xdc3   : > { %9514 = vmatprep.subr.bf16.mxu1 %v9513_v16 }
 0xdc6   : > { %9516 = vmatpush3.bf16.msra.mxu1 %v9513_v16 }
 0xe6f   : > { %v8475_v20 = vpop.f32.mrb[112].mxu1 }
 0xe70   : > { %v4777_v5 = vadd.f32 %v8475_v20, %v6820_v18  ;;  %v4771_v21 = vpop.f32.mrb[113].mxu1 }
 0xe71   : > { %v4772_v22 = vadd.f32 %v6820_v18, %v4771_v21  ;;  %v5065_v21 = vld [vmem:[#allocation21 + $0x78] sm:$0xff] }
 0xe72   : > { %v4851_v26 = vmax.f32 %v4777_v5, 0.0  ;;  %v5064_v5 = vld [vmem:[#allocation21 + $0x70] sm:$0xff] }
 0xe73   : > { %v4850_v23 = vmax.f32 %v4772_v22, 0.0  ;;  %v8478_v24 = vpop.f32.mrb[114].mxu1  ;;  %v9517_v22 = vpack.c.bf16 %v5065_v21, %v5064_v5 }
 0xe74   : > { %v4787_v28 = vadd.f32 %v8478_v24, %v6820_v18  ;;  %v4781_v29 = vpop.f32.mrb[115].mxu1  ;;  %v5235_v24 = vld [vmem:[#allocation22 + $0x8] sm:$0xff] }
 0xe75   : > { %v4782_v13 = vadd.f32 %v6820_v18, %v4781_v29  ;;  %8529 = vmatprep.mubr.f32.mxu0 %v4850_v23  ;;  %9518 = vmatprep.subr.bf16.mxu1 %v9517_v22  ;;  %v5234_v23 = vld [vmem:[#allocation22] sm:$0xff]  ;;  %v5237_v29 = vld [vmem:[#allocation22 + $0x18] sm:$0xff] }
 0xe76   : > { %8530 = vmatmul.mubr.f32.vlgmr.msra.gmra.mrb[128].mxu0 %v4851_v26  ;;  %v4853_v32 = vmax.f32 %v4787_v28, 0.0  ;;  %9520 = vmatpush3.bf16.msra.mxu1 %v9517_v22  ;;  %v5236_v26 = vld [vmem:[#allocation22 + $0x10] sm:$0xff]  ;;  %v9521_v28 = vpack.c.bf16 %v5235_v24, %v5234_v23 }
 0xe77   : > { %v4852_v30 = vmax.f32 %v4782_v13, 0.0  ;;  %v8481_v31 = vpop.f32.mrb[116].mxu1  ;;  %v9525_v13 = vpack.c.bf16 %v5237_v29, %v5236_v26 }
 0xe78   : > { %v4797_v36 = vadd.f32 %v8481_v31, %v6820_v18  ;;  %v4791_v37 = vpop.f32.mrb[117].mxu1  ;;  %v5239_v31 = vld [vmem:[#allocation22 + $0x28] sm:$0xff]  ;;  %9522 = vmatprep.subr.bf16.mxu0 %v9521_v28 }
 0xe79   : > { %v4792_v39 = vadd.f32 %v6820_v18, %v4791_v37  ;;  %8532 = vmatprep.mubr.f32.mxu0 %v4852_v30  ;;  %v5238_v30 = vld [vmem:[#allocation22 + $0x20] sm:$0xff]  ;;  %9524 = vmatpush3.bf16.msra.mxu0 %v9521_v28 }
 0xe7a   : > { %8533 = vmatmul.mubr.f32.gmra.mrb[130].mxu0 %v4853_v32  ;;  %v4855_v44 = vmax.f32 %v4797_v36, 0.0  ;;  %9526 = vmatprep.subr.bf16.mxu0 %v9525_v13  ;;  %v5240_v32 = vld [vmem:[#allocation22 + $0x30] sm:$0xff]  ;;  %v5241_v36 = vld [vmem:[#allocation22 + $0x38] sm:$0xff] }
 0xe7b   : > { %v4854_v40 = vmax.f32 %v4792_v39, 0.0  ;;  %v8484_v42 = vpop.f32.mrb[118].mxu1  ;;  %v9533_v37 = vpack.c.bf16 %v5241_v36, %v5240_v32  ;;  %v5242_v39 = vld [vmem:[#allocation22 + $0x40] sm:$0xff] }
 0xe7c   : > { %v4807_v45 = vadd.f32 %v8484_v42, %v6820_v18  ;;  %v4801_v46 = vpop.f32.mrb[119].mxu1 }
 0xe7d   : > { %v4802_v48 = vadd.f32 %v6820_v18, %v4801_v46  ;;  %8535 = vmatprep.mubr.f32.mxu0 %v4854_v40  ;;  %9528 = vmatpush3.bf16.msra.mxu0 %v9525_v13  ;;  %v5243_v40 = vld [vmem:[#allocation22 + $0x48] sm:$0xff] }
 0xe7e   : > { %8536 = vmatmul.mubr.f32.gmra.mrb[132].mxu0 %v4855_v44  ;;  %v4857_v50 = vmax.f32 %v4807_v45, 0.0  ;;  %v9537_v42 = vpack.c.bf16 %v5243_v40, %v5242_v39  ;;  %v5244_v44 = vld [vmem:[#allocation22 + $0x50] sm:$0xff]  ;;  %v5245_v45 = vld [vmem:[#allocation22 + $0x58] sm:$0xff] }
 0xe7f   : > { %v4856_v47 = vmax.f32 %v4802_v48, 0.0  ;;  %v8487_v52 = vpop.f32.mrb[120].mxu1  ;;  %v9541_v46 = vpack.c.bf16 %v5245_v45, %v5244_v44  ;;  %v5246_v48 = vld [vmem:[#allocation22 + $0x60] sm:$0xff] }
 0xe80   : > { %v4817_v14 = vadd.f32 %v8487_v52, %v6820_v18  ;;  %v4811_v38 = vpop.f32.mrb[121].mxu1 }
 0xe81   : > { %v4812_v53 = vadd.f32 %v6820_v18, %v4811_v38  ;;  %8538 = vmatprep.mubr.f32.mxu0 %v4856_v47  ;;  %v5247_v47 = vld [vmem:[#allocation22 + $0x68] sm:$0xff] }
 0xe82   : > { %8539 = vmatmul.mubr.f32.gmra.mrb[134].mxu0 %v4857_v50  ;;  %v4859_v56 = vmax.f32 %v4817_v14, 0.0  ;;  %v9545_v52 = vpack.c.bf16 %v5247_v47, %v5246_v48  ;;  %v6821_v50 = vld [vmem:[%s11867_s8] ss:$0 sm:$0xff]  ;;  %s11872_s8 = sld [smem:[#allocation75_spill]] }
 0xe83   : > { %v4858_v54 = vmax.f32 %v4812_v53, 0.0  ;;  %v8490_v55 = vpop.f32.mrb[122].mxu1 }
 0xe84   : > { %v4827_v12 = vadd.f32 %v8490_v55, %v6820_v18  ;;  %v4821_v58 = vpop.f32.mrb[123].mxu1 }
 0xe85   : > { %v4822_v60 = vadd.f32 %v6820_v18, %v4821_v58  ;;  %8541 = vmatprep.mubr.f32.mxu0 %v4858_v54 }
 0xe86   : > { %8542 = vmatmul.mubr.f32.gmra.mrb[136].mxu0 %v4859_v56  ;;  %v4861_v62 = vmax.f32 %v4827_v12, 0.0 }
 0xe87   : > { %v4860_v34 = vmax.f32 %v4822_v60, 0.0  ;;  %v8493_v61 = vpop.f32.mrb[124].mxu1 }
 0xe88   : > { %v4837_v63 = vadd.f32 %v8493_v61, %v6820_v18  ;;  %v4831_v0 = vpop.f32.mrb[125].mxu1 }
 0xe89   : > { %v4832_v4 = vadd.f32 %v6820_v18, %v4831_v0  ;;  %8544 = vmatprep.mubr.f32.mxu0 %v4860_v34 }
 0xe8a   : > { %8545 = vmatmul.mubr.f32.gmra.mrb[138].mxu0 %v4861_v62  ;;  %v4863_v8 = vmax.f32 %v4837_v63, 0.0 }
 0xe8b   : > { %v4862_v6 = vmax.f32 %v4832_v4, 0.0  ;;  %v8496_v7 = vpop.f32.mrb[126].mxu1 }
 0xe8c   : > { %v4847_v2 = vadd.f32 %v8496_v7, %v6820_v18  ;;  %v4841_v10 = vpop.f32.mrb[127].mxu1 }
 0xe8d   : > { %v4842_v15 = vadd.f32 %v6820_v18, %v4841_v10  ;;  %8547 = vmatprep.mubr.f32.mxu0 %v4862_v6  ;;  %v9529_v18 = vpack.c.bf16 %v5239_v31, %v5238_v30 }
 0xe8e   : > { %8548 = vmatmul.mubr.f32.gmra.mrb[140].mxu0 %v4863_v8  ;;  %v4865_v20 = vmax.f32 %v4847_v2, 0.0 }
 0xe8f   : > { %v4864_v16 = vmax.f32 %v4842_v15, 0.0  ;;  %9530 = vmatprep.subr.bf16.mxu0 %v9529_v18 }
 0xe90   : > { %9532 = vmatpush3.bf16.msra.mxu0 %v9529_v18 }
 0xe91   : > { %8550 = vmatprep.mubr.f32.mxu0 %v4864_v16  ;;  %9534 = vmatprep.subr.bf16.mxu0 %v9533_v37 }
 0xe92   : > { %8551 = vmatmul.mubr.f32.gmra.mrb[142].mxu0 %v4865_v20 }
 0xe94   : > { %9536 = vmatpush3.bf16.msra.mxu0 %v9533_v37 }
 0xe95   : > { %9538 = vmatprep.subr.bf16.mxu0 %v9537_v42 }
 0xe98   : > { %9540 = vmatpush3.bf16.msra.mxu0 %v9537_v42 }
 0xe99   : > { %9542 = vmatprep.subr.bf16.mxu0 %v9541_v46 }
 0xe9c   : > { %9544 = vmatpush3.bf16.msra.mxu0 %v9541_v46 }
 0xe9d   : > { %9546 = vmatprep.subr.bf16.mxu0 %v9545_v52 }
 0xea0   : > { %9548 = vmatpush3.bf16.msra.mxu0 %v9545_v52 }
 0xf49   : > { %v8531_v14 = vpop.f32.mrb[128].mxu0 }
 0xf4a   : > { %v4961_v38 = vadd.f32 %v8531_v14, %v6821_v50  ;;  %v4955_v53 = vpop.f32.mrb[129].mxu0 }
 0xf4b   : > { %v4956_v54 = vadd.f32 %v6821_v50, %v4955_v53  ;;  %v5249_v53 = vld [vmem:[#allocation22 + $0x78] sm:$0xff] }
 0xf4c   : > { %v5035_v12 = vmax.f32 %v4961_v38, 0.0  ;;  %v5248_v38 = vld [vmem:[#allocation22 + $0x70] sm:$0xff] }
 0xf4d   : > { %v5034_v55 = vmax.f32 %v4956_v54, 0.0  ;;  %v8534_v56 = vpop.f32.mrb[130].mxu0  ;;  %v9549_v54 = vpack.c.bf16 %v5249_v53, %v5248_v38  ;;  %v10037_v38 = vld [vmem:[%s11333_s15 + $0x38] sm:$0xff] }
 0xf4e   : > { %v4971_v58 = vadd.f32 %v8534_v56, %v6821_v50  ;;  %v4965_v60 = vpop.f32.mrb[131].mxu0  ;;  %v5419_v56 = vld [vmem:[#allocation24 + $0x8] sm:$0xff] }
 0xf4f   : > { %v4966_v34 = vadd.f32 %v6821_v50, %v4965_v60  ;;  %8585 = vmatprep.mubr.f32.mxu1 %v5034_v55  ;;  %9550 = vmatprep.subr.bf16.mxu0 %v9549_v54  ;;  %v5418_v55 = vld [vmem:[#allocation24] sm:$0xff]  ;;  %v5421_v60 = vld [vmem:[#allocation24 + $0x18] sm:$0xff] }
 0xf50   : > { %8586 = vmatmul.mubr.f32.vlgmr.msra.gmra.mrb[80].mxu1 %v5035_v12  ;;  %v5037_v63 = vmax.f32 %v4971_v58, 0.0  ;;  %9552 = vmatpush3.bf16.msra.mxu0 %v9549_v54  ;;  %v5420_v12 = vld [vmem:[#allocation24 + $0x10] sm:$0xff]  ;;  %v9553_v58 = vpack.c.bf16 %v5419_v56, %v5418_v55 }
 0xf51   : > { %v5036_v61 = vmax.f32 %v4966_v34, 0.0  ;;  %v8537_v62 = vpop.f32.mrb[132].mxu0  ;;  %v9557_v34 = vpack.c.bf16 %v5421_v60, %v5420_v12 }
 0xf52   : > { %v4981_v0 = vadd.f32 %v8537_v62, %v6821_v50  ;;  %v4975_v4 = vpop.f32.mrb[133].mxu0  ;;  %v5423_v62 = vld [vmem:[#allocation24 + $0x28] sm:$0xff]  ;;  %9554 = vmatprep.subr.bf16.mxu1 %v9553_v58 }
 0xf53   : > { %v4976_v6 = vadd.f32 %v6821_v50, %v4975_v4  ;;  %8588 = vmatprep.mubr.f32.mxu1 %v5036_v61  ;;  %v5422_v61 = vld [vmem:[#allocation24 + $0x20] sm:$0xff]  ;;  %9556 = vmatpush3.bf16.msra.mxu1 %v9553_v58  ;;  %v10038_v58 = vld [vmem:[%s11333_s15 + $0x30] sm:$0xff] }
 0xf54   : > { %8589 = vmatmul.mubr.f32.gmra.mrb[82].mxu1 %v5037_v63  ;;  %v5039_v2 = vmax.f32 %v4981_v0, 0.0  ;;  %9558 = vmatprep.subr.bf16.mxu1 %v9557_v34  ;;  %v5424_v63 = vld [vmem:[#allocation24 + $0x30] sm:$0xff]  ;;  %v5425_v0 = vld [vmem:[#allocation24 + $0x38] sm:$0xff] }
 0xf55   : > { %v5038_v7 = vmax.f32 %v4976_v6, 0.0  ;;  %v8540_v8 = vpop.f32.mrb[134].mxu0  ;;  %v9565_v4 = vpack.c.bf16 %v5425_v0, %v5424_v63  ;;  %v5426_v6 = vld [vmem:[#allocation24 + $0x40] sm:$0xff] }
 0xf56   : > { %v4991_v10 = vadd.f32 %v8540_v8, %v6821_v50  ;;  %v4985_v15 = vpop.f32.mrb[135].mxu0 }
 0xf57   : > { %v4986_v16 = vadd.f32 %v6821_v50, %v4985_v15  ;;  %8591 = vmatprep.mubr.f32.mxu1 %v5038_v7  ;;  %9560 = vmatpush3.bf16.msra.mxu1 %v9557_v34  ;;  %v5427_v7 = vld [vmem:[#allocation24 + $0x48] sm:$0xff] }
 0xf58   : > { %8592 = vmatmul.mubr.f32.gmra.mrb[84].mxu1 %v5039_v2  ;;  %v5041_v21 = vmax.f32 %v4991_v10, 0.0  ;;  %v9569_v8 = vpack.c.bf16 %v5427_v7, %v5426_v6  ;;  %v5428_v2 = vld [vmem:[#allocation24 + $0x50] sm:$0xff]  ;;  %v5429_v10 = vld [vmem:[#allocation24 + $0x58] sm:$0xff] }
 0xf59   : > { %v5040_v20 = vmax.f32 %v4986_v16, 0.0  ;;  %v8543_v5 = vpop.f32.mrb[136].mxu0  ;;  %v9573_v15 = vpack.c.bf16 %v5429_v10, %v5428_v2  ;;  %v5430_v16 = vld [vmem:[#allocation24 + $0x60] sm:$0xff] }
 0xf5a   : > { %v5001_v22 = vadd.f32 %v8543_v5, %v6821_v50  ;;  %v4995_v23 = vpop.f32.mrb[137].mxu0  ;;  %v10040_v10 = vld [vmem:[%s11333_s15 + $0x40] sm:$0xff] }
 0xf5b   : > { %v4996_v24 = vadd.f32 %v6821_v50, %v4995_v23  ;;  %8594 = vmatprep.mubr.f32.mxu1 %v5040_v20  ;;  %v5431_v20 = vld [vmem:[#allocation24 + $0x68] sm:$0xff] }
 0xf5c   : > { %8595 = vmatmul.mubr.f32.gmra.mrb[86].mxu1 %v5041_v21  ;;  %v5043_v29 = vmax.f32 %v5001_v22, 0.0  ;;  %v9577_v5 = vpack.c.bf16 %v5431_v20, %v5430_v16  ;;  %v11598_v21 = vld [vmem:[%s11868_s23] ss:$0 sm:$0xff]  ;;  %v10031_v22 = vld [vmem:[%s11333_s15 + $0x18] sm:$0xff]  ;;  %s11873_s23 = sld [smem:[#allocation76_spill]] }
 0xf5d   : > { %v5042_v26 = vmax.f32 %v4996_v24, 0.0  ;;  %v8546_v28 = vpop.f32.mrb[138].mxu0  ;;  %v9719_v23 = vadd.f32 %v10031_v22, %v11598_v21  ;;  %v10032_v24 = vld [vmem:[%s11333_s15 + $0x8] sm:$0xff]  ;;  %v9731_v53 = vadd.f32 %v10037_v38, %v11598_v21  ;;  %v9734_v60 = vadd.f32 %v10038_v58, %v11598_v21 }
 0xf5e   : > { %v5011_v13 = vadd.f32 %v8546_v28, %v6821_v50  ;;  %v5005_v30 = vpop.f32.mrb[139].mxu0  ;;  %v10033_v28 = vld [vmem:[%s11333_s15] sm:$0xff] }
 0xf5f   : > { %v5006_v31 = vadd.f32 %v6821_v50, %v5005_v30  ;;  %8597 = vmatprep.mubr.f32.mxu1 %v5042_v26  ;;  %v9713_v26 = vadd.f32 %v10032_v24, %v11598_v21  ;;  %v10041_v24 = vld [vmem:[%s11333_s15 + $0x58] sm:$0xff] }
 0xf60   : > { %8598 = vmatmul.mubr.f32.gmra.mrb[88].mxu1 %v5043_v29  ;;  %v5045_v36 = vmax.f32 %v5011_v13, 0.0  ;;  %v9716_v29 = vadd.f32 %v10033_v28, %v11598_v21  ;;  %v10034_v13 = vld [vmem:[%s11333_s15 + $0x10] sm:$0xff] }
 0xf61   : > { %v5044_v18 = vmax.f32 %v5006_v31, 0.0  ;;  %v8549_v32 = vpop.f32.mrb[140].mxu0  ;;  %v9722_v30 = vadd.f32 %v10034_v13, %v11598_v21  ;;  %v11609_v31 = vld [vmem:[%s11869_s18] ss:$0 sm:$0xff]  ;;  %s11874_s18 = sld [smem:[#allocation78_spill]] }
 0xf62   : > { %v5021_v37 = vadd.f32 %v8549_v32, %v6821_v50  ;;  %v5015_v39 = vpop.f32.mrb[141].mxu0  ;;  %v10035_v32 = vld [vmem:[%s11333_s15 + $0x28] sm:$0xff]  ;;  %v9732_v2 = vadd.f32 %v9731_v53, %v11609_v31  ;;  %v9735_v20 = vadd.f32 %v9734_v60, %v11609_v31 }
 0xf63   : > { %v5016_v40 = vadd.f32 %v6821_v50, %v5015_v39  ;;  %8600 = vmatprep.mubr.f32.mxu1 %v5044_v18 }
 0xf64   : > { %8601 = vmatmul.mubr.f32.gmra.mrb[90].mxu1 %v5045_v36  ;;  %v5047_v45 = vmax.f32 %v5021_v37, 0.0  ;;  %v9725_v36 = vadd.f32 %v10035_v32, %v11598_v21 }
 0xf65   : > { %v5046_v42 = vmax.f32 %v5016_v40, 0.0  ;;  %v8552_v44 = vpop.f32.mrb[142].mxu0  ;;  %v9720_v40 = vadd.f32 %v9719_v23, %v11609_v31 }
 0xf66   : > { %v5031_v46 = vadd.f32 %v8552_v44, %v6821_v50  ;;  %v5025_v48 = vpop.f32.mrb[143].mxu0  ;;  %v9726_v12 = vadd.f32 %v9725_v36, %v11609_v31 }
 0xf67   : > { %v5026_v47 = vadd.f32 %v6821_v50, %v5025_v48  ;;  %8603 = vmatprep.mubr.f32.mxu1 %v5046_v42  ;;  %v9561_v50 = vpack.c.bf16 %v5423_v62, %v5422_v61  ;;  %v10036_v42 = vld [vmem:[%s11333_s15 + $0x20] sm:$0xff]  ;;  %v9723_v48 = vadd.f32 %v9722_v30, %v11609_v31  ;;  %v10042_v30 = vld [vmem:[%s11333_s15 + $0x50] sm:$0xff] }
 0xf68   : > { %8604 = vmatmul.mubr.f32.gmra.mrb[92].mxu1 %v5047_v45  ;;  %v5049_v14 = vmax.f32 %v5031_v46, 0.0  ;;  %v9728_v44 = vadd.f32 %v10036_v42, %v11598_v21  ;;  %v11617_v45 = vld [vmem:[%s11870_s2] ss:$0 sm:$0xff]  ;;  %v10043_v42 = vld [vmem:[%s11333_s15 + $0x68] sm:$0xff]  ;;  %s11875_s2 = sld [smem:[#allocation80_spill]] }
 0xf69   : > { %v5048_v52 = vmax.f32 %v5026_v47, 0.0  ;;  %9562 = vmatprep.subr.bf16.mxu1 %v9561_v50 }
 0xf6a   : > { %9564 = vmatpush3.bf16.msra.mxu1 %v9561_v50  ;;  %v9729_v62 = vadd.f32 %v9728_v44, %v11609_v31  ;;  %v9749_v44 = vadd.f32 %v10043_v42, %v11598_v21  ;;  %v5607_v42 = vld [vmem:[#allocation25 + $0x28] sm:$0xff] }
 0xf6b   : > { %8606 = vmatprep.mubr.f32.mxu1 %v5048_v52  ;;  %9566 = vmatprep.subr.bf16.mxu1 %v9565_v4 }
 0xf6c   : > { %8607 = vmatmul.mubr.f32.gmra.mrb[94].mxu1 %v5049_v14 }
 0xf6e   : > { %9568 = vmatpush3.bf16.msra.mxu1 %v9565_v4  ;;  %v10039_v4 = vld [vmem:[%s11333_s15 + $0x48] sm:$0xff] }
 0xf6f   : > { %9570 = vmatprep.subr.bf16.mxu1 %v9569_v8  ;;  %v9737_v6 = vadd.f32 %v10039_v4, %v11598_v21 }
 0xf71   : > { %v9738_v13 = vadd.f32 %v9737_v6, %v11609_v31 }
 0xf72   : > { %9572 = vmatpush3.bf16.msra.mxu1 %v9569_v8 }
 0xf73   : > { %9574 = vmatprep.subr.bf16.mxu1 %v9573_v15 }
 0xf76   : > { %9576 = vmatpush3.bf16.msra.mxu1 %v9573_v15  ;;  %v9740_v15 = vadd.f32 %v10040_v10, %v11598_v21 }
 0xf77   : > { %9578 = vmatprep.subr.bf16.mxu1 %v9577_v5 }
 0xf78   : > { %v9741_v36 = vadd.f32 %v9740_v15, %v11609_v31 }
 0xf7a   : > { %9580 = vmatpush3.bf16.msra.mxu1 %v9577_v5 }
0x1023   : > { %v8587_v18 = vpop.f32.mrb[80].mxu1 }
0x1024   : > { %v9714_v37 = vadd.f32 %v9713_v26, %v8587_v18  ;;  %v5139_v39 = vpop.f32.mrb[81].mxu1  ;;  %v9743_v26 = vadd.f32 %v10041_v24, %v11598_v21  ;;  %v9746_v18 = vadd.f32 %v10042_v30, %v11598_v21  ;;  %v5602_v30 = vld [vmem:[#allocation25] sm:$0xff] }
0x1025   : > { %v9717_v46 = vadd.f32 %v9716_v29, %v5139_v39 }
0x1026   : > { %v9715_v47 = vadd.f32 %v9714_v37, %v11609_v31  ;;  %v9747_v53 = vadd.f32 %v9746_v18, %v11609_v31  ;;  %v5603_v18 = vld [vmem:[#allocation25 + $0x8] sm:$0xff] }
0x1027   : > { %v9718_v52 = vadd.f32 %v9717_v46, %v11609_v31  ;;  %v8590_v14 = vpop.f32.mrb[82].mxu1 }
0x1028   : > { %v6346_v54 = vmul.f32 %v9715_v47, %v11617_v45  ;;  %v9721_v55 = vadd.f32 %v9720_v40, %v8590_v14  ;;  %v5149_v56 = vpop.f32.mrb[83].mxu1 }
0x1029   : > { %v6345_v34 = vmul.f32 %v9718_v52, %v11617_v45  ;;  %v9724_v61 = vadd.f32 %v9723_v48, %v5149_v56  ;;  %8641 = vmatprep.mubr.f32.mxu0 %v9718_v52  ;;  %v10044_v52 = vld [vmem:[%s11333_s15 + $0x60] sm:$0xff] }
0x102a   : > { %6362 = vst [vmem:[%s11623_s3 + $0x8] sm:$0xff] %v6346_v54  ;;  %v6348_v50 = vmul.f32 %v9721_v55, %v11617_v45  ;;  %8642 = vmatmul.mubr.f32.vlgmr.msra.gmra.mrb[144].mxu0 %v9715_v47  ;;  %v9744_v47 = vadd.f32 %v9743_v26, %v11609_v31  ;;  %v9752_v14 = vadd.f32 %v10044_v52, %v11598_v21  ;;  %v5611_v52 = vld [vmem:[#allocation25 + $0x48] sm:$0xff] }
0x102b   : > { %6361 = vst [vmem:[%s11623_s3] sm:$0xff] %v6345_v34  ;;  %v6347_v63 = vmul.f32 %v9724_v61, %v11617_v45  ;;  %v8593_v0 = vpop.f32.mrb[84].mxu1  ;;  %8644 = vmatprep.mubr.f32.mxu0 %v9724_v61  ;;  %v9750_v61 = vadd.f32 %v9749_v44, %v11609_v31  ;;  %v5608_v44 = vld [vmem:[#allocation25 + $0x30] sm:$0xff] }
0x102c   : > { %6364 = vst [vmem:[%s11623_s3 + $0x18] sm:$0xff] %v6348_v50  ;;  %v9727_v7 = vadd.f32 %v9726_v12, %v8593_v0  ;;  %v5159_v8 = vpop.f32.mrb[85].mxu1  ;;  %v10045_v12 = vld [vmem:[%s11333_s15 + $0x78] sm:$0xff]  ;;  %v9753_v0 = vadd.f32 %v9752_v14, %v11609_v31 }
0x102d   : > { %6363 = vst [vmem:[%s11623_s3 + $0x10] sm:$0xff] %v6347_v63  ;;  %v9730_v16 = vadd.f32 %v9729_v62, %v5159_v8  ;;  %v9755_v58 = vadd.f32 %v10045_v12, %v11598_v21  ;;  %v10046_v62 = vld [vmem:[%s11333_s15 + $0x70] sm:$0xff]  ;;  %s11871_s15 = sld [smem:[#allocation73_spill]] }
0x102e   : > { %v6350_v5 = vmul.f32 %v9727_v7, %v11617_v45  ;;  %8645 = vmatmul.mubr.f32.gmra.mrb[146].mxu0 %v9721_v55  ;;  %v9758_v50 = vadd.f32 %v10046_v62, %v11598_v21 }
0x102f   : > { %v6349_v22 = vmul.f32 %v9730_v16, %v11617_v45  ;;  %v8596_v23 = vpop.f32.mrb[86].mxu1  ;;  %8647 = vmatprep.mubr.f32.mxu0 %v9730_v16  ;;  %v9756_v10 = vadd.f32 %v9755_v58, %v11609_v31 }
0x1030   : > { %6366 = vst [vmem:[%s11623_s3 + $0x28] sm:$0xff] %v6350_v5  ;;  %v9733_v28 = vadd.f32 %v9732_v2, %v8596_v23  ;;  %v5169_v29 = vpop.f32.mrb[87].mxu1  ;;  %v9759_v15 = vadd.f32 %v9758_v50, %v11609_v31  ;;  %v5432_v31 = vld [vmem:[#allocation24 + $0x70] sm:$0xff] }
0x1031   : > { %6365 = vst [vmem:[%s11623_s3 + $0x20] sm:$0xff] %v6349_v22  ;;  %v9736_v32 = vadd.f32 %v9735_v20, %v5169_v29  ;;  %v5433_v29 = vld [vmem:[#allocation24 + $0x78] sm:$0xff] }
0x1032   : > { %v6352_v37 = vmul.f32 %v9733_v28, %v11617_v45  ;;  %8648 = vmatmul.mubr.f32.gmra.mrb[148].mxu0 %v9727_v7 }
0x1033   : > { %v6351_v39 = vmul.f32 %v9736_v32, %v11617_v45  ;;  %v8599_v40 = vpop.f32.mrb[88].mxu1  ;;  %8650 = vmatprep.mubr.f32.mxu0 %v9736_v32  ;;  %v5604_v32 = vld [vmem:[#allocation25 + $0x10] sm:$0xff]  ;;  %v6823_v58 = vld [vmem:[%s11871_s15] ss:$0 sm:$0xff]  ;;  %s11706_s15 = scalar_lea.vmem %s10974_s4, %s11323_s1 }
0x1034   : > { %6368 = vst [vmem:[%s11623_s3 + $0x38] sm:$0xff] %v6352_v37  ;;  %v9739_v46 = vadd.f32 %v9738_v13, %v8599_v40  ;;  %v5179_v48 = vpop.f32.mrb[89].mxu1  ;;  %v9581_v13 = vpack.c.bf16 %v5433_v29, %v5432_v31  ;;  %v5605_v37 = vld [vmem:[#allocation25 + $0x18] sm:$0xff]  ;;  %v5606_v40 = vld [vmem:[#allocation25 + $0x20] sm:$0xff] }
0x1035   : > { %6367 = vst [vmem:[%s11623_s3 + $0x30] sm:$0xff] %v6351_v39  ;;  %v9742_v38 = vadd.f32 %v9741_v36, %v5179_v48  ;;  %v9585_v36 = vpack.c.bf16 %v5603_v18, %v5602_v30  ;;  %v9589_v39 = vpack.c.bf16 %v5605_v37, %v5604_v32 }
0x1036   : > { %v6354_v54 = vmul.f32 %v9739_v46, %v11617_v45  ;;  %8651 = vmatmul.mubr.f32.gmra.mrb[150].mxu0 %v9733_v28  ;;  %9582 = vmatprep.subr.bf16.mxu1 %v9581_v13 }
0x1037   : > { %v6353_v55 = vmul.f32 %v9742_v38, %v11617_v45  ;;  %v8602_v56 = vpop.f32.mrb[90].mxu1  ;;  %8653 = vmatprep.mubr.f32.mxu0 %v9742_v38  ;;  %9584 = vmatpush3.bf16.msra.mxu1 %v9581_v13  ;;  %v5612_v38 = vld [vmem:[#allocation25 + $0x50] sm:$0xff] }
0x1038   : > { %6370 = vst [vmem:[%s11623_s3 + $0x48] sm:$0xff] %v6354_v54  ;;  %v9745_v60 = vadd.f32 %v9744_v47, %v8602_v56  ;;  %v5189_v34 = vpop.f32.mrb[91].mxu1  ;;  %9586 = vmatprep.subr.bf16.mxu0 %v9585_v36  ;;  %v5610_v47 = vld [vmem:[#allocation25 + $0x40] sm:$0xff]  ;;  %v5615_v56 = vld [vmem:[#allocation25 + $0x68] sm:$0xff] }
0x1039   : > { %6369 = vst [vmem:[%s11623_s3 + $0x40] sm:$0xff] %v6353_v55  ;;  %v9748_v63 = vadd.f32 %v9747_v53, %v5189_v34  ;;  %9588 = vmatpush3.bf16.msra.mxu0 %v9585_v36  ;;  %v9601_v14 = vpack.c.bf16 %v5611_v52, %v5610_v47  ;;  %v5613_v53 = vld [vmem:[#allocation25 + $0x58] sm:$0xff]  ;;  %v5614_v55 = vld [vmem:[#allocation25 + $0x60] sm:$0xff] }
0x103a   : > { %v6356_v4 = vmul.f32 %v9745_v60, %v11617_v45  ;;  %8654 = vmatmul.mubr.f32.gmra.mrb[152].mxu0 %v9739_v46  ;;  %9590 = vmatprep.subr.bf16.mxu0 %v9589_v39  ;;  %v5609_v46 = vld [vmem:[#allocation25 + $0x38] sm:$0xff]  ;;  %v9605_v54 = vpack.c.bf16 %v5613_v53, %v5612_v38  ;;  %v9609_v12 = vpack.c.bf16 %v5615_v56, %v5614_v55 }
0x103b   : > { %v6355_v6 = vmul.f32 %v9748_v63, %v11617_v45  ;;  %v8605_v7 = vpop.f32.mrb[92].mxu1  ;;  %8656 = vmatprep.mubr.f32.mxu0 %v9748_v63  ;;  %v9597_v48 = vpack.c.bf16 %v5609_v46, %v5608_v44 }
0x103c   : > { %6372 = vst [vmem:[%s11623_s3 + $0x58] sm:$0xff] %v6356_v4  ;;  %v9751_v8 = vadd.f32 %v9750_v61, %v8605_v7  ;;  %v5199_v2 = vpop.f32.mrb[93].mxu1 }
0x103d   : > { %6371 = vst [vmem:[%s11623_s3 + $0x50] sm:$0xff] %v6355_v6  ;;  %v9754_v21 = vadd.f32 %v9753_v0, %v5199_v2  ;;  %9592 = vmatpush3.bf16.msra.mxu0 %v9589_v39 }
0x103e   : > { %v6358_v16 = vmul.f32 %v9751_v8, %v11617_v45  ;;  %8657 = vmatmul.mubr.f32.gmra.mrb[154].mxu0 %v9745_v60 }
0x103f   : > { %v6357_v20 = vmul.f32 %v9754_v21, %v11617_v45  ;;  %v8608_v5 = vpop.f32.mrb[94].mxu1  ;;  %8659 = vmatprep.mubr.f32.mxu0 %v9754_v21 }
0x1040   : > { %6374 = vst [vmem:[%s11623_s3 + $0x68] sm:$0xff] %v6358_v16  ;;  %v9757_v22 = vadd.f32 %v9756_v10, %v8608_v5  ;;  %v5209_v23 = vpop.f32.mrb[95].mxu1 }
0x1041   : > { %6373 = vst [vmem:[%s11623_s3 + $0x60] sm:$0xff] %v6357_v20  ;;  %v9760_v24 = vadd.f32 %v9759_v15, %v5209_v23 }
0x1042   : > { %v6360_v26 = vmul.f32 %v9757_v22, %v11617_v45  ;;  %8660 = vmatmul.mubr.f32.gmra.mrb[156].mxu0 %v9751_v8 }
0x1043   : > { %v6359_v28 = vmul.f32 %v9760_v24, %v11617_v45  ;;  %8662 = vmatprep.mubr.f32.mxu0 %v9760_v24  ;;  %v9593_v45 = vpack.c.bf16 %v5607_v42, %v5606_v40 }
0x1044   : > { %6376 = vst [vmem:[%s11623_s3 + $0x78] sm:$0xff] %v6360_v26 }
0x1045   : > { %6375 = vst [vmem:[%s11623_s3 + $0x70] sm:$0xff] %v6359_v28  ;;  %9594 = vmatprep.subr.bf16.mxu0 %v9593_v45  ;;  %s11876_s3 = sld [smem:[#allocation44_spill]] }
0x1046   : > { %8663 = vmatmul.mubr.f32.gmra.mrb[158].mxu0 %v9757_v22 }
0x1047   : > { %9596 = vmatpush3.bf16.msra.mxu0 %v9593_v45 }
0x1048   : > { %9598 = vmatprep.subr.bf16.mxu0 %v9597_v48 }
0x104b   : > { %9600 = vmatpush3.bf16.msra.mxu0 %v9597_v48 }
0x104c   : > { %9602 = vmatprep.subr.bf16.mxu0 %v9601_v14 }
0x104f   : > { %9604 = vmatpush3.bf16.msra.mxu0 %v9601_v14 }
0x1050   : > { %9606 = vmatprep.subr.bf16.mxu0 %v9605_v54 }
0x1053   : > { %9608 = vmatpush3.bf16.msra.mxu0 %v9605_v54 }
0x1054   : > { %9610 = vmatprep.subr.bf16.mxu0 %v9609_v12 }
0x1057   : > { %9612 = vmatpush3.bf16.msra.mxu0 %v9609_v12 }
0x10fd   : > { %v8643_v60 = vpop.f32.mrb[144].mxu0 }
0x10fe   : > { %v5329_v34 = vadd.f32 %v8643_v60, %v6823_v58  ;;  %v5323_v61 = vpop.f32.mrb[145].mxu0 }
0x10ff   : > { %v5324_v62 = vadd.f32 %v6823_v58, %v5323_v61  ;;  %v5617_v61 = vld [vmem:[#allocation25 + $0x78] sm:$0xff] }
0x1100   : > { %v5403_v0 = vmax.f32 %v5329_v34, 0.0  ;;  %v5616_v34 = vld [vmem:[#allocation25 + $0x70] sm:$0xff] }
0x1101   : > { %v5402_v50 = vmax.f32 %v5324_v62, 0.0  ;;  %v8646_v63 = vpop.f32.mrb[146].mxu0  ;;  %v9613_v62 = vpack.c.bf16 %v5617_v61, %v5616_v34 }
0x1102   : > { %v5339_v4 = vadd.f32 %v8646_v63, %v6823_v58  ;;  %v5333_v6 = vpop.f32.mrb[147].mxu0  ;;  %v5787_v63 = vld [vmem:[#allocation27 + $0x8] sm:$0xff] }
0x1103   : > { %v5334_v7 = vadd.f32 %v6823_v58, %v5333_v6  ;;  %8697 = vmatprep.mubr.f32.mxu1 %v5402_v50  ;;  %9614 = vmatprep.subr.bf16.mxu0 %v9613_v62  ;;  %v5786_v50 = vld [vmem:[#allocation27] sm:$0xff]  ;;  %v5789_v6 = vld [vmem:[#allocation27 + $0x18] sm:$0xff] }
0x1104   : > { %8698 = vmatmul.mubr.f32.vlgmr.msra.gmra.mrb[128].mxu1 %v5403_v0  ;;  %v5405_v10 = vmax.f32 %v5339_v4, 0.0  ;;  %9616 = vmatpush3.bf16.msra.mxu0 %v9613_v62  ;;  %v5788_v0 = vld [vmem:[#allocation27 + $0x10] sm:$0xff]  ;;  %v9617_v4 = vpack.c.bf16 %v5787_v63, %v5786_v50 }
0x1105   : > { %v5404_v8 = vmax.f32 %v5334_v7, 0.0  ;;  %v8649_v2 = vpop.f32.mrb[148].mxu0  ;;  %v9621_v7 = vpack.c.bf16 %v5789_v6, %v5788_v0 }
0x1106   : > { %v5349_v21 = vadd.f32 %v8649_v2, %v6823_v58  ;;  %v5343_v15 = vpop.f32.mrb[149].mxu0  ;;  %v5791_v2 = vld [vmem:[#allocation27 + $0x28] sm:$0xff]  ;;  %9618 = vmatprep.subr.bf16.mxu1 %v9617_v4 }
0x1107   : > { %v5344_v16 = vadd.f32 %v6823_v58, %v5343_v15  ;;  %8700 = vmatprep.mubr.f32.mxu1 %v5404_v8  ;;  %v5790_v8 = vld [vmem:[#allocation27 + $0x20] sm:$0xff]  ;;  %9620 = vmatpush3.bf16.msra.mxu1 %v9617_v4 }
0x1108   : > { %8701 = vmatmul.mubr.f32.gmra.mrb[130].mxu1 %v5405_v10  ;;  %v5407_v22 = vmax.f32 %v5349_v21, 0.0  ;;  %9622 = vmatprep.subr.bf16.mxu1 %v9621_v7  ;;  %v5792_v10 = vld [vmem:[#allocation27 + $0x30] sm:$0xff]  ;;  %v5793_v21 = vld [vmem:[#allocation27 + $0x38] sm:$0xff] }
0x1109   : > { %v5406_v20 = vmax.f32 %v5344_v16, 0.0  ;;  %v8652_v5 = vpop.f32.mrb[150].mxu0  ;;  %v9629_v15 = vpack.c.bf16 %v5793_v21, %v5792_v10  ;;  %v5794_v16 = vld [vmem:[#allocation27 + $0x40] sm:$0xff] }
0x110a   : > { %v5359_v23 = vadd.f32 %v8652_v5, %v6823_v58  ;;  %v5353_v24 = vpop.f32.mrb[151].mxu0 }
0x110b   : > { %v5354_v26 = vadd.f32 %v6823_v58, %v5353_v24  ;;  %8703 = vmatprep.mubr.f32.mxu1 %v5406_v20  ;;  %9624 = vmatpush3.bf16.msra.mxu1 %v9621_v7  ;;  %v5795_v20 = vld [vmem:[#allocation27 + $0x48] sm:$0xff] }
0x110c   : > { %8704 = vmatmul.mubr.f32.gmra.mrb[132].mxu1 %v5407_v22  ;;  %v5409_v29 = vmax.f32 %v5359_v23, 0.0  ;;  %v9633_v5 = vpack.c.bf16 %v5795_v20, %v5794_v16  ;;  %v5796_v22 = vld [vmem:[#allocation27 + $0x50] sm:$0xff]  ;;  %v5797_v23 = vld [vmem:[#allocation27 + $0x58] sm:$0xff] }
0x110d   : > { %v5408_v28 = vmax.f32 %v5354_v26, 0.0  ;;  %v8655_v31 = vpop.f32.mrb[152].mxu0  ;;  %v9637_v24 = vpack.c.bf16 %v5797_v23, %v5796_v22  ;;  %v5798_v26 = vld [vmem:[#allocation27 + $0x60] sm:$0xff] }
0x110e   : > { %v5369_v13 = vadd.f32 %v8655_v31, %v6823_v58  ;;  %v5363_v30 = vpop.f32.mrb[153].mxu0 }
0x110f   : > { %v5364_v18 = vadd.f32 %v6823_v58, %v5363_v30  ;;  %8706 = vmatprep.mubr.f32.mxu1 %v5408_v28  ;;  %v5799_v28 = vld [vmem:[#allocation27 + $0x68] sm:$0xff] }
0x1110   : > { %8707 = vmatmul.mubr.f32.gmra.mrb[134].mxu1 %v5409_v29  ;;  %v5411_v37 = vmax.f32 %v5369_v13, 0.0  ;;  %v9641_v31 = vpack.c.bf16 %v5799_v28, %v5798_v26  ;;  %v6824_v29 = vld [vmem:[%s11872_s8] ss:$0 sm:$0xff] }
0x1111   : > { %v5410_v32 = vmax.f32 %v5364_v18, 0.0  ;;  %v8658_v36 = vpop.f32.mrb[154].mxu0 }
0x1112   : > { %v5379_v39 = vadd.f32 %v8658_v36, %v6823_v58  ;;  %v5373_v40 = vpop.f32.mrb[155].mxu0 }
0x1113   : > { %v5374_v42 = vadd.f32 %v6823_v58, %v5373_v40  ;;  %8709 = vmatprep.mubr.f32.mxu1 %v5410_v32 }
0x1114   : > { %8710 = vmatmul.mubr.f32.gmra.mrb[136].mxu1 %v5411_v37  ;;  %v5413_v46 = vmax.f32 %v5379_v39, 0.0 }
0x1115   : > { %v5412_v45 = vmax.f32 %v5374_v42, 0.0  ;;  %v8661_v44 = vpop.f32.mrb[156].mxu0 }
0x1116   : > { %v5389_v48 = vadd.f32 %v8661_v44, %v6823_v58  ;;  %v5383_v47 = vpop.f32.mrb[157].mxu0 }
0x1117   : > { %v5384_v52 = vadd.f32 %v6823_v58, %v5383_v47  ;;  %8712 = vmatprep.mubr.f32.mxu1 %v5412_v45 }
0x1118   : > { %8713 = vmatmul.mubr.f32.gmra.mrb[138].mxu1 %v5413_v46  ;;  %v5415_v53 = vmax.f32 %v5389_v48, 0.0 }
0x1119   : > { %v5414_v14 = vmax.f32 %v5384_v52, 0.0  ;;  %v8664_v38 = vpop.f32.mrb[158].mxu0 }
0x111a   : > { %v5399_v54 = vadd.f32 %v8664_v38, %v6823_v58  ;;  %v5393_v55 = vpop.f32.mrb[159].mxu0 }
0x111b   : > { %v5394_v56 = vadd.f32 %v6823_v58, %v5393_v55  ;;  %8715 = vmatprep.mubr.f32.mxu1 %v5414_v14  ;;  %v9625_v58 = vpack.c.bf16 %v5791_v2, %v5790_v8 }
0x111c   : > { %8716 = vmatmul.mubr.f32.gmra.mrb[140].mxu1 %v5415_v53  ;;  %v5417_v60 = vmax.f32 %v5399_v54, 0.0 }
0x111d   : > { %v5416_v12 = vmax.f32 %v5394_v56, 0.0  ;;  %9626 = vmatprep.subr.bf16.mxu1 %v9625_v58 }
0x111e   : > { %9628 = vmatpush3.bf16.msra.mxu1 %v9625_v58 }
0x111f   : > { %8718 = vmatprep.mubr.f32.mxu1 %v5416_v12  ;;  %9630 = vmatprep.subr.bf16.mxu1 %v9629_v15 }
0x1120   : > { %8719 = vmatmul.mubr.f32.gmra.mrb[142].mxu1 %v5417_v60 }
0x1122   : > { %9632 = vmatpush3.bf16.msra.mxu1 %v9629_v15 }
0x1123   : > { %9634 = vmatprep.subr.bf16.mxu1 %v9633_v5 }
0x1126   : > { %9636 = vmatpush3.bf16.msra.mxu1 %v9633_v5 }
0x1127   : > { %9638 = vmatprep.subr.bf16.mxu1 %v9637_v24 }
0x112a   : > { %9640 = vmatpush3.bf16.msra.mxu1 %v9637_v24 }
0x112b   : > { %9642 = vmatprep.subr.bf16.mxu1 %v9641_v31 }
0x112e   : > { %9644 = vmatpush3.bf16.msra.mxu1 %v9641_v31 }
0x11d7   : > { %v8699_v13 = vpop.f32.mrb[128].mxu1 }
0x11d8   : > { %v5513_v30 = vadd.f32 %v8699_v13, %v6824_v29  ;;  %v5507_v18 = vpop.f32.mrb[129].mxu1 }
0x11d9   : > { %v5508_v32 = vadd.f32 %v6824_v29, %v5507_v18  ;;  %v5801_v18 = vld [vmem:[#allocation27 + $0x78] sm:$0xff] }
0x11da   : > { %v5587_v39 = vmax.f32 %v5513_v30, 0.0  ;;  %v5800_v30 = vld [vmem:[#allocation27 + $0x70] sm:$0xff] }
0x11db   : > { %v5586_v36 = vmax.f32 %v5508_v32, 0.0  ;;  %v8702_v37 = vpop.f32.mrb[130].mxu1  ;;  %v9645_v32 = vpack.c.bf16 %v5801_v18, %v5800_v30 }
0x11dc   : > { %v5523_v40 = vadd.f32 %v8702_v37, %v6824_v29  ;;  %v5517_v42 = vpop.f32.mrb[131].mxu1  ;;  %v5971_v37 = vld [vmem:[#allocation28 + $0x8] sm:$0xff] }
0x11dd   : > { %v5518_v45 = vadd.f32 %v6824_v29, %v5517_v42  ;;  %8753 = vmatprep.mubr.f32.mxu0 %v5586_v36  ;;  %9646 = vmatprep.subr.bf16.mxu1 %v9645_v32  ;;  %v5970_v36 = vld [vmem:[#allocation28] sm:$0xff]  ;;  %v5973_v42 = vld [vmem:[#allocation28 + $0x18] sm:$0xff] }
0x11de   : > { %8754 = vmatmul.mubr.f32.vlgmr.msra.gmra.mrb[160].mxu0 %v5587_v39  ;;  %v5589_v48 = vmax.f32 %v5523_v40, 0.0  ;;  %9648 = vmatpush3.bf16.msra.mxu1 %v9645_v32  ;;  %v5972_v39 = vld [vmem:[#allocation28 + $0x10] sm:$0xff]  ;;  %v9649_v40 = vpack.c.bf16 %v5971_v37, %v5970_v36 }
0x11df   : > { %v5588_v44 = vmax.f32 %v5518_v45, 0.0  ;;  %v8705_v46 = vpop.f32.mrb[132].mxu1  ;;  %v9653_v45 = vpack.c.bf16 %v5973_v42, %v5972_v39 }
0x11e0   : > { %v5533_v47 = vadd.f32 %v8705_v46, %v6824_v29  ;;  %v5527_v52 = vpop.f32.mrb[133].mxu1  ;;  %v5975_v46 = vld [vmem:[#allocation28 + $0x28] sm:$0xff]  ;;  %9650 = vmatprep.subr.bf16.mxu0 %v9649_v40 }
0x11e1   : > { %v5528_v14 = vadd.f32 %v6824_v29, %v5527_v52  ;;  %8756 = vmatprep.mubr.f32.mxu0 %v5588_v44  ;;  %v5974_v44 = vld [vmem:[#allocation28 + $0x20] sm:$0xff]  ;;  %9652 = vmatpush3.bf16.msra.mxu0 %v9649_v40 }
0x11e2   : > { %8757 = vmatmul.mubr.f32.gmra.mrb[162].mxu0 %v5589_v48  ;;  %v5591_v54 = vmax.f32 %v5533_v47, 0.0  ;;  %9654 = vmatprep.subr.bf16.mxu0 %v9653_v45  ;;  %v5976_v48 = vld [vmem:[#allocation28 + $0x30] sm:$0xff]  ;;  %v5977_v47 = vld [vmem:[#allocation28 + $0x38] sm:$0xff] }
0x11e3   : > { %v5590_v38 = vmax.f32 %v5528_v14, 0.0  ;;  %v8708_v53 = vpop.f32.mrb[134].mxu1  ;;  %v9661_v52 = vpack.c.bf16 %v5977_v47, %v5976_v48  ;;  %v5978_v14 = vld [vmem:[#allocation28 + $0x40] sm:$0xff] }
0x11e4   : > { %v5543_v55 = vadd.f32 %v8708_v53, %v6824_v29  ;;  %v5537_v56 = vpop.f32.mrb[135].mxu1 }
0x11e5   : > { %v5538_v12 = vadd.f32 %v6824_v29, %v5537_v56  ;;  %8759 = vmatprep.mubr.f32.mxu0 %v5590_v38  ;;  %9656 = vmatpush3.bf16.msra.mxu0 %v9653_v45  ;;  %v5979_v38 = vld [vmem:[#allocation28 + $0x48] sm:$0xff] }
0x11e6   : > { %8760 = vmatmul.mubr.f32.gmra.mrb[164].mxu0 %v5591_v54  ;;  %v5593_v61 = vmax.f32 %v5543_v55, 0.0  ;;  %v9665_v53 = vpack.c.bf16 %v5979_v38, %v5978_v14  ;;  %v5980_v54 = vld [vmem:[#allocation28 + $0x50] sm:$0xff]  ;;  %v5981_v55 = vld [vmem:[#allocation28 + $0x58] sm:$0xff] }
0x11e7   : > { %v5592_v60 = vmax.f32 %v5538_v12, 0.0  ;;  %v8711_v34 = vpop.f32.mrb[136].mxu1  ;;  %v9669_v56 = vpack.c.bf16 %v5981_v55, %v5980_v54  ;;  %v5982_v12 = vld [vmem:[#allocation28 + $0x60] sm:$0xff] }
0x11e8   : > { %v5553_v62 = vadd.f32 %v8711_v34, %v6824_v29  ;;  %v5547_v50 = vpop.f32.mrb[137].mxu1 }
0x11e9   : > { %v5548_v63 = vadd.f32 %v6824_v29, %v5547_v50  ;;  %8762 = vmatprep.mubr.f32.mxu0 %v5592_v60  ;;  %v5983_v60 = vld [vmem:[#allocation28 + $0x68] sm:$0xff] }
0x11ea   : > { %8763 = vmatmul.mubr.f32.gmra.mrb[166].mxu0 %v5593_v61  ;;  %v5595_v6 = vmax.f32 %v5553_v62, 0.0  ;;  %v9673_v34 = vpack.c.bf16 %v5983_v60, %v5982_v12  ;;  %v6825_v61 = vld [vmem:[%s11873_s23] ss:$0 sm:$0xff] }
0x11eb   : > { %v5594_v0 = vmax.f32 %v5548_v63, 0.0  ;;  %v8714_v4 = vpop.f32.mrb[138].mxu1 }
0x11ec   : > { %v5563_v7 = vadd.f32 %v8714_v4, %v6824_v29  ;;  %v5557_v8 = vpop.f32.mrb[139].mxu1 }
0x11ed   : > { %v5558_v2 = vadd.f32 %v6824_v29, %v5557_v8  ;;  %8765 = vmatprep.mubr.f32.mxu0 %v5594_v0 }
0x11ee   : > { %8766 = vmatmul.mubr.f32.gmra.mrb[168].mxu0 %v5595_v6  ;;  %v5597_v21 = vmax.f32 %v5563_v7, 0.0 }
0x11ef   : > { %v5596_v58 = vmax.f32 %v5558_v2, 0.0  ;;  %v8717_v10 = vpop.f32.mrb[140].mxu1 }
0x11f0   : > { %v5573_v15 = vadd.f32 %v8717_v10, %v6824_v29  ;;  %v5567_v16 = vpop.f32.mrb[141].mxu1 }
0x11f1   : > { %v5568_v20 = vadd.f32 %v6824_v29, %v5567_v16  ;;  %8768 = vmatprep.mubr.f32.mxu0 %v5596_v58 }
0x11f2   : > { %8769 = vmatmul.mubr.f32.gmra.mrb[170].mxu0 %v5597_v21  ;;  %v5599_v23 = vmax.f32 %v5573_v15, 0.0 }
0x11f3   : > { %v5598_v5 = vmax.f32 %v5568_v20, 0.0  ;;  %v8720_v22 = vpop.f32.mrb[142].mxu1 }
0x11f4   : > { %v5583_v24 = vadd.f32 %v8720_v22, %v6824_v29  ;;  %v5577_v26 = vpop.f32.mrb[143].mxu1 }
0x11f5   : > { %v5578_v28 = vadd.f32 %v6824_v29, %v5577_v26  ;;  %8771 = vmatprep.mubr.f32.mxu0 %v5598_v5  ;;  %v9657_v29 = vpack.c.bf16 %v5975_v46, %v5974_v44 }
0x11f6   : > { %8772 = vmatmul.mubr.f32.gmra.mrb[172].mxu0 %v5599_v23  ;;  %v5601_v13 = vmax.f32 %v5583_v24, 0.0 }
0x11f7   : > { %v5600_v31 = vmax.f32 %v5578_v28, 0.0  ;;  %9658 = vmatprep.subr.bf16.mxu0 %v9657_v29 }
0x11f8   : > { %9660 = vmatpush3.bf16.msra.mxu0 %v9657_v29 }
0x11f9   : > { %8774 = vmatprep.mubr.f32.mxu0 %v5600_v31  ;;  %9662 = vmatprep.subr.bf16.mxu0 %v9661_v52 }
0x11fa   : > { %8775 = vmatmul.mubr.f32.gmra.mrb[174].mxu0 %v5601_v13 }
0x11fc   : > { %9664 = vmatpush3.bf16.msra.mxu0 %v9661_v52 }
0x11fd   : > { %9666 = vmatprep.subr.bf16.mxu0 %v9665_v53 }
0x1200   : > { %9668 = vmatpush3.bf16.msra.mxu0 %v9665_v53 }
0x1201   : > { %9670 = vmatprep.subr.bf16.mxu0 %v9669_v56 }
0x1204   : > { %9672 = vmatpush3.bf16.msra.mxu0 %v9669_v56 }
0x1205   : > { %9674 = vmatprep.subr.bf16.mxu0 %v9673_v34 }
0x1208   : > { %9676 = vmatpush3.bf16.msra.mxu0 %v9673_v34 }
0x12b1   : > { %v8755_v62 = vpop.f32.mrb[160].mxu0 }
0x12b2   : > { %v5697_v50 = vadd.f32 %v8755_v62, %v6825_v61  ;;  %v5691_v63 = vpop.f32.mrb[161].mxu0 }
0x12b3   : > { %v5692_v0 = vadd.f32 %v6825_v61, %v5691_v63  ;;  %v5985_v63 = vld [vmem:[#allocation28 + $0x78] sm:$0xff] }
0x12b4   : > { %v5771_v7 = vmax.f32 %v5697_v50, 0.0  ;;  %v5984_v50 = vld [vmem:[#allocation28 + $0x70] sm:$0xff] }
0x12b5   : > { %v5770_v4 = vmax.f32 %v5692_v0, 0.0  ;;  %v8758_v6 = vpop.f32.mrb[162].mxu0  ;;  %v9677_v0 = vpack.c.bf16 %v5985_v63, %v5984_v50 }
0x12b6   : > { %v5707_v8 = vadd.f32 %v8758_v6, %v6825_v61  ;;  %v5701_v2 = vpop.f32.mrb[163].mxu0  ;;  %v6155_v6 = vld [vmem:[#allocation30 + $0x8] sm:$0xff] }
0x12b7   : > { %v5702_v58 = vadd.f32 %v6825_v61, %v5701_v2  ;;  %8809 = vmatprep.mubr.f32.mxu1 %v5770_v4  ;;  %9678 = vmatprep.subr.bf16.mxu0 %v9677_v0  ;;  %v6154_v4 = vld [vmem:[#allocation30] sm:$0xff]  ;;  %v6157_v2 = vld [vmem:[#allocation30 + $0x18] sm:$0xff] }
0x12b8   : > { %8810 = vmatmul.mubr.f32.vlgmr.msra.gmra.mrb[144].mxu1 %v5771_v7  ;;  %v5773_v15 = vmax.f32 %v5707_v8, 0.0  ;;  %9680 = vmatpush3.bf16.msra.mxu0 %v9677_v0  ;;  %v6156_v7 = vld [vmem:[#allocation30 + $0x10] sm:$0xff]  ;;  %v9681_v8 = vpack.c.bf16 %v6155_v6, %v6154_v4 }
0x12b9   : > { %v5772_v10 = vmax.f32 %v5702_v58, 0.0  ;;  %v8761_v21 = vpop.f32.mrb[164].mxu0  ;;  %v9685_v58 = vpack.c.bf16 %v6157_v2, %v6156_v7 }
0x12ba   : > { %v5717_v16 = vadd.f32 %v8761_v21, %v6825_v61  ;;  %v5711_v20 = vpop.f32.mrb[165].mxu0  ;;  %v6159_v21 = vld [vmem:[#allocation30 + $0x28] sm:$0xff]  ;;  %9682 = vmatprep.subr.bf16.mxu1 %v9681_v8 }
0x12bb   : > { %v5712_v5 = vadd.f32 %v6825_v61, %v5711_v20  ;;  %8812 = vmatprep.mubr.f32.mxu1 %v5772_v10  ;;  %v6158_v10 = vld [vmem:[#allocation30 + $0x20] sm:$0xff]  ;;  %9684 = vmatpush3.bf16.msra.mxu1 %v9681_v8 }
0x12bc   : > { %8813 = vmatmul.mubr.f32.gmra.mrb[146].mxu1 %v5773_v15  ;;  %v5775_v24 = vmax.f32 %v5717_v16, 0.0  ;;  %9686 = vmatprep.subr.bf16.mxu1 %v9685_v58  ;;  %v6160_v15 = vld [vmem:[#allocation30 + $0x30] sm:$0xff]  ;;  %v6161_v16 = vld [vmem:[#allocation30 + $0x38] sm:$0xff] }
0x12bd   : > { %v5774_v22 = vmax.f32 %v5712_v5, 0.0  ;;  %v8764_v23 = vpop.f32.mrb[166].mxu0  ;;  %v9693_v20 = vpack.c.bf16 %v6161_v16, %v6160_v15  ;;  %v6162_v5 = vld [vmem:[#allocation30 + $0x40] sm:$0xff] }
0x12be   : > { %v5727_v26 = vadd.f32 %v8764_v23, %v6825_v61  ;;  %v5721_v28 = vpop.f32.mrb[167].mxu0 }
0x12bf   : > { %v5722_v31 = vadd.f32 %v6825_v61, %v5721_v28  ;;  %8815 = vmatprep.mubr.f32.mxu1 %v5774_v22  ;;  %9688 = vmatpush3.bf16.msra.mxu1 %v9685_v58  ;;  %v6163_v22 = vld [vmem:[#allocation30 + $0x48] sm:$0xff] }
0x12c0   : > { %8816 = vmatmul.mubr.f32.gmra.mrb[148].mxu1 %v5775_v24  ;;  %v5777_v18 = vmax.f32 %v5727_v26, 0.0  ;;  %v9697_v23 = vpack.c.bf16 %v6163_v22, %v6162_v5  ;;  %v6164_v24 = vld [vmem:[#allocation30 + $0x50] sm:$0xff]  ;;  %v6165_v26 = vld [vmem:[#allocation30 + $0x58] sm:$0xff] }
0x12c1   : > { %v5776_v13 = vmax.f32 %v5722_v31, 0.0  ;;  %v8767_v30 = vpop.f32.mrb[168].mxu0  ;;  %v9701_v28 = vpack.c.bf16 %v6165_v26, %v6164_v24  ;;  %v6166_v31 = vld [vmem:[#allocation30 + $0x60] sm:$0xff] }
0x12c2   : > { %v5737_v32 = vadd.f32 %v8767_v30, %v6825_v61  ;;  %v5731_v36 = vpop.f32.mrb[169].mxu0 }
0x12c3   : > { %v5732_v37 = vadd.f32 %v6825_v61, %v5731_v36  ;;  %8818 = vmatprep.mubr.f32.mxu1 %v5776_v13  ;;  %v6167_v13 = vld [vmem:[#allocation30 + $0x68] sm:$0xff] }
0x12c4   : > { %8819 = vmatmul.mubr.f32.gmra.mrb[150].mxu1 %v5777_v18  ;;  %v5779_v42 = vmax.f32 %v5737_v32, 0.0  ;;  %v9705_v30 = vpack.c.bf16 %v6167_v13, %v6166_v31  ;;  %v6826_v18 = vld [vmem:[%s11874_s18] ss:$0 sm:$0xff] }
0x12c5   : > { %v5778_v39 = vmax.f32 %v5732_v37, 0.0  ;;  %v8770_v40 = vpop.f32.mrb[170].mxu0 }
0x12c6   : > { %v5747_v45 = vadd.f32 %v8770_v40, %v6825_v61  ;;  %v5741_v44 = vpop.f32.mrb[171].mxu0 }
0x12c7   : > { %v5742_v46 = vadd.f32 %v6825_v61, %v5741_v44  ;;  %8821 = vmatprep.mubr.f32.mxu1 %v5778_v39 }
0x12c8   : > { %8822 = vmatmul.mubr.f32.gmra.mrb[152].mxu1 %v5779_v42  ;;  %v5781_v47 = vmax.f32 %v5747_v45, 0.0 }
0x12c9   : > { %v5780_v29 = vmax.f32 %v5742_v46, 0.0  ;;  %v8773_v48 = vpop.f32.mrb[172].mxu0 }
0x12ca   : > { %v5757_v52 = vadd.f32 %v8773_v48, %v6825_v61  ;;  %v5751_v14 = vpop.f32.mrb[173].mxu0 }
0x12cb   : > { %v5752_v38 = vadd.f32 %v6825_v61, %v5751_v14  ;;  %8824 = vmatprep.mubr.f32.mxu1 %v5780_v29 }
0x12cc   : > { %8825 = vmatmul.mubr.f32.gmra.mrb[154].mxu1 %v5781_v47  ;;  %v5783_v55 = vmax.f32 %v5757_v52, 0.0 }
0x12cd   : > { %v5782_v53 = vmax.f32 %v5752_v38, 0.0  ;;  %v8776_v54 = vpop.f32.mrb[174].mxu0 }
0x12ce   : > { %v5767_v56 = vadd.f32 %v8776_v54, %v6825_v61  ;;  %v5761_v12 = vpop.f32.mrb[175].mxu0 }
0x12cf   : > { %v5762_v60 = vadd.f32 %v6825_v61, %v5761_v12  ;;  %8827 = vmatprep.mubr.f32.mxu1 %v5782_v53  ;;  %v9689_v61 = vpack.c.bf16 %v6159_v21, %v6158_v10 }
0x12d0   : > { %8828 = vmatmul.mubr.f32.gmra.mrb[156].mxu1 %v5783_v55  ;;  %v5785_v62 = vmax.f32 %v5767_v56, 0.0 }
0x12d1   : > { %v5784_v34 = vmax.f32 %v5762_v60, 0.0  ;;  %9690 = vmatprep.subr.bf16.mxu1 %v9689_v61 }
0x12d2   : > { %9692 = vmatpush3.bf16.msra.mxu1 %v9689_v61 }
0x12d3   : > { %8830 = vmatprep.mubr.f32.mxu1 %v5784_v34  ;;  %9694 = vmatprep.subr.bf16.mxu1 %v9693_v20 }
0x12d4   : > { %8831 = vmatmul.mubr.f32.gmra.mrb[158].mxu1 %v5785_v62 }
0x12d6   : > { %9696 = vmatpush3.bf16.msra.mxu1 %v9693_v20 }
0x12d7   : > { %9698 = vmatprep.subr.bf16.mxu1 %v9697_v23 }
0x12da   : > { %9700 = vmatpush3.bf16.msra.mxu1 %v9697_v23 }
0x12db   : > { %9702 = vmatprep.subr.bf16.mxu1 %v9701_v28 }
0x12de   : > { %9704 = vmatpush3.bf16.msra.mxu1 %v9701_v28 }
0x12df   : > { %9706 = vmatprep.subr.bf16.mxu1 %v9705_v30 }
0x12e2   : > { %9708 = vmatpush3.bf16.msra.mxu1 %v9705_v30 }
0x138b   : > { %v8811_v32 = vpop.f32.mrb[144].mxu1 }
0x138c   : > { %v5881_v36 = vadd.f32 %v8811_v32, %v6826_v18  ;;  %v5875_v37 = vpop.f32.mrb[145].mxu1 }
0x138d   : > { %v5876_v39 = vadd.f32 %v6826_v18, %v5875_v37  ;;  %v6169_v37 = vld [vmem:[#allocation30 + $0x78] sm:$0xff] }
0x138e   : > { %v5955_v45 = vmax.f32 %v5881_v36, 0.0  ;;  %v6168_v36 = vld [vmem:[#allocation30 + $0x70] sm:$0xff] }
0x138f   : > { %v5954_v40 = vmax.f32 %v5876_v39, 0.0  ;;  %v8814_v42 = vpop.f32.mrb[146].mxu1  ;;  %v9709_v39 = vpack.c.bf16 %v6169_v37, %v6168_v36 }
0x1390   : > { %v5891_v44 = vadd.f32 %v8814_v42, %v6826_v18  ;;  %v5885_v46 = vpop.f32.mrb[147].mxu1 }
0x1391   : > { %v5886_v29 = vadd.f32 %v6826_v18, %v5885_v46  ;;  %8865 = vmatprep.mubr.f32.mxu0 %v5954_v40  ;;  %9710 = vmatprep.subr.bf16.mxu1 %v9709_v39  ;;  %v6827_v40 = vld [vmem:[%s11875_s2] ss:$0 sm:$0xff] }
0x1392   : > { %8866 = vmatmul.mubr.f32.vlgmr.msra.gmra.mrb[176].mxu0 %v5955_v45  ;;  %v5957_v52 = vmax.f32 %v5891_v44, 0.0  ;;  %9712 = vmatpush3.bf16.msra.mxu1 %v9709_v39 }
0x1393   : > { %v5956_v48 = vmax.f32 %v5886_v29, 0.0  ;;  %v8817_v47 = vpop.f32.mrb[148].mxu1 }
0x1394   : > { %v5901_v14 = vadd.f32 %v8817_v47, %v6826_v18  ;;  %v5895_v38 = vpop.f32.mrb[149].mxu1 }
0x1395   : > { %v5896_v53 = vadd.f32 %v6826_v18, %v5895_v38  ;;  %8868 = vmatprep.mubr.f32.mxu0 %v5956_v48 }
0x1396   : > { %8869 = vmatmul.mubr.f32.gmra.mrb[178].mxu0 %v5957_v52  ;;  %v5959_v56 = vmax.f32 %v5901_v14, 0.0 }
0x1397   : > { %v5958_v54 = vmax.f32 %v5896_v53, 0.0  ;;  %v8820_v55 = vpop.f32.mrb[150].mxu1 }
0x1398   : > { %v5911_v12 = vadd.f32 %v8820_v55, %v6826_v18  ;;  %v5905_v60 = vpop.f32.mrb[151].mxu1 }
0x1399   : > { %v5906_v34 = vadd.f32 %v6826_v18, %v5905_v60  ;;  %8871 = vmatprep.mubr.f32.mxu0 %v5958_v54 }
0x139a   : > { %8872 = vmatmul.mubr.f32.gmra.mrb[180].mxu0 %v5959_v56  ;;  %v5961_v63 = vmax.f32 %v5911_v12, 0.0 }
0x139b   : > { %v5960_v62 = vmax.f32 %v5906_v34, 0.0  ;;  %v8823_v50 = vpop.f32.mrb[152].mxu1 }
0x139c   : > { %v5921_v0 = vadd.f32 %v8823_v50, %v6826_v18  ;;  %v5915_v4 = vpop.f32.mrb[153].mxu1 }
0x139d   : > { %v5916_v6 = vadd.f32 %v6826_v18, %v5915_v4  ;;  %8874 = vmatprep.mubr.f32.mxu0 %v5960_v62 }
0x139e   : > { %8875 = vmatmul.mubr.f32.gmra.mrb[182].mxu0 %v5961_v63  ;;  %v5963_v2 = vmax.f32 %v5921_v0, 0.0 }
0x139f   : > { %v5962_v7 = vmax.f32 %v5916_v6, 0.0  ;;  %v8826_v8 = vpop.f32.mrb[154].mxu1 }
0x13a0   : > { %v5931_v58 = vadd.f32 %v8826_v8, %v6826_v18  ;;  %v5925_v10 = vpop.f32.mrb[155].mxu1 }
0x13a1   : > { %v5926_v21 = vadd.f32 %v6826_v18, %v5925_v10  ;;  %8877 = vmatprep.mubr.f32.mxu0 %v5962_v7 }
0x13a2   : > { %8878 = vmatmul.mubr.f32.gmra.mrb[184].mxu0 %v5963_v2  ;;  %v5965_v16 = vmax.f32 %v5931_v58, 0.0 }
0x13a3   : > { %v5964_v61 = vmax.f32 %v5926_v21, 0.0  ;;  %v8829_v15 = vpop.f32.mrb[156].mxu1 }
0x13a4   : > { %v5941_v20 = vadd.f32 %v8829_v15, %v6826_v18  ;;  %v5935_v5 = vpop.f32.mrb[157].mxu1 }
0x13a5   : > { %v5936_v22 = vadd.f32 %v6826_v18, %v5935_v5  ;;  %8880 = vmatprep.mubr.f32.mxu0 %v5964_v61 }
0x13a6   : > { %8881 = vmatmul.mubr.f32.gmra.mrb[186].mxu0 %v5965_v16  ;;  %v5967_v26 = vmax.f32 %v5941_v20, 0.0 }
0x13a7   : > { %v5966_v23 = vmax.f32 %v5936_v22, 0.0  ;;  %v8832_v24 = vpop.f32.mrb[158].mxu1 }
0x13a8   : > { %v5951_v28 = vadd.f32 %v8832_v24, %v6826_v18  ;;  %v5945_v31 = vpop.f32.mrb[159].mxu1 }
0x13a9   : > { %v5946_v13 = vadd.f32 %v6826_v18, %v5945_v31  ;;  %8883 = vmatprep.mubr.f32.mxu0 %v5966_v23 }
0x13aa   : > { %8884 = vmatmul.mubr.f32.gmra.mrb[188].mxu0 %v5967_v26  ;;  %v5969_v32 = vmax.f32 %v5951_v28, 0.0 }
0x13ab   : > { %v5968_v30 = vmax.f32 %v5946_v13, 0.0 }
0x13ad   : > { %8886 = vmatprep.mubr.f32.mxu0 %v5968_v30 }
0x13ae   : > { %8887 = vmatmul.mubr.f32.gmra.mrb[190].mxu0 %v5969_v32 }
0x1465   : > { %v8867_v42 = vpop.f32.mrb[176].mxu0 }
0x1466   : > { %v6065_v45 = vadd.f32 %v8867_v42, %v6827_v40  ;;  %v6059_v44 = vpop.f32.mrb[177].mxu0 }
0x1467   : > { %v6060_v46 = vadd.f32 %v6827_v40, %v6059_v44 }
0x1468   : > { %v6139_v47 = vmax.f32 %v6065_v45, 0.0  ;;  %v11696_v45 = vld [vmem:[%s10964_s13] ss:$0 sm:$0xff] }
0x1469   : > { %v6138_v29 = vmax.f32 %v6060_v46, 0.0  ;;  %v8870_v48 = vpop.f32.mrb[178].mxu0 }
0x146a   : > { %v6075_v18 = vadd.f32 %v8870_v48, %v6827_v40  ;;  %v6069_v52 = vpop.f32.mrb[179].mxu0  ;;  %v11700_v48 = vld [vmem:[%s11876_s3] ss:$0 sm:$0xff] }
0x146b   : > { %v6070_v14 = vadd.f32 %v6827_v40, %v6069_v52  ;;  %8921 = vmatprep.mubr.f32.mxu1 %v6138_v29 }
0x146c   : > { %8922 = vmatmul.mubr.f32.vlgmr.msra.gmra.mrb[160].mxu1 %v6139_v47  ;;  %v6141_v54 = vmax.f32 %v6075_v18, 0.0 }
0x146d   : > { %v6140_v38 = vmax.f32 %v6070_v14, 0.0  ;;  %v8873_v53 = vpop.f32.mrb[180].mxu0 }
0x146e   : > { %v6085_v55 = vadd.f32 %v8873_v53, %v6827_v40  ;;  %v6079_v56 = vpop.f32.mrb[181].mxu0 }
0x146f   : > { %v6080_v12 = vadd.f32 %v6827_v40, %v6079_v56  ;;  %8924 = vmatprep.mubr.f32.mxu1 %v6140_v38 }
0x1470   : > { %8925 = vmatmul.mubr.f32.gmra.mrb[162].mxu1 %v6141_v54  ;;  %v6143_v62 = vmax.f32 %v6085_v55, 0.0 }
0x1471   : > { %v6142_v60 = vmax.f32 %v6080_v12, 0.0  ;;  %v8876_v34 = vpop.f32.mrb[182].mxu0 }
0x1472   : > { %v6095_v50 = vadd.f32 %v8876_v34, %v6827_v40  ;;  %v6089_v63 = vpop.f32.mrb[183].mxu0 }
0x1473   : > { %v6090_v0 = vadd.f32 %v6827_v40, %v6089_v63  ;;  %8927 = vmatprep.mubr.f32.mxu1 %v6142_v60 }
0x1474   : > { %8928 = vmatmul.mubr.f32.gmra.mrb[164].mxu1 %v6143_v62  ;;  %v6145_v7 = vmax.f32 %v6095_v50, 0.0 }
0x1475   : > { %v6144_v4 = vmax.f32 %v6090_v0, 0.0  ;;  %v8879_v6 = vpop.f32.mrb[184].mxu0 }
0x1476   : > { %v6105_v8 = vadd.f32 %v8879_v6, %v6827_v40  ;;  %v6099_v2 = vpop.f32.mrb[185].mxu0 }
0x1477   : > { %v6100_v58 = vadd.f32 %v6827_v40, %v6099_v2  ;;  %8930 = vmatprep.mubr.f32.mxu1 %v6144_v4 }
0x1478   : > { %8931 = vmatmul.mubr.f32.gmra.mrb[166].mxu1 %v6145_v7  ;;  %v6147_v61 = vmax.f32 %v6105_v8, 0.0 }
0x1479   : > { %v6146_v10 = vmax.f32 %v6100_v58, 0.0  ;;  %v8882_v21 = vpop.f32.mrb[186].mxu0 }
0x147a   : > { %v6115_v15 = vadd.f32 %v8882_v21, %v6827_v40  ;;  %v6109_v16 = vpop.f32.mrb[187].mxu0 }
0x147b   : > { %v6110_v20 = vadd.f32 %v6827_v40, %v6109_v16  ;;  %8933 = vmatprep.mubr.f32.mxu1 %v6146_v10 }
0x147c   : > { %8934 = vmatmul.mubr.f32.gmra.mrb[168].mxu1 %v6147_v61  ;;  %v6149_v23 = vmax.f32 %v6115_v15, 0.0 }
0x147d   : > { %v6148_v5 = vmax.f32 %v6110_v20, 0.0  ;;  %v8885_v22 = vpop.f32.mrb[188].mxu0 }
0x147e   : > { %v6125_v24 = vadd.f32 %v8885_v22, %v6827_v40  ;;  %v6119_v26 = vpop.f32.mrb[189].mxu0 }
0x147f   : > { %v6120_v28 = vadd.f32 %v6827_v40, %v6119_v26  ;;  %8936 = vmatprep.mubr.f32.mxu1 %v6148_v5 }
0x1480   : > { %8937 = vmatmul.mubr.f32.gmra.mrb[170].mxu1 %v6149_v23  ;;  %v6151_v30 = vmax.f32 %v6125_v24, 0.0 }
0x1481   : > { %v6150_v31 = vmax.f32 %v6120_v28, 0.0  ;;  %v8888_v13 = vpop.f32.mrb[190].mxu0 }
0x1482   : > { %v6135_v32 = vadd.f32 %v8888_v13, %v6827_v40  ;;  %v6129_v36 = vpop.f32.mrb[191].mxu0 }
0x1483   : > { %v6130_v37 = vadd.f32 %v6827_v40, %v6129_v36  ;;  %8939 = vmatprep.mubr.f32.mxu1 %v6150_v31 }
0x1484   : > { %8940 = vmatmul.mubr.f32.gmra.mrb[172].mxu1 %v6151_v30  ;;  %v6153_v42 = vmax.f32 %v6135_v32, 0.0 }
0x1485   : > { %v6152_v39 = vmax.f32 %v6130_v37, 0.0 }
0x1487   : > { %8942 = vmatprep.mubr.f32.mxu1 %v6152_v39 }
0x1488   : > { %8943 = vmatmul.mubr.f32.gmra.mrb[174].mxu1 %v6153_v42 }
0x153f   : > { %v8923_v44 = vpop.f32.mrb[160].mxu1 }
0x1540   : > { %v6249_v46 = vadd.f32 %v8923_v44, %v11696_v45  ;;  %v6243_v29 = vpop.f32.mrb[161].mxu1 }
0x1541   : > { %v6244_v47 = vadd.f32 %v11696_v45, %v6243_v29 }
0x1542   : > { %v6323_v18 = vadd.f32 %v6249_v46, %v11443_v11 }
0x1543   : > { %v6322_v40 = vadd.f32 %v6244_v47, %v11441_v9  ;;  %v8926_v52 = vpop.f32.mrb[162].mxu1 }
0x1544   : > { %v6385_v14 = vmul.f32 %v11700_v48, %v6323_v18  ;;  %v6259_v38 = vadd.f32 %v8926_v52, %v11696_v45  ;;  %v6253_v53 = vpop.f32.mrb[163].mxu1 }
0x1545   : > { %v6384_v54 = vmul.f32 %v11700_v48, %v6322_v40  ;;  %v6254_v55 = vadd.f32 %v11696_v45, %v6253_v53 }
0x1546   : > { %6401 = vst [vmem:[%s11706_s15 + $0x8] sm:$0xff] %v6385_v14  ;;  %v6325_v11 = vadd.f32 %v6259_v38, %v11453_v19 }
0x1547   : > { %6400 = vst [vmem:[%s11706_s15] sm:$0xff] %v6384_v54  ;;  %v6324_v56 = vadd.f32 %v6254_v55, %v11451_v17  ;;  %v8929_v12 = vpop.f32.mrb[164].mxu1 }
0x1548   : > { %v6387_v9 = vmul.f32 %v11700_v48, %v6325_v11  ;;  %v6269_v60 = vadd.f32 %v8929_v12, %v11696_v45  ;;  %v6263_v34 = vpop.f32.mrb[165].mxu1 }
0x1549   : > { %v6386_v62 = vmul.f32 %v11700_v48, %v6324_v56  ;;  %v6264_v50 = vadd.f32 %v11696_v45, %v6263_v34 }
0x154a   : > { %6403 = vst [vmem:[%s11706_s15 + $0x18] sm:$0xff] %v6387_v9  ;;  %v6327_v63 = vadd.f32 %v6269_v60, %v11463_v27 }
0x154b   : > { %6402 = vst [vmem:[%s11706_s15 + $0x10] sm:$0xff] %v6386_v62  ;;  %v6326_v19 = vadd.f32 %v6264_v50, %v11461_v25  ;;  %v8932_v0 = vpop.f32.mrb[166].mxu1 }
0x154c   : > { %v6389_v17 = vmul.f32 %v11700_v48, %v6327_v63  ;;  %v6279_v4 = vadd.f32 %v8932_v0, %v11696_v45  ;;  %v6273_v6 = vpop.f32.mrb[167].mxu1 }
0x154d   : > { %v6388_v7 = vmul.f32 %v11700_v48, %v6326_v19  ;;  %v6274_v8 = vadd.f32 %v11696_v45, %v6273_v6 }
0x154e   : > { %6405 = vst [vmem:[%s11706_s15 + $0x28] sm:$0xff] %v6389_v17  ;;  %v6329_v2 = vadd.f32 %v6279_v4, %v11473_v35 }
0x154f   : > { %6404 = vst [vmem:[%s11706_s15 + $0x20] sm:$0xff] %v6388_v7  ;;  %v6328_v27 = vadd.f32 %v6274_v8, %v11471_v33  ;;  %v8935_v58 = vpop.f32.mrb[168].mxu1 }
0x1550   : > { %v6391_v25 = vmul.f32 %v11700_v48, %v6329_v2  ;;  %v6289_v10 = vadd.f32 %v8935_v58, %v11696_v45  ;;  %v6283_v21 = vpop.f32.mrb[169].mxu1 }
0x1551   : > { %v6390_v61 = vmul.f32 %v11700_v48, %v6328_v27  ;;  %v6284_v15 = vadd.f32 %v11696_v45, %v6283_v21 }
0x1552   : > { %6407 = vst [vmem:[%s11706_s15 + $0x38] sm:$0xff] %v6391_v25  ;;  %v6331_v16 = vadd.f32 %v6289_v10, %v11483_v43 }
0x1553   : > { %6406 = vst [vmem:[%s11706_s15 + $0x30] sm:$0xff] %v6390_v61  ;;  %v6330_v35 = vadd.f32 %v6284_v15, %v11481_v41  ;;  %v8938_v20 = vpop.f32.mrb[170].mxu1 }
0x1554   : > { %v6393_v33 = vmul.f32 %v11700_v48, %v6331_v16  ;;  %v6299_v5 = vadd.f32 %v8938_v20, %v11696_v45  ;;  %v6293_v22 = vpop.f32.mrb[171].mxu1 }
0x1555   : > { %v6392_v23 = vmul.f32 %v11700_v48, %v6330_v35  ;;  %v6294_v24 = vadd.f32 %v11696_v45, %v6293_v22 }
0x1556   : > { %6409 = vst [vmem:[%s11706_s15 + $0x48] sm:$0xff] %v6393_v33  ;;  %v6333_v26 = vadd.f32 %v6299_v5, %v11493_v51 }
0x1557   : > { %6408 = vst [vmem:[%s11706_s15 + $0x40] sm:$0xff] %v6392_v23  ;;  %v6332_v43 = vadd.f32 %v6294_v24, %v11491_v49  ;;  %v8941_v28 = vpop.f32.mrb[172].mxu1 }
0x1558   : > { %v6395_v41 = vmul.f32 %v11700_v48, %v6333_v26  ;;  %v6309_v31 = vadd.f32 %v8941_v28, %v11696_v45  ;;  %v6303_v13 = vpop.f32.mrb[173].mxu1 }
0x1559   : > { %v6394_v30 = vmul.f32 %v11700_v48, %v6332_v43  ;;  %v6304_v32 = vadd.f32 %v11696_v45, %v6303_v13 }
0x155a   : > { %6411 = vst [vmem:[%s11706_s15 + $0x58] sm:$0xff] %v6395_v41  ;;  %v6335_v36 = vadd.f32 %v6309_v31, %v11503_v59 }
0x155b   : > { %6410 = vst [vmem:[%s11706_s15 + $0x50] sm:$0xff] %v6394_v30  ;;  %v6334_v49 = vadd.f32 %v6304_v32, %v11501_v57  ;;  %v8944_v51 = vpop.f32.mrb[174].mxu1 }
0x155c   : > { %v6397_v37 = vmul.f32 %v11700_v48, %v6335_v36  ;;  %v6319_v39 = vadd.f32 %v8944_v51, %v11696_v45  ;;  %v6313_v42 = vpop.f32.mrb[175].mxu1 }
0x155d   : > { %v6396_v44 = vmul.f32 %v11700_v48, %v6334_v49  ;;  %v6314_v46 = vadd.f32 %v11696_v45, %v6313_v42 }
0x155e   : > { %6413 = vst [vmem:[%s11706_s15 + $0x68] sm:$0xff] %v6397_v37  ;;  %v6337_v29 = vadd.f32 %v6319_v39, %v11513_v3 }
0x155f   : > { %6412 = vst [vmem:[%s11706_s15 + $0x60] sm:$0xff] %v6396_v44  ;;  %v6336_v59 = vadd.f32 %v6314_v46, %v11511_v1 }
0x1560   : > { %v6399_v47 = vmul.f32 %v11700_v48, %v6337_v29 }
0x1561   : > { %v6398_v57 = vmul.f32 %v11700_v48, %v6336_v59 }
0x1562   : > { %6415 = vst [vmem:[%s11706_s15 + $0x78] sm:$0xff] %v6399_v47 }
0x1563   : > { %6414 = vst [vmem:[%s11706_s15 + $0x70] sm:$0xff] %v6398_v57 }
0x1564 PF: > { %s128_s7 = sadd.s32 1, %s10625_s7  }
0x1565   : > { %p125_p7 = scmp.ge.s32.totalorder %s128_s7, 4  }
0x1567   :  { %127 = sbr.rel (!%p125_p7) target bundleno = 107 (0x6b), region = 403 }
0x156e   :  { %6455 = vsyncpa [#allocation3], 1 }
0x156f   :  { %6457 = vsyncpa [#allocation3 + $0x1], 1 }
0x1570   :  { %6458 = vsyncpa [#allocation5], 1 }
0x1571   :  { %6459 = vsyncpa [#allocation8], 1 }
0x1572   :  { %6460 = vsyncpa [#allocation11], 1 }
0x1573   :  { %6461 = vsyncpa [#allocation14], 1 }
0x1574   :  { %6462 = vsyncpa [#allocation17], 1 }
0x1575   :  { %6463 = vsyncpa [#allocation20], 1 }
0x1576   :  { %6464 = vsyncpa [#allocation23], 1 }
0x1577   :  { %6465 = vsyncpa [#allocation26], 1 }
0x1578   :  { %6466 = vsyncpa [#allocation29], 1 }

</bundles_post_ra>
